<compile_context>
chip_gen: v6e
topology: v6e:2x2x1
jax: 0.10.0
libtpu: 0.0.40
codegen_flags: <defaults>
</compile_context>

<pallas_src>
import functools

import jax
import jax.numpy as jnp
from jax.experimental import pallas as pl
from jax.experimental.pallas import tpu as pltpu

EPS = 1e-5
LANE = 128


def _round_up(x, m):
    return (x + m - 1) // m * m


def _pad_channels(c):
    # 256-aligned channel tiles once channels are large (v6e/v7x MXU is 2x256x256),
    # otherwise the 128-lane minimum (native width on v5e's 4x128x128 MXU).
    return _round_up(c, 256) if c >= 256 else _round_up(c, LANE)


def _device_vmem_bytes():
    try:
        cap = getattr(pltpu.get_tpu_info(), "vmem_capacity_bytes", None)
        if cap:
            return int(cap)
    except Exception:
        pass
    return 64 * 1024 * 1024          # conservative default (v7x per-TC VMEM)


# ----------------------------- kernels --------------------------------------

def _sum_sumsq(y):
    # one-pass BN statistics: [sum; sum of squares] per channel (f32)
    return jnp.concatenate(
        [jnp.sum(y, axis=0, keepdims=True),
         jnp.sum(y * y, axis=0, keepdims=True)], axis=0)


def _matmul_stats_kernel(x_ref, w_ref, y_ref, s_ref):
    """pass 1: y = x @ w (bf16 MXU, f32 accum) + partial BN stats; y stored bf16."""
    y = jnp.dot(x_ref[...].astype(jnp.bfloat16), w_ref[...],
                preferred_element_type=jnp.float32)
    y_ref[...] = y.astype(y_ref.dtype)
    s_ref[...] = _sum_sumsq(y)


def _affine_relu_matmul_stats_kernel(tr, r_valid, need_mask,
                                     x_ref, a_ref, b_ref, w_ref, y_ref, s_ref):
    """pass 3: y = relu(x*a + b) @ w + partial stats (padded rows masked out)."""
    h = jnp.maximum(x_ref[...].astype(jnp.float32) * a_ref[...] + b_ref[...], 0.0)
    y = jnp.dot(h.astype(jnp.bfloat16), w_ref[...],
                preferred_element_type=jnp.float32)
    y_ref[...] = y.astype(y_ref.dtype)
    if need_mask:
        rows = (jax.lax.broadcasted_iota(jnp.int32, y.shape, 0)
                + pl.program_id(0) * tr)
        y = jnp.where(rows < r_valid, y, 0.0)   # rows >= R are never written upstream
    s_ref[...] = _sum_sumsq(y)


def _conv2_tap_kernel(H, W, dil, x_ref, a_ref, b_ref, w_ref, y_ref, s_ref):
    """pass 2, per image: o1 = relu(x*a+b); dilated 3x3 conv as 9 accumulated taps."""
    P = x_ref.shape[-1]
    o1 = jnp.maximum(x_ref[...].astype(jnp.float32) * a_ref[...] + b_ref[...], 0.0)
    o1 = o1.astype(jnp.bfloat16).reshape(H, W, P)
    # zero borders supplied by concatenation (bf16: half the scratch of the old f32)
    zh = jnp.zeros((dil, W, P), jnp.bfloat16)
    zw = jnp.zeros((H + 2 * dil, dil, P), jnp.bfloat16)
    padded = jnp.concatenate(
        [zw, jnp.concatenate([zh, o1, zh], axis=0), zw], axis=1)   # (H+2d, W+2d, P)
    acc = jnp.zeros((H * W, P), jnp.float32)
    for kh in range(3):
        for kw in range(3):
            tap = padded[kh * dil:kh * dil + H,
                         kw * dil:kw * dil + W, :].reshape(H * W, P)
            acc += jnp.dot(tap, w_ref[kh * 3 + kw],
                           preferred_element_type=jnp.float32)
    y_ref[...] = acc.astype(y_ref.dtype)
    s_ref[...] = _sum_sumsq(acc)


def _bn_residual_kernel(out_cols, y_ref, x_ref, a_ref, b_ref, o_ref):
    """pass 4: out = y*a + b + x  (the module has NO ReLU after the residual add)."""
    o = y_ref[...].astype(jnp.float32) * a_ref[...] + b_ref[...] + x_ref[...]
    if out_cols != o.shape[1]:
        o = o[:, :out_cols]            # fused channel un-pad (out_cols % 128 == 0)
    o_ref[...] = o


# ----------------------------- call wrappers ---------------------------------

def _mosaic_params(vmem_limit, ndims=1):
    return pltpu.CompilerParams(
        dimension_semantics=("parallel",) * ndims,
        vmem_limit_bytes=vmem_limit)


def _conv1_call(x, w, tr, vmem_limit):
    rp, cin = x.shape
    cout = w.shape[1]
    g = rp // tr
    y, stats = pl.pallas_call(
        _matmul_stats_kernel,
        out_shape=(jax.ShapeDtypeStruct((rp, cout), jnp.bfloat16),
                   jax.ShapeDtypeStruct((g, 2, cout), jnp.float32)),
        grid_spec=pltpu.PrefetchScalarGridSpec(
            num_scalar_prefetch=0, grid=(g,),
            in_specs=[
                pl.BlockSpec((tr, cin), lambda i: (i, 0)),
                pl.BlockSpec((cin, cout), lambda i: (0, 0)),
            ],
            out_specs=(
                pl.BlockSpec((tr, cout), lambda i: (i, 0)),
                pl.BlockSpec((None, 2, cout), lambda i: (i, 0, 0)),
            )),
        compiler_params=_mosaic_params(vmem_limit),
    )(x, w)
    return y, jnp.sum(stats, axis=0)


def _conv2_call(y1, a, b, w2, n_img, h, w, dil, vmem_limit):
    hw = h * w
    p = y1.shape[-1]
    kernel = functools.partial(_conv2_tap_kernel, h, w, dil)
    y2, stats = pl.pallas_call(
        kernel,
        out_shape=(jax.ShapeDtypeStruct(y1.shape, jnp.bfloat16),
                   jax.ShapeDtypeStruct((n_img, 2, p), jnp.float32)),
        grid_spec=pltpu.PrefetchScalarGridSpec(
            num_scalar_prefetch=0, grid=(n_img,),
            in_specs=[
                pl.BlockSpec((hw, p), lambda n: (n, 0)),
                pl.BlockSpec((1, p), lambda n: (0, 0)),
                pl.BlockSpec((1, p), lambda n: (0, 0)),
                pl.BlockSpec((9, p, p), lambda n: (0, 0, 0)),
            ],
            out_specs=(
                pl.BlockSpec((hw, p), lambda n: (n, 0)),
                pl.BlockSpec((None, 2, p), lambda n: (n, 0, 0)),
            )),
        compiler_params=_mosaic_params(vmem_limit),
    )(y1, a, b, w2)
    return y2, jnp.sum(stats, axis=0)


def _conv3_call(y2, a, b, w, tr, r_valid, vmem_limit):
    rp, cin = y2.shape
    cout = w.shape[1]
    g = rp // tr
    kernel = functools.partial(_affine_relu_matmul_stats_kernel,
                               tr, r_valid, rp > r_valid)
    y, stats = pl.pallas_call(
        kernel,
        out_shape=(jax.ShapeDtypeStruct((rp, cout), jnp.bfloat16),
                   jax.ShapeDtypeStruct((g, 2, cout), jnp.float32)),
        grid_spec=pltpu.PrefetchScalarGridSpec(
            num_scalar_prefetch=0, grid=(g,),
            in_specs=[
                pl.BlockSpec((tr, cin), lambda i: (i, 0)),
                pl.BlockSpec((1, cin), lambda i: (0, 0)),
                pl.BlockSpec((1, cin), lambda i: (0, 0)),
                pl.BlockSpec((cin, cout), lambda i: (0, 0)),
            ],
            out_specs=(
                pl.BlockSpec((tr, cout), lambda i: (i, 0)),
                pl.BlockSpec((None, 2, cout), lambda i: (i, 0, 0)),
            )),
        compiler_params=_mosaic_params(vmem_limit),
    )(y2, a, b, w)
    return y, jnp.sum(stats, axis=0)


def _residual_call(y3, x2d, a, b, tr, c_real, vmem_limit):
    rp, c = y3.shape
    g = rp // tr
    narrow = (c_real % LANE == 0) and (c_real < c)   # fuse the un-pad when lane-aligned
    c_store = c_real if narrow else c
    kernel = functools.partial(_bn_residual_kernel, c_store)
    return pl.pallas_call(
        kernel,
        out_shape=jax.ShapeDtypeStruct((rp, c_store), jnp.float32),
        grid_spec=pltpu.PrefetchScalarGridSpec(
            num_scalar_prefetch=0, grid=(g,),
            in_specs=[
                pl.BlockSpec((tr, c), lambda i: (i, 0)),
                pl.BlockSpec((tr, c), lambda i: (i, 0)),
                pl.BlockSpec((1, c), lambda i: (0, 0)),
                pl.BlockSpec((1, c), lambda i: (0, 0)),
            ],
            out_specs=pl.BlockSpec((tr, c_store), lambda i: (i, 0))),
        compiler_params=_mosaic_params(vmem_limit),
    )(y3, x2d, a, b)


def _bn_affine(stats, gamma, beta, count):
    """Fold training-mode BN (batch stats, biased var) into y*scale + shift."""
    mean = stats[0] / count
    var = jnp.maximum(stats[1] / count - mean * mean, 0.0)
    scale = gamma * jax.lax.rsqrt(var + EPS)
    shift = beta - mean * scale
    return scale.reshape(1, -1), shift.reshape(1, -1)


# ----------------------------- forward ---------------------------------------

def bottleneck_forward(x_nchw, params, *, dilate=1, block_rows=None,
                       vmem_limit_bytes=None):
    # TODO(synk): stride > 1 and an external `downsample` module are not implemented
    # (they require a separately constructed module); this covers the stride=1 /
    # identity-residual configuration.
    N, C4, H, W = x_nchw.shape
    planes = params["conv1_w"].shape[0]
    assert C4 == 4 * planes, "identity residual requires inplanes == 4*planes"
    HW = H * W
    assert HW % 8 == 0, "H*W must be a multiple of 8 (sublane tiling)"
    R = N * HW
    Pp = _pad_channels(planes)
    C4p = _pad_channels(C4)
    f32, bf16 = jnp.float32, jnp.bfloat16

    vmem_cap = _device_vmem_bytes()
    if vmem_limit_bytes is None:
        vmem_limit_bytes = int(vmem_cap * 3 // 4)       # headroom under physical VMEM
    if block_rows is None:
        block_rows = 1024 if vmem_cap >= 100 * 1024 * 1024 else 512   # v5e/v6e vs v7x

    TR = min(block_rows, _round_up(R, 8))
    R_pad = _round_up(R, TR)          # fixed row block on every shape (no divisor hunt)

    # ---- glue: layout & lane-padded parameter packing (plain JAX) ----
    # TODO(synk): in a full network keep activations channels-last end-to-end so
    # these NCHW<->NHWC transposes (an extra HBM round-trip) disappear.
    x2d = jnp.transpose(x_nchw, (0, 2, 3, 1)).reshape(R, C4).astype(f32)
    x2d = jnp.pad(x2d, ((0, R_pad - R), (0, C4p - C4)))   # zero rows: stats stay exact

    w1 = jnp.zeros((C4p, Pp), bf16).at[:C4, :planes].set(
        params["conv1_w"][:, :, 0, 0].T.astype(bf16))
    w2t = jnp.transpose(params["conv2_w"], (2, 3, 1, 0)).reshape(9, planes, planes)
    w2 = jnp.zeros((9, Pp, Pp), bf16).at[:, :planes, :planes].set(w2t.astype(bf16))
    w3 = jnp.zeros((Pp, C4p), bf16).at[:planes, :C4].set(
        params["conv3_w"][:, :, 0, 0].T.astype(bf16))

    padc = lambda v, n: jnp.pad(v.astype(f32), (0, n - v.shape[0]))
    g1, b1 = padc(params["bn1_g"], Pp), padc(params["bn1_b"], Pp)
    g2, b2 = padc(params["bn2_g"], Pp), padc(params["bn2_b"], Pp)
    g3, b3 = padc(params["bn3_g"], C4p), padc(params["bn3_b"], C4p)

    # pass 1: conv1 (1x1 == matmul) + bn1 batch statistics
    y1, st1 = _conv1_call(x2d, w1, TR, vmem_limit_bytes)
    a1, s1 = _bn_affine(st1, g1, b1, R)
    # pass 2: bn1+relu fused into the dilated 3x3 conv (9 accumulated tap matmuls)
    y2, st2 = _conv2_call(y1, a1, s1, w2, N, H, W, dilate, vmem_limit_bytes)
    a2, s2 = _bn_affine(st2, g2, b2, R)
    # pass 3: bn2+relu fused into conv3 + bn3 stats (padded rows masked out of stats)
    y3, st3 = _conv3_call(y2, a2, s2, w3, TR, R, vmem_limit_bytes)
    a3, s3 = _bn_affine(st3, g3, b3, R)
    # pass 4: bn3 affine + identity residual (no post-add ReLU in this module)
    out2d = _residual_call(y3, x2d, a3, s3, TR, C4, vmem_limit_bytes)

    out = out2d[:R, :C4].reshape(N, H, W, C4)
    return jnp.transpose(out, (0, 3, 1, 2))


# ----------------------------- reference & test -------------------------------

def _reference(x, params, dilate):
    """Pure-JAX reference (NCHW, training-mode BN) for validation."""
    def conv(x, w, padding=0, dilation=1):
        return jax.lax.conv_general_dilated(
            x, w, window_strides=(1, 1),
            padding=[(padding, padding)] * 2,
            rhs_dilation=(dilation, dilation),
            dimension_numbers=("NCHW", "OIHW", "NCHW"),
            precision=jax.lax.Precision.HIGHEST)

    def bn(x, g, b):
        mu = x.mean(axis=(0, 2, 3), keepdims=True)
        var = ((x - mu) ** 2).mean(axis=(0, 2, 3), keepdims=True)
        return ((x - mu) / jnp.sqrt(var + EPS) * g.reshape(1, -1, 1, 1)
                + b.reshape(1, -1, 1, 1))

    out = jax.nn.relu(bn(conv(x, params["conv1_w"]),
                         params["bn1_g"], params["bn1_b"]))
    out = jax.nn.relu(bn(conv(out, params["conv2_w"], padding=dilate, dilation=dilate),
                         params["bn2_g"], params["bn2_b"]))
    out = bn(conv(out, params["conv3_w"]), params["bn3_g"], params["bn3_b"])
    return out + x


if __name__ == "__main__":
    key = jax.random.PRNGKey(0)
    # N=5 makes R=1280 NOT a multiple of the row block => exercises the padded-row
    # + masked-stats path as well as the common aligned path.
    N, planes, H, W, dilate = 5, 8, 16, 16, 2
    inplanes = planes * 4          # identity residual => inplanes == planes * expansion
    ks = jax.random.split(key, 10)
    params = {
        "conv1_w": jax.random.normal(ks[0], (planes, inplanes, 1, 1), jnp.float32)
                   / jnp.sqrt(inplanes),
        "conv2_w": jax.random.normal(ks[1], (planes, planes, 3, 3), jnp.float32)
                   / jnp.sqrt(9.0 * planes),
        "conv3_w": jax.random.normal(ks[2], (inplanes, planes, 1, 1), jnp.float32)
                   / jnp.sqrt(planes),
        "bn1_g": 1.0 + 0.1 * jax.random.normal(ks[3], (planes,), jnp.float32),
        "bn1_b": 0.1 * jax.random.normal(ks[4], (planes,), jnp.float32),
        "bn2_g": 1.0 + 0.1 * jax.random.normal(ks[5], (planes,), jnp.float32),
        "bn2_b": 0.1 * jax.random.normal(ks[6], (planes,), jnp.float32),
        "bn3_g": 1.0 + 0.1 * jax.random.normal(ks[7], (inplanes,), jnp.float32),
        "bn3_b": 0.1 * jax.random.normal(ks[8], (inplanes,), jnp.float32),
    }
    x = jax.random.normal(ks[9], (N, inplanes, H, W), jnp.float32)

    fwd = jax.jit(functools.partial(bottleneck_forward, dilate=dilate))
    out = jax.block_until_ready(fwd(x, params))
    ref = jax.block_until_ready(_reference(x, params, dilate))

    # bf16 MXU operands + bf16 intermediate activations => relaxed tolerances
    # (structural bugs give O(1) errors; observed numeric error is ~1% rel).
    rel_l2 = float(jnp.linalg.norm(out - ref) / jnp.linalg.norm(ref))
    max_err = float(jnp.max(jnp.abs(out - ref)))
    if rel_l2 > 4e-2 or max_err > 3.5e-1:
        raise AssertionError(
            f"mismatch vs reference: rel_l2={rel_l2:.4g} max_abs={max_err:.4g}")
    print("KERNEL_OK")
</pallas_src>

<mosaic_0001>
module attributes {stable_mosaic.version = 11 : i64} {
  func.func @_matmul_stats_kernel(%arg0: i32, %arg1: memref<512x128xf32, #tpu.memory_space<vmem>>, %arg2: memref<128x128xbf16, #tpu.memory_space<vmem>>, %arg3: memref<512x128xbf16, #tpu.memory_space<vmem>>, %arg4: memref<1x2x128xf32, #tpu.memory_space<vmem>>) attributes {dimension_semantics = [#tpu.dimension_semantics<parallel>], iteration_bounds = array<i64: 3>, scalar_prefetch = 0 : i64, scratch_operands = 0 : i64, tpu.core_type = #tpu.core_type<tc>, window_params = [{transform_indices = @transform_0, window_bounds = array<i64: 512, 128>}, {pipeline_mode = #tpu.pipeline_mode<synchronous>, transform_indices = @transform_1, window_bounds = array<i64: 128, 128>}, {transform_indices = @transform_2, window_bounds = array<i64: 512, 128>}, {transform_indices = @transform_3, window_bounds = array<i64: 1, 2, 128>}]} {
    %c0 = arith.constant 0 : index
    %c0_0 = arith.constant 0 : index
    %0 = vector.load %arg1[%c0, %c0_0] : memref<512x128xf32, #tpu.memory_space<vmem>>, vector<512x128xf32>
    %1 = arith.truncf %0 : vector<512x128xf32> to vector<512x128xbf16>
    %c0_1 = arith.constant 0 : index
    %c0_2 = arith.constant 0 : index
    %2 = vector.load %arg2[%c0_1, %c0_2] : memref<128x128xbf16, #tpu.memory_space<vmem>>, vector<128x128xbf16>
    %cst = arith.constant dense<0.000000e+00> : vector<512x128xf32>
    %3 = tpu.matmul %1, %2, %cst {dimension_numbers = #tpu.dot_dimension_numbers<[1], [0], [0], [1], [0, 0, 1, 1], [], []>} : vector<512x128xbf16>, vector<128x128xbf16>, vector<512x128xf32> -> vector<512x128xf32>
    %4 = arith.truncf %3 : vector<512x128xf32> to vector<512x128xbf16>
    %c0_3 = arith.constant 0 : index
    %c0_4 = arith.constant 0 : index
    %5 = vector.load %arg3[%c0_3, %c0_4] : memref<512x128xbf16, #tpu.memory_space<vmem>>, vector<512x128xbf16>
    tpu.vector_store %arg3[%c0_3, %c0_4], %4 {strides = array<i32>} : memref<512x128xbf16, #tpu.memory_space<vmem>>, vector<512x128xbf16>,
    %cst_5 = arith.constant dense<0.000000e+00> : vector<128xf32>
    %6 = vector.multi_reduction <add>, %3, %cst_5 [0] : vector<512x128xf32> to vector<128xf32>
    %7 = vector.shape_cast %6 : vector<128xf32> to vector<1x128xf32>
    %8 = arith.mulf %3, %3 : vector<512x128xf32>
    %cst_6 = arith.constant dense<0.000000e+00> : vector<128xf32>
    %9 = vector.multi_reduction <add>, %8, %cst_6 [0] : vector<512x128xf32> to vector<128xf32>
    %10 = vector.shape_cast %9 : vector<128xf32> to vector<1x128xf32>
    %11 = tpu.concatenate %7, %10 in 0 : vector<1x128xf32>, vector<1x128xf32> -> vector<2x128xf32>
    %c0_7 = arith.constant 0 : index
    %c0_8 = arith.constant 0 : index
    %c0_9 = arith.constant 0 : index
    %12 = vector.load %arg4[%c0_7, %c0_8, %c0_9] : memref<1x2x128xf32, #tpu.memory_space<vmem>>, vector<1x2x128xf32>
    %13 = vector.shape_cast %12 : vector<1x2x128xf32> to vector<2x128xf32>
    %14 = vector.shape_cast %11 : vector<2x128xf32> to vector<1x2x128xf32>
    tpu.vector_store %arg4[%c0_7, %c0_8, %c0_9], %14 {strides = array<i32>} : memref<1x2x128xf32, #tpu.memory_space<vmem>>, vector<1x2x128xf32>,
    return
  }
  func.func @transform_0(%arg0: i32) -> (i32, i32) {
    %c0_i32 = arith.constant 0 : i32
    %c0_i32_0 = arith.constant 0 : i32
    return %arg0, %c0_i32 : i32, i32
  }
  func.func @transform_1(%arg0: i32) -> (i32, i32) {
    %c0_i32 = arith.constant 0 : i32
    %c0_i32_0 = arith.constant 0 : i32
    %c0_i32_1 = arith.constant 0 : i32
    return %c0_i32, %c0_i32_0 : i32, i32
  }
  func.func @transform_2(%arg0: i32) -> (i32, i32) {
    %c0_i32 = arith.constant 0 : i32
    %c0_i32_0 = arith.constant 0 : i32
    return %arg0, %c0_i32 : i32, i32
  }
  func.func @transform_3(%arg0: i32) -> (i32, i32, i32) {
    %c0_i32 = arith.constant 0 : i32
    %c0_i32_0 = arith.constant 0 : i32
    %c0_i32_1 = arith.constant 0 : i32
    return %arg0, %c0_i32, %c0_i32_0 : i32, i32, i32
  }
}

module attributes {stable_mosaic.version = 11 : i64} {
  func.func @_conv2_tap_kernel(%arg0: i32, %arg1: memref<256x128xbf16, #tpu.memory_space<vmem>>, %arg2: memref<1x128xf32, #tpu.memory_space<vmem>>, %arg3: memref<1x128xf32, #tpu.memory_space<vmem>>, %arg4: memref<9x128x128xbf16, #tpu.memory_space<vmem>>, %arg5: memref<256x128xbf16, #tpu.memory_space<vmem>>, %arg6: memref<1x2x128xf32, #tpu.memory_space<vmem>>) attributes {dimension_semantics = [#tpu.dimension_semantics<parallel>], iteration_bounds = array<i64: 5>, scalar_prefetch = 0 : i64, scratch_operands = 0 : i64, tpu.core_type = #tpu.core_type<tc>, window_params = [{transform_indices = @transform_0, window_bounds = array<i64: 256, 128>}, {pipeline_mode = #tpu.pipeline_mode<synchronous>, transform_indices = @transform_1, window_bounds = array<i64: 1, 128>}, {pipeline_mode = #tpu.pipeline_mode<synchronous>, transform_indices = @transform_2, window_bounds = array<i64: 1, 128>}, {pipeline_mode = #tpu.pipeline_mode<synchronous>, transform_indices = @transform_3, window_bounds = array<i64: 9, 128, 128>}, {transform_indices = @transform_4, window_bounds = array<i64: 256, 128>}, {transform_indices = @transform_5, window_bounds = array<i64: 1, 2, 128>}]} {
    %c0 = arith.constant 0 : index
    %c0_0 = arith.constant 0 : index
    %0 = vector.load %arg1[%c0, %c0_0] : memref<256x128xbf16, #tpu.memory_space<vmem>>, vector<256x128xbf16>
    %1 = arith.extf %0 : vector<256x128xbf16> to vector<256x128xf32>
    %c0_1 = arith.constant 0 : index
    %c0_2 = arith.constant 0 : index
    %2 = vector.load %arg2[%c0_1, %c0_2] : memref<1x128xf32, #tpu.memory_space<vmem>>, vector<1x128xf32>
    %3 = vector.broadcast %2 : vector<1x128xf32> to vector<256x128xf32>
    %4 = arith.mulf %1, %3 : vector<256x128xf32>
    %c0_3 = arith.constant 0 : index
    %c0_4 = arith.constant 0 : index
    %5 = vector.load %arg3[%c0_3, %c0_4] : memref<1x128xf32, #tpu.memory_space<vmem>>, vector<1x128xf32>
    %6 = vector.broadcast %5 : vector<1x128xf32> to vector<256x128xf32>
    %7 = arith.addf %4, %6 : vector<256x128xf32>
    %cst = arith.constant 0.000000e+00 : f32
    %8 = vector.broadcast %cst : f32 to vector<256x128xf32>
    %9 = arith.maximumf %7, %8 : vector<256x128xf32>
    %10 = arith.truncf %9 : vector<256x128xf32> to vector<256x128xbf16>
    %11 = vector.shape_cast %10 : vector<256x128xbf16> to vector<16x16x128xbf16>
    %cst_5 = arith.constant 0.000000e+00 : bf16
    %12 = vector.broadcast %cst_5 : bf16 to vector<2x16x128xbf16>
    %cst_6 = arith.constant 0.000000e+00 : bf16
    %13 = vector.broadcast %cst_6 : bf16 to vector<20x2x128xbf16>
    %14 = tpu.concatenate %12, %11, %12 in 0 : vector<2x16x128xbf16>, vector<16x16x128xbf16>, vector<2x16x128xbf16> -> vector<20x16x128xbf16>
    %15 = tpu.concatenate %13, %14, %13 in 1 : vector<20x2x128xbf16>, vector<20x16x128xbf16>, vector<20x2x128xbf16> -> vector<20x20x128xbf16>
    %cst_7 = arith.constant 0.000000e+00 : f32
    %16 = vector.broadcast %cst_7 : f32 to vector<256x128xf32>
    %17 = vector.extract_strided_slice %15 {offsets = [0, 0, 0], sizes = [16, 16, 128], strides = [1, 1, 1]} : vector<20x20x128xbf16> to vector<16x16x128xbf16>
    %18 = vector.shape_cast %17 : vector<16x16x128xbf16> to vector<256x128xbf16>
    %c0_8 = arith.constant 0 : index
    %c0_9 = arith.constant 0 : index
    %c0_10 = arith.constant 0 : index
    %19 = vector.load %arg4[%c0_8, %c0_9, %c0_10] : memref<9x128x128xbf16, #tpu.memory_space<vmem>>, vector<1x128x128xbf16>
    %20 = vector.shape_cast %19 : vector<1x128x128xbf16> to vector<128x128xbf16>
    %cst_11 = arith.constant dense<0.000000e+00> : vector<256x128xf32>
    %21 = tpu.matmul %18, %20, %cst_11 {dimension_numbers = #tpu.dot_dimension_numbers<[1], [0], [0], [1], [0, 0, 1, 1], [], []>} : vector<256x128xbf16>, vector<128x128xbf16>, vector<256x128xf32> -> vector<256x128xf32>
    %22 = arith.addf %16, %21 : vector<256x128xf32>
    %23 = vector.extract_strided_slice %15 {offsets = [0, 2, 0], sizes = [16, 16, 128], strides = [1, 1, 1]} : vector<20x20x128xbf16> to vector<16x16x128xbf16>
    %24 = vector.shape_cast %23 : vector<16x16x128xbf16> to vector<256x128xbf16>
    %c1 = arith.constant 1 : index
    %c0_12 = arith.constant 0 : index
    %c0_13 = arith.constant 0 : index
    %25 = vector.load %arg4[%c1, %c0_12, %c0_13] : memref<9x128x128xbf16, #tpu.memory_space<vmem>>, vector<1x128x128xbf16>
    %26 = vector.shape_cast %25 : vector<1x128x128xbf16> to vector<128x128xbf16>
    %cst_14 = arith.constant dense<0.000000e+00> : vector<256x128xf32>
    %27 = tpu.matmul %24, %26, %cst_14 {dimension_numbers = #tpu.dot_dimension_numbers<[1], [0], [0], [1], [0, 0, 1, 1], [], []>} : vector<256x128xbf16>, vector<128x128xbf16>, vector<256x128xf32> -> vector<256x128xf32>
    %28 = arith.addf %22, %27 : vector<256x128xf32>
    %29 = vector.extract_strided_slice %15 {offsets = [0, 4, 0], sizes = [16, 16, 128], strides = [1, 1, 1]} : vector<20x20x128xbf16> to vector<16x16x128xbf16>
    %30 = vector.shape_cast %29 : vector<16x16x128xbf16> to vector<256x128xbf16>
    %c2 = arith.constant 2 : index
    %c0_15 = arith.constant 0 : index
    %c0_16 = arith.constant 0 : index
    %31 = vector.load %arg4[%c2, %c0_15, %c0_16] : memref<9x128x128xbf16, #tpu.memory_space<vmem>>, vector<1x128x128xbf16>
    %32 = vector.shape_cast %31 : vector<1x128x128xbf16> to vector<128x128xbf16>
    %cst_17 = arith.constant dense<0.000000e+00> : vector<256x128xf32>
    %33 = tpu.matmul %30, %32, %cst_17 {dimension_numbers = #tpu.dot_dimension_numbers<[1], [0], [0], [1], [0, 0, 1, 1], [], []>} : vector<256x128xbf16>, vector<128x128xbf16>, vector<256x128xf32> -> vector<256x128xf32>
    %34 = arith.addf %28, %33 : vector<256x128xf32>
    %35 = vector.extract_strided_slice %15 {offsets = [2, 0, 0], sizes = [16, 16, 128], strides = [1, 1, 1]} : vector<20x20x128xbf16> to vector<16x16x128xbf16>
    %36 = vector.shape_cast %35 : vector<16x16x128xbf16> to vector<256x128xbf16>
    %c3 = arith.constant 3 : index
    %c0_18 = arith.constant 0 : index
    %c0_19 = arith.constant 0 : index
    %37 = vector.load %arg4[%c3, %c0_18, %c0_19] : memref<9x128x128xbf16, #tpu.memory_space<vmem>>, vector<1x128x128xbf16>
    %38 = vector.shape_cast %37 : vector<1x128x128xbf16> to vector<128x128xbf16>
    %cst_20 = arith.constant dense<0.000000e+00> : vector<256x128xf32>
    %39 = tpu.matmul %36, %38, %cst_20 {dimension_numbers = #tpu.dot_dimension_numbers<[1], [0], [0], [1], [0, 0, 1, 1], [], []>} : vector<256x128xbf16>, vector<128x128xbf16>, vector<256x128xf32> -> vector<256x128xf32>
    %40 = arith.addf %34, %39 : vector<256x128xf32>
    %41 = vector.extract_strided_slice %15 {offsets = [2, 2, 0], sizes = [16, 16, 128], strides = [1, 1, 1]} : vector<20x20x128xbf16> to vector<16x16x128xbf16>
    %42 = vector.shape_cast %41 : vector<16x16x128xbf16> to vector<256x128xbf16>
    %c4 = arith.constant 4 : index
    %c0_21 = arith.constant 0 : index
    %c0_22 = arith.constant 0 : index
    %43 = vector.load %arg4[%c4, %c0_21, %c0_22] : memref<9x128x128xbf16, #tpu.memory_space<vmem>>, vector<1x128x128xbf16>
    %44 = vector.shape_cast %43 : vector<1x128x128xbf16> to vector<128x128xbf16>
    %cst_23 = arith.constant dense<0.000000e+00> : vector<256x128xf32>
    %45 = tpu.matmul %42, %44, %cst_23 {dimension_numbers = #tpu.dot_dimension_numbers<[1], [0], [0], [1], [0, 0, 1, 1], [], []>} : vector<256x128xbf16>, vector<128x128xbf16>, vector<256x128xf32> -> vector<256x128xf32>
    %46 = arith.addf %40, %45 : vector<256x128xf32>
    %47 = vector.extract_strided_slice %15 {offsets = [2, 4, 0], sizes = [16, 16, 128], strides = [1, 1, 1]} : vector<20x20x128xbf16> to vector<16x16x128xbf16>
    %48 = vector.shape_cast %47 : vector<16x16x128xbf16> to vector<256x128xbf16>
    %c5 = arith.constant 5 : index
    %c0_24 = arith.constant 0 : index
    %c0_25 = arith.constant 0 : index
    %49 = vector.load %arg4[%c5, %c0_24, %c0_25] : memref<9x128x128xbf16, #tpu.memory_space<vmem>>, vector<1x128x128xbf16>
    %50 = vector.shape_cast %49 : vector<1x128x128xbf16> to vector<128x128xbf16>
    %cst_26 = arith.constant dense<0.000000e+00> : vector<256x128xf32>
    %51 = tpu.matmul %48, %50, %cst_26 {dimension_numbers = #tpu.dot_dimension_numbers<[1], [0], [0], [1], [0, 0, 1, 1], [], []>} : vector<256x128xbf16>, vector<128x128xbf16>, vector<256x128xf32> -> vector<256x128xf32>
    %52 = arith.addf %46, %51 : vector<256x128xf32>
    %53 = vector.extract_strided_slice %15 {offsets = [4, 0, 0], sizes = [16, 16, 128], strides = [1, 1, 1]} : vector<20x20x128xbf16> to vector<16x16x128xbf16>
    %54 = vector.shape_cast %53 : vector<16x16x128xbf16> to vector<256x128xbf16>
    %c6 = arith.constant 6 : index
    %c0_27 = arith.constant 0 : index
    %c0_28 = arith.constant 0 : index
    %55 = vector.load %arg4[%c6, %c0_27, %c0_28] : memref<9x128x128xbf16, #tpu.memory_space<vmem>>, vector<1x128x128xbf16>
    %56 = vector.shape_cast %55 : vector<1x128x128xbf16> to vector<128x128xbf16>
    %cst_29 = arith.constant dense<0.000000e+00> : vector<256x128xf32>
    %57 = tpu.matmul %54, %56, %cst_29 {dimension_numbers = #tpu.dot_dimension_numbers<[1], [0], [0], [1], [0, 0, 1, 1], [], []>} : vector<256x128xbf16>, vector<128x128xbf16>, vector<256x128xf32> -> vector<256x128xf32>
    %58 = arith.addf %52, %57 : vector<256x128xf32>
    %59 = vector.extract_strided_slice %15 {offsets = [4, 2, 0], sizes = [16, 16, 128], strides = [1, 1, 1]} : vector<20x20x128xbf16> to vector<16x16x128xbf16>
    %60 = vector.shape_cast %59 : vector<16x16x128xbf16> to vector<256x128xbf16>
    %c7 = arith.constant 7 : index
    %c0_30 = arith.constant 0 : index
    %c0_31 = arith.constant 0 : index
    %61 = vector.load %arg4[%c7, %c0_30, %c0_31] : memref<9x128x128xbf16, #tpu.memory_space<vmem>>, vector<1x128x128xbf16>
    %62 = vector.shape_cast %61 : vector<1x128x128xbf16> to vector<128x128xbf16>
    %cst_32 = arith.constant dense<0.000000e+00> : vector<256x128xf32>
    %63 = tpu.matmul %60, %62, %cst_32 {dimension_numbers = #tpu.dot_dimension_numbers<[1], [0], [0], [1], [0, 0, 1, 1], [], []>} : vector<256x128xbf16>, vector<128x128xbf16>, vector<256x128xf32> -> vector<256x128xf32>
    %64 = arith.addf %58, %63 : vector<256x128xf32>
    %65 = vector.extract_strided_slice %15 {offsets = [4, 4, 0], sizes = [16, 16, 128], strides = [1, 1, 1]} : vector<20x20x128xbf16> to vector<16x16x128xbf16>
    %66 = vector.shape_cast %65 : vector<16x16x128xbf16> to vector<256x128xbf16>
    %c8 = arith.constant 8 : index
    %c0_33 = arith.constant 0 : index
    %c0_34 = arith.constant 0 : index
    %67 = vector.load %arg4[%c8, %c0_33, %c0_34] : memref<9x128x128xbf16, #tpu.memory_space<vmem>>, vector<1x128x128xbf16>
    %68 = vector.shape_cast %67 : vector<1x128x128xbf16> to vector<128x128xbf16>
    %cst_35 = arith.constant dense<0.000000e+00> : vector<256x128xf32>
    %69 = tpu.matmul %66, %68, %cst_35 {dimension_numbers = #tpu.dot_dimension_numbers<[1], [0], [0], [1], [0, 0, 1, 1], [], []>} : vector<256x128xbf16>, vector<128x128xbf16>, vector<256x128xf32> -> vector<256x128xf32>
    %70 = arith.addf %64, %69 : vector<256x128xf32>
    %71 = arith.truncf %70 : vector<256x128xf32> to vector<256x128xbf16>
    %c0_36 = arith.constant 0 : index
    %c0_37 = arith.constant 0 : index
    %72 = vector.load %arg5[%c0_36, %c0_37] : memref<256x128xbf16, #tpu.memory_space<vmem>>, vector<256x128xbf16>
    tpu.vector_store %arg5[%c0_36, %c0_37], %71 {strides = array<i32>} : memref<256x128xbf16, #tpu.memory_space<vmem>>, vector<256x128xbf16>,
    %cst_38 = arith.constant dense<0.000000e+00> : vector<128xf32>
    %73 = vector.multi_reduction <add>, %70, %cst_38 [0] : vector<256x128xf32> to vector<128xf32>
    %74 = vector.shape_cast %73 : vector<128xf32> to vector<1x128xf32>
    %75 = arith.mulf %70, %70 : vector<256x128xf32>
    %cst_39 = arith.constant dense<0.000000e+00> : vector<128xf32>
    %76 = vector.multi_reduction <add>, %75, %cst_39 [0] : vector<256x128xf32> to vector<128xf32>
    %77 = vector.shape_cast %76 : vector<128xf32> to vector<1x128xf32>
    %78 = tpu.concatenate %74, %77 in 0 : vector<1x128xf32>, vector<1x128xf32> -> vector<2x128xf32>
    %c0_40 = arith.constant 0 : index
    %c0_41 = arith.constant 0 : index
    %c0_42 = arith.constant 0 : index
    %79 = vector.load %arg6[%c0_40, %c0_41, %c0_42] : memref<1x2x128xf32, #tpu.memory_space<vmem>>, vector<1x2x128xf32>
    %80 = vector.shape_cast %79 : vector<1x2x128xf32> to vector<2x128xf32>
    %81 = vector.shape_cast %78 : vector<2x128xf32> to vector<1x2x128xf32>
    tpu.vector_store %arg6[%c0_40, %c0_41, %c0_42], %81 {strides = array<i32>} : memref<1x2x128xf32, #tpu.memory_space<vmem>>, vector<1x2x128xf32>,
    return
  }
  func.func @transform_0(%arg0: i32) -> (i32, i32) {
    %c0_i32 = arith.constant 0 : i32
    %c0_i32_0 = arith.constant 0 : i32
    return %arg0, %c0_i32 : i32, i32
  }
  func.func @transform_1(%arg0: i32) -> (i32, i32) {
    %c0_i32 = arith.constant 0 : i32
    %c0_i32_0 = arith.constant 0 : i32
    %c0_i32_1 = arith.constant 0 : i32
    return %c0_i32, %c0_i32_0 : i32, i32
  }
  func.func @transform_2(%arg0: i32) -> (i32, i32) {
    %c0_i32 = arith.constant 0 : i32
    %c0_i32_0 = arith.constant 0 : i32
    %c0_i32_1 = arith.constant 0 : i32
    return %c0_i32, %c0_i32_0 : i32, i32
  }
  func.func @transform_3(%arg0: i32) -> (i32, i32, i32) {
    %c0_i32 = arith.constant 0 : i32
    %c0_i32_0 = arith.constant 0 : i32
    %c0_i32_1 = arith.constant 0 : i32
    %c0_i32_2 = arith.constant 0 : i32
    return %c0_i32, %c0_i32_0, %c0_i32_1 : i32, i32, i32
  }
  func.func @transform_4(%arg0: i32) -> (i32, i32) {
    %c0_i32 = arith.constant 0 : i32
    %c0_i32_0 = arith.constant 0 : i32
    return %arg0, %c0_i32 : i32, i32
  }
  func.func @transform_5(%arg0: i32) -> (i32, i32, i32) {
    %c0_i32 = arith.constant 0 : i32
    %c0_i32_0 = arith.constant 0 : i32
    %c0_i32_1 = arith.constant 0 : i32
    return %arg0, %c0_i32, %c0_i32_0 : i32, i32, i32
  }
}

module attributes {stable_mosaic.version = 11 : i64} {
  func.func @_affine_relu_matmul_stats_kernel(%arg0: i32, %arg1: memref<512x128xbf16, #tpu.memory_space<vmem>>, %arg2: memref<1x128xf32, #tpu.memory_space<vmem>>, %arg3: memref<1x128xf32, #tpu.memory_space<vmem>>, %arg4: memref<128x128xbf16, #tpu.memory_space<vmem>>, %arg5: memref<512x128xbf16, #tpu.memory_space<vmem>>, %arg6: memref<1x2x128xf32, #tpu.memory_space<vmem>>) attributes {dimension_semantics = [#tpu.dimension_semantics<parallel>], iteration_bounds = array<i64: 3>, scalar_prefetch = 0 : i64, scratch_operands = 0 : i64, tpu.core_type = #tpu.core_type<tc>, window_params = [{transform_indices = @transform_0, window_bounds = array<i64: 512, 128>}, {pipeline_mode = #tpu.pipeline_mode<synchronous>, transform_indices = @transform_1, window_bounds = array<i64: 1, 128>}, {pipeline_mode = #tpu.pipeline_mode<synchronous>, transform_indices = @transform_2, window_bounds = array<i64: 1, 128>}, {pipeline_mode = #tpu.pipeline_mode<synchronous>, transform_indices = @transform_3, window_bounds = array<i64: 128, 128>}, {transform_indices = @transform_4, window_bounds = array<i64: 512, 128>}, {transform_indices = @transform_5, window_bounds = array<i64: 1, 2, 128>}]} {
    %c0 = arith.constant 0 : index
    %c0_0 = arith.constant 0 : index
    %0 = vector.load %arg1[%c0, %c0_0] : memref<512x128xbf16, #tpu.memory_space<vmem>>, vector<512x128xbf16>
    %1 = arith.extf %0 : vector<512x128xbf16> to vector<512x128xf32>
    %c0_1 = arith.constant 0 : index
    %c0_2 = arith.constant 0 : index
    %2 = vector.load %arg2[%c0_1, %c0_2] : memref<1x128xf32, #tpu.memory_space<vmem>>, vector<1x128xf32>
    %3 = vector.broadcast %2 : vector<1x128xf32> to vector<512x128xf32>
    %4 = arith.mulf %1, %3 : vector<512x128xf32>
    %c0_3 = arith.constant 0 : index
    %c0_4 = arith.constant 0 : index
    %5 = vector.load %arg3[%c0_3, %c0_4] : memref<1x128xf32, #tpu.memory_space<vmem>>, vector<1x128xf32>
    %6 = vector.broadcast %5 : vector<1x128xf32> to vector<512x128xf32>
    %7 = arith.addf %4, %6 : vector<512x128xf32>
    %cst = arith.constant 0.000000e+00 : f32
    %8 = vector.broadcast %cst : f32 to vector<512x128xf32>
    %9 = arith.maximumf %7, %8 : vector<512x128xf32>
    %10 = arith.truncf %9 : vector<512x128xf32> to vector<512x128xbf16>
    %c0_5 = arith.constant 0 : index
    %c0_6 = arith.constant 0 : index
    %11 = vector.load %arg4[%c0_5, %c0_6] : memref<128x128xbf16, #tpu.memory_space<vmem>>, vector<128x128xbf16>
    %cst_7 = arith.constant dense<0.000000e+00> : vector<512x128xf32>
    %12 = tpu.matmul %10, %11, %cst_7 {dimension_numbers = #tpu.dot_dimension_numbers<[1], [0], [0], [1], [0, 0, 1, 1], [], []>} : vector<512x128xbf16>, vector<128x128xbf16>, vector<512x128xf32> -> vector<512x128xf32>
    %13 = arith.truncf %12 : vector<512x128xf32> to vector<512x128xbf16>
    %c0_8 = arith.constant 0 : index
    %c0_9 = arith.constant 0 : index
    %14 = vector.load %arg5[%c0_8, %c0_9] : memref<512x128xbf16, #tpu.memory_space<vmem>>, vector<512x128xbf16>
    tpu.vector_store %arg5[%c0_8, %c0_9], %13 {strides = array<i32>} : memref<512x128xbf16, #tpu.memory_space<vmem>>, vector<512x128xbf16>,
    %15 = tpu.iota {dimensions = array<i32: 0>} : vector<512x128xi32>
    %c512_i32 = arith.constant 512 : i32
    %16 = arith.muli %arg0, %c512_i32 : i32
    %17 = vector.broadcast %16 : i32 to vector<512x128xi32>
    %18 = arith.addi %15, %17 : vector<512x128xi32>
    %c1280_i32 = arith.constant 1280 : i32
    %19 = vector.broadcast %c1280_i32 : i32 to vector<512x128xi32>
    %20 = arith.cmpi slt, %18, %19 : vector<512x128xi32>
    %cst_10 = arith.constant 0.000000e+00 : f32
    %21 = vector.broadcast %cst_10 : f32 to vector<512x128xf32>
    %22 = arith.select %20, %12, %21 : vector<512x128xi1>, vector<512x128xf32>
    %cst_11 = arith.constant dense<0.000000e+00> : vector<128xf32>
    %23 = vector.multi_reduction <add>, %22, %cst_11 [0] : vector<512x128xf32> to vector<128xf32>
    %24 = vector.shape_cast %23 : vector<128xf32> to vector<1x128xf32>
    %25 = arith.mulf %22, %22 : vector<512x128xf32>
    %cst_12 = arith.constant dense<0.000000e+00> : vector<128xf32>
    %26 = vector.multi_reduction <add>, %25, %cst_12 [0] : vector<512x128xf32> to vector<128xf32>
    %27 = vector.shape_cast %26 : vector<128xf32> to vector<1x128xf32>
    %28 = tpu.concatenate %24, %27 in 0 : vector<1x128xf32>, vector<1x128xf32> -> vector<2x128xf32>
    %c0_13 = arith.constant 0 : index
    %c0_14 = arith.constant 0 : index
    %c0_15 = arith.constant 0 : index
    %29 = vector.load %arg6[%c0_13, %c0_14, %c0_15] : memref<1x2x128xf32, #tpu.memory_space<vmem>>, vector<1x2x128xf32>
    %30 = vector.shape_cast %29 : vector<1x2x128xf32> to vector<2x128xf32>
    %31 = vector.shape_cast %28 : vector<2x128xf32> to vector<1x2x128xf32>
    tpu.vector_store %arg6[%c0_13, %c0_14, %c0_15], %31 {strides = array<i32>} : memref<1x2x128xf32, #tpu.memory_space<vmem>>, vector<1x2x128xf32>,
    return
  }
  func.func @transform_0(%arg0: i32) -> (i32, i32) {
    %c0_i32 = arith.constant 0 : i32
    %c0_i32_0 = arith.constant 0 : i32
    return %arg0, %c0_i32 : i32, i32
  }
  func.func @transform_1(%arg0: i32) -> (i32, i32) {
    %c0_i32 = arith.constant 0 : i32
    %c0_i32_0 = arith.constant 0 : i32
    %c0_i32_1 = arith.constant 0 : i32
    return %c0_i32, %c0_i32_0 : i32, i32
  }
  func.func @transform_2(%arg0: i32) -> (i32, i32) {
    %c0_i32 = arith.constant 0 : i32
    %c0_i32_0 = arith.constant 0 : i32
    %c0_i32_1 = arith.constant 0 : i32
    return %c0_i32, %c0_i32_0 : i32, i32
  }
  func.func @transform_3(%arg0: i32) -> (i32, i32) {
    %c0_i32 = arith.constant 0 : i32
    %c0_i32_0 = arith.constant 0 : i32
    %c0_i32_1 = arith.constant 0 : i32
    return %c0_i32, %c0_i32_0 : i32, i32
  }
  func.func @transform_4(%arg0: i32) -> (i32, i32) {
    %c0_i32 = arith.constant 0 : i32
    %c0_i32_0 = arith.constant 0 : i32
    return %arg0, %c0_i32 : i32, i32
  }
  func.func @transform_5(%arg0: i32) -> (i32, i32, i32) {
    %c0_i32 = arith.constant 0 : i32
    %c0_i32_0 = arith.constant 0 : i32
    %c0_i32_1 = arith.constant 0 : i32
    return %arg0, %c0_i32, %c0_i32_0 : i32, i32, i32
  }
}

module attributes {stable_mosaic.version = 11 : i64} {
  func.func @_bn_residual_kernel(%arg0: i32, %arg1: memref<512x128xbf16, #tpu.memory_space<vmem>>, %arg2: memref<512x128xf32, #tpu.memory_space<vmem>>, %arg3: memref<1x128xf32, #tpu.memory_space<vmem>>, %arg4: memref<1x128xf32, #tpu.memory_space<vmem>>, %arg5: memref<512x128xf32, #tpu.memory_space<vmem>>) attributes {dimension_semantics = [#tpu.dimension_semantics<parallel>], iteration_bounds = array<i64: 3>, scalar_prefetch = 0 : i64, scratch_operands = 0 : i64, tpu.core_type = #tpu.core_type<tc>, window_params = [{transform_indices = @transform_0, window_bounds = array<i64: 512, 128>}, {transform_indices = @transform_1, window_bounds = array<i64: 512, 128>}, {pipeline_mode = #tpu.pipeline_mode<synchronous>, transform_indices = @transform_2, window_bounds = array<i64: 1, 128>}, {pipeline_mode = #tpu.pipeline_mode<synchronous>, transform_indices = @transform_3, window_bounds = array<i64: 1, 128>}, {transform_indices = @transform_4, window_bounds = array<i64: 512, 128>}]} {
    %c0 = arith.constant 0 : index
    %c0_0 = arith.constant 0 : index
    %0 = vector.load %arg1[%c0, %c0_0] : memref<512x128xbf16, #tpu.memory_space<vmem>>, vector<512x128xbf16>
    %1 = arith.extf %0 : vector<512x128xbf16> to vector<512x128xf32>
    %c0_1 = arith.constant 0 : index
    %c0_2 = arith.constant 0 : index
    %2 = vector.load %arg3[%c0_1, %c0_2] : memref<1x128xf32, #tpu.memory_space<vmem>>, vector<1x128xf32>
    %3 = vector.broadcast %2 : vector<1x128xf32> to vector<512x128xf32>
    %4 = arith.mulf %1, %3 : vector<512x128xf32>
    %c0_3 = arith.constant 0 : index
    %c0_4 = arith.constant 0 : index
    %5 = vector.load %arg4[%c0_3, %c0_4] : memref<1x128xf32, #tpu.memory_space<vmem>>, vector<1x128xf32>
    %6 = vector.broadcast %5 : vector<1x128xf32> to vector<512x128xf32>
    %7 = arith.addf %4, %6 : vector<512x128xf32>
    %c0_5 = arith.constant 0 : index
    %c0_6 = arith.constant 0 : index
    %8 = vector.load %arg2[%c0_5, %c0_6] : memref<512x128xf32, #tpu.memory_space<vmem>>, vector<512x128xf32>
    %9 = arith.addf %7, %8 : vector<512x128xf32>
    %c0_7 = arith.constant 0 : index
    %c0_8 = arith.constant 0 : index
    %10 = vector.load %arg5[%c0_7, %c0_8] : memref<512x128xf32, #tpu.memory_space<vmem>>, vector<512x128xf32>
    tpu.vector_store %arg5[%c0_7, %c0_8], %9 {strides = array<i32>} : memref<512x128xf32, #tpu.memory_space<vmem>>, vector<512x128xf32>,
    return
  }
  func.func @transform_0(%arg0: i32) -> (i32, i32) {
    %c0_i32 = arith.constant 0 : i32
    %c0_i32_0 = arith.constant 0 : i32
    return %arg0, %c0_i32 : i32, i32
  }
  func.func @transform_1(%arg0: i32) -> (i32, i32) {
    %c0_i32 = arith.constant 0 : i32
    %c0_i32_0 = arith.constant 0 : i32
    return %arg0, %c0_i32 : i32, i32
  }
  func.func @transform_2(%arg0: i32) -> (i32, i32) {
    %c0_i32 = arith.constant 0 : i32
    %c0_i32_0 = arith.constant 0 : i32
    %c0_i32_1 = arith.constant 0 : i32
    return %c0_i32, %c0_i32_0 : i32, i32
  }
  func.func @transform_3(%arg0: i32) -> (i32, i32) {
    %c0_i32 = arith.constant 0 : i32
    %c0_i32_0 = arith.constant 0 : i32
    %c0_i32_1 = arith.constant 0 : i32
    return %c0_i32, %c0_i32_0 : i32, i32
  }
  func.func @transform_4(%arg0: i32) -> (i32, i32) {
    %c0_i32 = arith.constant 0 : i32
    %c0_i32_0 = arith.constant 0 : i32
    return %arg0, %c0_i32 : i32, i32
  }
}

</mosaic_0001>

<bundles_post_ra>
// kernel: bottleneck_forward.4
= control target key start
LH: loop header
LB: loop body
LE: loop exit
PB: predicated region body
PF: predicated region fallthrough
CT: control target
= control target key end

     0   :  { %s1766_s12 = smov 0   ;;  %s2111_s0 = inlined_call_operand.vmem [shape: f32[1536,128], index: 0, kind: input, shape index: {}]   ;;  %s2112_s1 = inlined_call_operand.vmem [shape: bf16[128,128], index: 1, kind: input, shape index: {}]   ;;  %s2113_s2 = inlined_call_operand.vmem [shape: bf16[1536,128], index: 2, kind: output, shape index: {0}]   ;;  %s2114_s3 = inlined_call_operand.vmem [shape: f32[3,2,128], index: 3, kind: output, shape index: {1}]  }
   0x1 LB: > { %s1772_s13 = sadd.s32 4294967295, %s1744_s12   ;;  %p1251_p0 = scmp.ge.s32.totalorder %s1744_s12, 1  ;;  %s1744_s12 = sphi %s1766_s12, %s14_s12  }
   0x2   : > { %p141_p1 = scmp.lt.s32.totalorder %s1744_s12, 4 }
   0x4   : > { %p142_p2 = pnand %p1251_p0, %p141_p1 }
   0x5   : > { %s1252_s16 = sshll.u32 (!%p142_p2), %s1772_s13, 6  ;;  %p181_p4 = scmp.lt.s32.totalorder (!%p142_p2), %s1772_s13, 2 }
   0x6   : > { %145 = sbr.rel (%p142_p2) target bundleno = 385 (0x181), region = 28  ;;  %p170_p3 = scmp.lt.s32.totalorder (!%p142_p2), %s1252_s16, 191 }
   0xb   : > { %v1730_v0 = vld [vmem:[%s2112_s1 + $0x38] sm:$0xff]   ;;  %v1731_v1 = vld [vmem:[%s2112_s1 + $0x30] sm:$0xff]   ;;  %s2116_s16 = smov (!%p170_p3, %s1252_s16), 191  ;;  %v1732_v2 = vld [vmem:[%s2112_s1 + $0x28] sm:$0xff]   ;;  %s2118_s13 = smov (!%p181_p4, %s1772_s13), 2  ;;  %vm1157_vm0 = vcmask 1040384  }
   0xc   : > { %1626 = vmatprep.subr.bf16.mxu0 %v1730_v0  ;;  %1706 = vmatprep.subr.bf16.mxu1 %v1730_v0  ;;  %s1253_s21 = sshll.u32 %s2116_s16, 3  ;;  %v1733_v3 = vld [vmem:[%s2112_s1 + $0x20] sm:$0xff]   ;;  %v1734_v7 = vld [vmem:[%s2112_s1 + $0x18] sm:$0xff]   ;;  %v1735_v8 = vld [vmem:[%s2112_s1 + $0x10] sm:$0xff]   ;;  %s1255_s8 = sshll.u32 %s2116_s16, 2 }
   0xd   : > { %1627 = vmatpush3.bf16.msra.mxu0 %v1730_v0  ;;  %1714 = vmatpush3.bf16.msra.mxu1 %v1730_v0  ;;  %s1792_s24 = scalar_lea.vmem %s2111_s0, %s1253_s21  ;;  %v1736_v11 = vld [vmem:[%s2112_s1 + $0x8] sm:$0xff]   ;;  %v1737_v13 = vld [vmem:[%s2112_s1] sm:$0xff]   ;;  %s1881_s11 = scalar_lea.vmem %s2113_s2, %s1255_s8 }
   0xe   : > { %1628 = vmatprep.subr.bf16.mxu0 %v1731_v1  ;;  %1707 = vmatprep.subr.bf16.mxu1 %v1731_v1  ;;  %v186_v4 = vld [vmem:[%s1792_s24] sm:$0xff]  ;;  %v187_v5 = vld [vmem:[%s1792_s24 + $0x8] sm:$0xff]  ;;  %v188_v14 = vld [vmem:[%s1792_s24 + $0x10] sm:$0xff]  ;;  %s1256_s14 = sshll.u32 %s2118_s13, 1 }
   0xf   : > { %v250_v6 = vpack.c.bf16 %v187_v5, %v186_v4  ;;  %v218_v9 = vld [vmem:[%s1792_s24 + $0x100] sm:$0xff]  ;;  %v219_v10 = vld [vmem:[%s1792_s24 + $0x108] sm:$0xff]  ;;  %v189_v15 = vld [vmem:[%s1792_s24 + $0x18] sm:$0xff]  ;;  %s184_s17 = scalar_lea.vmem %s2114_s3, %s1256_s14 }
  0x10   : > { %v266_v12 = vpack.c.bf16 %v219_v10, %v218_v9  ;;  %v190_v16 = vld [vmem:[%s1792_s24 + $0x20] sm:$0xff]  ;;  %v191_v17 = vld [vmem:[%s1792_s24 + $0x28] sm:$0xff]  ;;  %v220_v18 = vld [vmem:[%s1792_s24 + $0x110] sm:$0xff]  ;;  %v251_v22 = vpack.c.bf16 %v189_v15, %v188_v14 }
  0x11   : > { %1629 = vmatpush3.bf16.msra.mxu0 %v1731_v1  ;;  %1715 = vmatpush3.bf16.msra.mxu1 %v1731_v1  ;;  %v221_v19 = vld [vmem:[%s1792_s24 + $0x118] sm:$0xff]  ;;  %v222_v20 = vld [vmem:[%s1792_s24 + $0x120] sm:$0xff]  ;;  %v223_v21 = vld [vmem:[%s1792_s24 + $0x128] sm:$0xff]  ;;  %v252_v23 = vpack.c.bf16 %v191_v17, %v190_v16 }
  0x12   : > { %1630 = vmatprep.subr.bf16.mxu0 %v1732_v2  ;;  %1708 = vmatprep.subr.bf16.mxu1 %v1732_v2  ;;  %v267_v24 = vpack.c.bf16 %v221_v19, %v220_v18  ;;  %v268_v25 = vpack.c.bf16 %v223_v21, %v222_v20  ;;  %v192_v26 = vld [vmem:[%s1792_s24 + $0x30] sm:$0xff]  ;;  %v193_v27 = vld [vmem:[%s1792_s24 + $0x38] sm:$0xff]  ;;  %v194_v28 = vld [vmem:[%s1792_s24 + $0x40] sm:$0xff] }
  0x13   : > { %1642 = vmatprep.mubr.bf16.mxu0 %v250_v6  ;;  %1674 = vmatprep.mubr.bf16.mxu1 %v266_v12  ;;  %v195_v29 = vld [vmem:[%s1792_s24 + $0x48] sm:$0xff]  ;;  %v224_v30 = vld [vmem:[%s1792_s24 + $0x130] sm:$0xff]  ;;  %v225_v31 = vld [vmem:[%s1792_s24 + $0x138] sm:$0xff]  ;;  %v253_v34 = vpack.c.bf16 %v193_v27, %v192_v26 }
  0x14   : > { %v226_v32 = vld [vmem:[%s1792_s24 + $0x140] sm:$0xff]  ;;  %v227_v33 = vld [vmem:[%s1792_s24 + $0x148] sm:$0xff]  ;;  %v254_v35 = vpack.c.bf16 %v195_v29, %v194_v28  ;;  %v269_v36 = vpack.c.bf16 %v225_v31, %v224_v30  ;;  %v196_v38 = vld [vmem:[%s1792_s24 + $0x50] sm:$0xff] }
  0x15   : > { %1631 = vmatpush3.bf16.msra.mxu0 %v1732_v2  ;;  %1716 = vmatpush3.bf16.msra.mxu1 %v1732_v2  ;;  %v270_v37 = vpack.c.bf16 %v227_v33, %v226_v32  ;;  %v197_v39 = vld [vmem:[%s1792_s24 + $0x58] sm:$0xff]  ;;  %v198_v40 = vld [vmem:[%s1792_s24 + $0x60] sm:$0xff]  ;;  %v199_v41 = vld [vmem:[%s1792_s24 + $0x68] sm:$0xff] }
  0x16   : > { %1632 = vmatprep.subr.bf16.mxu0 %v1733_v3  ;;  %1709 = vmatprep.subr.bf16.mxu1 %v1733_v3  ;;  %v228_v42 = vld [vmem:[%s1792_s24 + $0x150] sm:$0xff]  ;;  %v229_v43 = vld [vmem:[%s1792_s24 + $0x158] sm:$0xff]  ;;  %v230_v44 = vld [vmem:[%s1792_s24 + $0x160] sm:$0xff]  ;;  %v255_v46 = vpack.c.bf16 %v197_v39, %v196_v38  ;;  %v256_v47 = vpack.c.bf16 %v199_v41, %v198_v40 }
  0x17   : > { %v231_v45 = vld [vmem:[%s1792_s24 + $0x168] sm:$0xff]  ;;  %v271_v48 = vpack.c.bf16 %v229_v43, %v228_v42  ;;  %v200_v50 = vld [vmem:[%s1792_s24 + $0x70] sm:$0xff]  ;;  %v201_v51 = vld [vmem:[%s1792_s24 + $0x78] sm:$0xff] }
  0x18   : > { %v272_v49 = vpack.c.bf16 %v231_v45, %v230_v44  ;;  %v202_v52 = vld [vmem:[%s1792_s24 + $0x80] sm:$0xff]  ;;  %v203_v53 = vld [vmem:[%s1792_s24 + $0x88] sm:$0xff]  ;;  %v232_v54 = vld [vmem:[%s1792_s24 + $0x170] sm:$0xff]  ;;  %v257_v58 = vpack.c.bf16 %v201_v51, %v200_v50 }
  0x19   : > { %1633 = vmatpush3.bf16.msra.mxu0 %v1733_v3  ;;  %1717 = vmatpush3.bf16.msra.mxu1 %v1733_v3  ;;  %v233_v55 = vld [vmem:[%s1792_s24 + $0x178] sm:$0xff]  ;;  %v234_v56 = vld [vmem:[%s1792_s24 + $0x180] sm:$0xff]  ;;  %v235_v57 = vld [vmem:[%s1792_s24 + $0x188] sm:$0xff]  ;;  %v258_v59 = vpack.c.bf16 %v203_v53, %v202_v52 }
  0x1a   : > { %1634 = vmatprep.subr.bf16.mxu0 %v1734_v7  ;;  %1710 = vmatprep.subr.bf16.mxu1 %v1734_v7  ;;  %v273_v60 = vpack.c.bf16 %v233_v55, %v232_v54  ;;  %v274_v61 = vpack.c.bf16 %v235_v57, %v234_v56  ;;  %v204_v62 = vld [vmem:[%s1792_s24 + $0x90] sm:$0xff]  ;;  %v205_v63 = vld [vmem:[%s1792_s24 + $0x98] sm:$0xff]  ;;  %v206_v0 = vld [vmem:[%s1792_s24 + $0xa0] sm:$0xff] }
  0x1b   : > { %v207_v1 = vld [vmem:[%s1792_s24 + $0xa8] sm:$0xff]  ;;  %v236_v2 = vld [vmem:[%s1792_s24 + $0x190] sm:$0xff]  ;;  %v237_v3 = vld [vmem:[%s1792_s24 + $0x198] sm:$0xff]  ;;  %v259_v6 = vpack.c.bf16 %v205_v63, %v204_v62 }
  0x1c   : > { %v238_v4 = vld [vmem:[%s1792_s24 + $0x1a0] sm:$0xff]  ;;  %v239_v5 = vld [vmem:[%s1792_s24 + $0x1a8] sm:$0xff]  ;;  %v208_v10 = vld [vmem:[%s1792_s24 + $0xb0] sm:$0xff] }
  0x1d   : > { %1635 = vmatpush3.bf16.msra.mxu0 %v1734_v7  ;;  %1718 = vmatpush3.bf16.msra.mxu1 %v1734_v7  ;;  %v260_v7 = vpack.c.bf16 %v207_v1, %v206_v0  ;;  %v276_v9 = vpack.c.bf16 %v239_v5, %v238_v4  ;;  %v210_v12 = vld [vmem:[%s1792_s24 + $0xc0] sm:$0xff]  ;;  %v240_v14 = vld [vmem:[%s1792_s24 + $0x1b0] sm:$0xff]  ;;  %v241_v15 = vld [vmem:[%s1792_s24 + $0x1b8] sm:$0xff] }
  0x1e   : > { %1636 = vmatprep.subr.bf16.mxu0 %v1735_v8  ;;  %1711 = vmatprep.subr.bf16.mxu1 %v1735_v8  ;;  %v242_v16 = vld [vmem:[%s1792_s24 + $0x1c0] sm:$0xff]  ;;  %v243_v17 = vld [vmem:[%s1792_s24 + $0x1c8] sm:$0xff]  ;;  %v277_v20 = vpack.c.bf16 %v241_v15, %v240_v14  ;;  %v244_v26 = vld [vmem:[%s1792_s24 + $0x1d0] sm:$0xff] }
  0x1f   : > { %v278_v21 = vpack.c.bf16 %v243_v17, %v242_v16  ;;  %v245_v27 = vld [vmem:[%s1792_s24 + $0x1d8] sm:$0xff]  ;;  %v246_v28 = vld [vmem:[%s1792_s24 + $0x1e0] sm:$0xff]  ;;  %v247_v29 = vld [vmem:[%s1792_s24 + $0x1e8] sm:$0xff] }
  0x20   : > { %v279_v32 = vpack.c.bf16 %v245_v27, %v244_v26  ;;  %v280_v33 = vpack.c.bf16 %v247_v29, %v246_v28 }
  0x21   : > { %1637 = vmatpush3.bf16.msra.mxu0 %v1735_v8  ;;  %1719 = vmatpush3.bf16.msra.mxu1 %v1735_v8  ;;  %v275_v8 = vpack.c.bf16 %v237_v3, %v236_v2 }
  0x22   : > { %1638 = vmatprep.subr.bf16.mxu0 %v1736_v11  ;;  %1712 = vmatprep.subr.bf16.mxu1 %v1736_v11 }
  0x25   : > { %1639 = vmatpush3.bf16.msra.mxu0 %v1736_v11  ;;  %1720 = vmatpush3.bf16.msra.mxu1 %v1736_v11  ;;  %v209_v11 = vld [vmem:[%s1792_s24 + $0xb8] sm:$0xff] }
  0x26   : > { %1640 = vmatprep.subr.bf16.mxu0 %v1737_v13  ;;  %1713 = vmatprep.subr.bf16.mxu1 %v1737_v13  ;;  %v261_v18 = vpack.c.bf16 %v209_v11, %v208_v10 }
  0x29   : > { %1641 = vmatpush3.bf16.msra.mxu0 %v1737_v13  ;;  %1721 = vmatpush3.bf16.msra.mxu1 %v1737_v13  ;;  %v211_v13 = vld [vmem:[%s1792_s24 + $0xc8] sm:$0xff] }
  0x2a   : > { %v262_v19 = vpack.c.bf16 %v211_v13, %v210_v12 }
  0x2c   : > { %1643 = vmatmul.mubr.bf16.vlgmr.msra.gmra.mxu0 %v251_v22  ;;  %1675 = vmatmul.mubr.bf16.vlgmr.msra.gmra.mxu1 %v267_v24  ;;  %v212_v22 = vld [vmem:[%s1792_s24 + $0xd0] sm:$0xff]  ;;  %v214_v24 = vld [vmem:[%s1792_s24 + $0xe0] sm:$0xff] }
  0x2d   : > { %1646 = vmatprep.mubr.bf16.mxu0 %v252_v23  ;;  %1678 = vmatprep.mubr.bf16.mxu1 %v268_v25  ;;  %v213_v23 = vld [vmem:[%s1792_s24 + $0xd8] sm:$0xff]  ;;  %v215_v25 = vld [vmem:[%s1792_s24 + $0xe8] sm:$0xff] }
  0x2e   : > { %v263_v30 = vpack.c.bf16 %v213_v23, %v212_v22  ;;  %v264_v31 = vpack.c.bf16 %v215_v25, %v214_v24 }
  0x34   : > { %1647 = vmatmul.mubr.bf16.gmra.mxu0 %v253_v34  ;;  %1679 = vmatmul.mubr.bf16.gmra.mxu1 %v269_v36  ;;  %v216_v34 = vld [vmem:[%s1792_s24 + $0xf0] sm:$0xff] }
  0x35   : > { %1650 = vmatprep.mubr.bf16.mxu0 %v254_v35  ;;  %1682 = vmatprep.mubr.bf16.mxu1 %v270_v37  ;;  %v217_v35 = vld [vmem:[%s1792_s24 + $0xf8] sm:$0xff]  ;;  %v248_v36 = vld [vmem:[%s1792_s24 + $0x1f0] sm:$0xff] }
  0x36   : > { %v249_v37 = vld [vmem:[%s1792_s24 + $0x1f8] sm:$0xff]  ;;  %v265_v38 = vpack.c.bf16 %v217_v35, %v216_v34 }
  0x37   : > { %v281_v39 = vpack.c.bf16 %v249_v37, %v248_v36 }
  0x3c   : > { %1651 = vmatmul.mubr.bf16.gmra.mxu0 %v255_v46  ;;  %1683 = vmatmul.mubr.bf16.gmra.mxu1 %v271_v48 }
  0x3d   : > { %1654 = vmatprep.mubr.bf16.mxu0 %v256_v47  ;;  %1686 = vmatprep.mubr.bf16.mxu1 %v272_v49 }
  0x44   : > { %1655 = vmatmul.mubr.bf16.gmra.mxu0 %v257_v58  ;;  %1687 = vmatmul.mubr.bf16.gmra.mxu1 %v273_v60 }
  0x45   : > { %1658 = vmatprep.mubr.bf16.mxu0 %v258_v59  ;;  %1690 = vmatprep.mubr.bf16.mxu1 %v274_v61 }
  0x4c   : > { %1659 = vmatmul.mubr.bf16.gmra.mxu0 %v259_v6  ;;  %1691 = vmatmul.mubr.bf16.gmra.mxu1 %v275_v8 }
  0x4d   : > { %1662 = vmatprep.mubr.bf16.mxu0 %v260_v7  ;;  %1694 = vmatprep.mubr.bf16.mxu1 %v276_v9 }
  0x54   : > { %1663 = vmatmul.mubr.bf16.gmra.mxu0 %v261_v18  ;;  %1695 = vmatmul.mubr.bf16.gmra.mxu1 %v277_v20 }
  0x55   : > { %1666 = vmatprep.mubr.bf16.mxu0 %v262_v19  ;;  %1698 = vmatprep.mubr.bf16.mxu1 %v278_v21 }
  0x5c   : > { %1667 = vmatmul.mubr.bf16.gmra.mxu0 %v263_v30  ;;  %1699 = vmatmul.mubr.bf16.gmra.mxu1 %v279_v32 }
  0x5d   : > { %1670 = vmatprep.mubr.bf16.mxu0 %v264_v31  ;;  %1702 = vmatprep.mubr.bf16.mxu1 %v280_v33 }
  0x64   : > { %1671 = vmatmul.mubr.bf16.gmra.mxu0 %v265_v38  ;;  %1703 = vmatmul.mubr.bf16.gmra.mxu1 %v281_v39 }
  0xec   : > { %v1644_v40 = vpop.f32.mrf.mxu0  ;;  %v1874_v41 = vpop.f32.mrf.mxu1 }
  0xed   : > { %v1026_v56 = vmul.f32 %v1644_v40, %v1644_v40 }
  0xee   : > { %v380_v42 = vpop.f32.mrf.mxu0  ;;  %v1876_v43 = vpop.f32.mrf.mxu1 }
  0xef   : > { %v1024_v49 = vmul.f32 %v380_v42, %v380_v42 }
  0xf0   : > { %v1645_v44 = vpop.f32.mrf.mxu0  ;;  %v1883_v46 = vpop.f32.mrf.mxu1 }
  0xf1   : > { %v1403_v45 = vpack.c.bf16 %v1645_v44, %v1644_v40  ;;  %v1483_v48 = vpack.c.bf16 %v1883_v46, %v1874_v41  ;;  %v1027_v61 = vmul.f32 %v1645_v44, %v1645_v44 }
  0xf2   : > { %v383_v47 = vpop.f32.mrf.mxu0  ;;  %v1888_v53 = vpop.f32.mrf.mxu1 }
  0xf3   : > { %1555 = vst [vmem:[%s1881_s11 + $0x8] sm:$0xff] %v1403_v45   ;;  %v1398_v50 = vpack.c.bf16 %v383_v47, %v380_v42  ;;  %v955_v51 = vadd.f32 %v383_v47, %v380_v42  ;;  %v1025_v52 = vmul.f32 %v383_v47, %v383_v47  ;;  %1571 = vst [vmem:[%s1881_s11 + $0x88] sm:$0xff] %v1483_v48  }
  0xf4   : > { %v1648_v54 = vpop.f32.mrf.mxu0  ;;  %v1478_v55 = vpack.c.bf16 %v1888_v53, %v1876_v43  ;;  %v1894_v59 = vpop.f32.mrf.mxu1 }
  0xf5   : > { %1399 = vst [vmem:[%s1881_s11] sm:$0xff] %v1398_v50   ;;  %v956_v57 = vadd.f32 %v1644_v40, %v955_v51  ;;  %v1088_v58 = vadd.f32 %v1025_v52, %v1024_v49  ;;  %v1030_v16 = vmul.f32 %v1648_v54, %v1648_v54 }
  0xf6   : > { %v396_v60 = vpop.f32.mrf.mxu0  ;;  %1570 = vst [vmem:[%s1881_s11 + $0x80] sm:$0xff] %v1478_v55   ;;  %v1897_v0 = vpop.f32.mrf.mxu1 }
  0xf7   : > { %v1089_v62 = vadd.f32 %v1088_v58, %v1026_v56  ;;  %v957_v63 = vadd.f32 %v1645_v44, %v956_v57  ;;  %v1028_v3 = vmul.f32 %v396_v60, %v396_v60 }
  0xf8   : > { %v1649_v1 = vpop.f32.mrf.mxu0  ;;  %v1899_v6 = vpop.f32.mrf.mxu1 }
  0xf9   : > { %v958_v2 = vadd.f32 %v957_v63, %v396_v60  ;;  %v1090_v4 = vadd.f32 %v1089_v62, %v1027_v61  ;;  %v1413_v5 = vpack.c.bf16 %v1649_v1, %v1648_v54  ;;  %v1493_v8 = vpack.c.bf16 %v1899_v6, %v1894_v59 }
  0xfa   : > { %v399_v7 = vpop.f32.mrf.mxu0  ;;  %v1904_v13 = vpop.f32.mrf.mxu1  ;;  %v1031_v21 = vmul.f32 %v1649_v1, %v1649_v1 }
  0xfb   : > { %v1091_v9 = vadd.f32 %v1090_v4, %v1028_v3  ;;  %1557 = vst [vmem:[%s1881_s11 + $0x18] sm:$0xff] %v1413_v5   ;;  %v1408_v10 = vpack.c.bf16 %v399_v7, %v396_v60  ;;  %v959_v11 = vadd.f32 %v958_v2, %v399_v7  ;;  %v1029_v12 = vmul.f32 %v399_v7, %v399_v7 }
  0xfc   : > { %v1652_v14 = vpop.f32.mrf.mxu0  ;;  %1573 = vst [vmem:[%s1881_s11 + $0x98] sm:$0xff] %v1493_v8   ;;  %v1488_v15 = vpack.c.bf16 %v1904_v13, %v1897_v0  ;;  %v1910_v19 = vpop.f32.mrf.mxu1 }
  0xfd   : > { %1556 = vst [vmem:[%s1881_s11 + $0x10] sm:$0xff] %v1408_v10   ;;  %v960_v17 = vadd.f32 %v1648_v54, %v959_v11  ;;  %v1092_v18 = vadd.f32 %v1091_v9, %v1029_v12  ;;  %v1034_v40 = vmul.f32 %v1652_v14, %v1652_v14 }
  0xfe   : > { %v412_v20 = vpop.f32.mrf.mxu0  ;;  %1572 = vst [vmem:[%s1881_s11 + $0x90] sm:$0xff] %v1488_v15   ;;  %v1913_v24 = vpop.f32.mrf.mxu1 }
  0xff   : > { %v1093_v22 = vadd.f32 %v1092_v18, %v1030_v16  ;;  %v961_v23 = vadd.f32 %v1649_v1, %v960_v17  ;;  %v1032_v27 = vmul.f32 %v412_v20, %v412_v20 }
 0x100   : > { %v1653_v25 = vpop.f32.mrf.mxu0  ;;  %v1915_v30 = vpop.f32.mrf.mxu1 }
 0x101   : > { %v962_v26 = vadd.f32 %v961_v23, %v412_v20  ;;  %v1094_v28 = vadd.f32 %v1093_v22, %v1031_v21  ;;  %v1423_v29 = vpack.c.bf16 %v1653_v25, %v1652_v14  ;;  %v1503_v32 = vpack.c.bf16 %v1915_v30, %v1910_v19 }
 0x102   : > { %v415_v31 = vpop.f32.mrf.mxu0  ;;  %v1920_v37 = vpop.f32.mrf.mxu1  ;;  %v1035_v48 = vmul.f32 %v1653_v25, %v1653_v25 }
 0x103   : > { %v1095_v33 = vadd.f32 %v1094_v28, %v1032_v27  ;;  %1559 = vst [vmem:[%s1881_s11 + $0x28] sm:$0xff] %v1423_v29   ;;  %v1418_v34 = vpack.c.bf16 %v415_v31, %v412_v20  ;;  %v963_v35 = vadd.f32 %v962_v26, %v415_v31  ;;  %v1033_v36 = vmul.f32 %v415_v31, %v415_v31 }
 0x104   : > { %v1656_v38 = vpop.f32.mrf.mxu0  ;;  %1575 = vst [vmem:[%s1881_s11 + $0xa8] sm:$0xff] %v1503_v32   ;;  %v1498_v39 = vpack.c.bf16 %v1920_v37, %v1913_v24  ;;  %v1926_v45 = vpop.f32.mrf.mxu1 }
 0x105   : > { %1558 = vst [vmem:[%s1881_s11 + $0x20] sm:$0xff] %v1418_v34   ;;  %v964_v42 = vadd.f32 %v1652_v14, %v963_v35  ;;  %v1096_v44 = vadd.f32 %v1095_v33, %v1033_v36  ;;  %v1038_v7 = vmul.f32 %v1656_v38, %v1656_v38 }
 0x106   : > { %v428_v47 = vpop.f32.mrf.mxu0  ;;  %1574 = vst [vmem:[%s1881_s11 + $0xa0] sm:$0xff] %v1498_v39   ;;  %v1929_v51 = vpop.f32.mrf.mxu1 }
 0x107   : > { %v1097_v49 = vadd.f32 %v1096_v44, %v1034_v40  ;;  %v965_v50 = vadd.f32 %v1653_v25, %v964_v42  ;;  %v1036_v55 = vmul.f32 %v428_v47, %v428_v47 }
 0x108   : > { %v1657_v52 = vpop.f32.mrf.mxu0  ;;  %v1931_v58 = vpop.f32.mrf.mxu1 }
 0x109   : > { %v966_v54 = vadd.f32 %v965_v50, %v428_v47  ;;  %v1098_v56 = vadd.f32 %v1097_v49, %v1035_v48  ;;  %v1433_v57 = vpack.c.bf16 %v1657_v52, %v1656_v38  ;;  %v1513_v61 = vpack.c.bf16 %v1931_v58, %v1926_v45 }
 0x10a   : > { %v431_v60 = vpop.f32.mrf.mxu0  ;;  %v1936_v3 = vpop.f32.mrf.mxu1  ;;  %v1039_v12 = vmul.f32 %v1657_v52, %v1657_v52 }
 0x10b   : > { %v1099_v62 = vadd.f32 %v1098_v56, %v1036_v55  ;;  %1561 = vst [vmem:[%s1881_s11 + $0x38] sm:$0xff] %v1433_v57   ;;  %v1428_v63 = vpack.c.bf16 %v431_v60, %v428_v47  ;;  %v967_v1 = vadd.f32 %v966_v54, %v431_v60  ;;  %v1037_v2 = vmul.f32 %v431_v60, %v431_v60 }
 0x10c   : > { %v1660_v4 = vpop.f32.mrf.mxu0  ;;  %1577 = vst [vmem:[%s1881_s11 + $0xb8] sm:$0xff] %v1513_v61   ;;  %v1508_v5 = vpack.c.bf16 %v1936_v3, %v1929_v51  ;;  %v1942_v10 = vpop.f32.mrf.mxu1 }
 0x10d   : > { %1560 = vst [vmem:[%s1881_s11 + $0x30] sm:$0xff] %v1428_v63   ;;  %v968_v8 = vadd.f32 %v1656_v38, %v967_v1  ;;  %v1100_v9 = vadd.f32 %v1099_v62, %v1037_v2  ;;  %v1042_v35 = vmul.f32 %v1660_v4, %v1660_v4 }
 0x10e   : > { %v444_v11 = vpop.f32.mrf.mxu0  ;;  %1576 = vst [vmem:[%s1881_s11 + $0xb0] sm:$0xff] %v1508_v5   ;;  %v1945_v16 = vpop.f32.mrf.mxu1 }
 0x10f   : > { %v1101_v14 = vadd.f32 %v1100_v9, %v1038_v7  ;;  %v969_v15 = vadd.f32 %v1657_v52, %v968_v8  ;;  %v1040_v20 = vmul.f32 %v444_v11, %v444_v11 }
 0x110   : > { %v1661_v17 = vpop.f32.mrf.mxu0  ;;  %v1947_v23 = vpop.f32.mrf.mxu1 }
 0x111   : > { %v970_v18 = vadd.f32 %v969_v15, %v444_v11  ;;  %v1102_v21 = vadd.f32 %v1101_v14, %v1039_v12  ;;  %v1443_v22 = vpack.c.bf16 %v1661_v17, %v1660_v4  ;;  %v1523_v26 = vpack.c.bf16 %v1947_v23, %v1942_v10 }
 0x112   : > { %v447_v25 = vpop.f32.mrf.mxu0  ;;  %v1952_v32 = vpop.f32.mrf.mxu1  ;;  %v1043_v42 = vmul.f32 %v1661_v17, %v1661_v17 }
 0x113   : > { %v1103_v27 = vadd.f32 %v1102_v21, %v1040_v20  ;;  %1563 = vst [vmem:[%s1881_s11 + $0x48] sm:$0xff] %v1443_v22   ;;  %v1438_v28 = vpack.c.bf16 %v447_v25, %v444_v11  ;;  %v971_v29 = vadd.f32 %v970_v18, %v447_v25  ;;  %v1041_v31 = vmul.f32 %v447_v25, %v447_v25 }
 0x114   : > { %v1664_v33 = vpop.f32.mrf.mxu0  ;;  %1579 = vst [vmem:[%s1881_s11 + $0xc8] sm:$0xff] %v1523_v26   ;;  %v1518_v34 = vpack.c.bf16 %v1952_v32, %v1945_v16  ;;  %v1958_v39 = vpop.f32.mrf.mxu1 }
 0x115   : > { %1562 = vst [vmem:[%s1881_s11 + $0x40] sm:$0xff] %v1438_v28   ;;  %v972_v36 = vadd.f32 %v1660_v4, %v971_v29  ;;  %v1104_v38 = vadd.f32 %v1103_v27, %v1041_v31  ;;  %v1046_v7 = vmul.f32 %v1664_v33, %v1664_v33 }
 0x116   : > { %v460_v40 = vpop.f32.mrf.mxu0  ;;  %1578 = vst [vmem:[%s1881_s11 + $0xc0] sm:$0xff] %v1518_v34   ;;  %v1961_v48 = vpop.f32.mrf.mxu1 }
 0x117   : > { %v1105_v44 = vadd.f32 %v1104_v38, %v1042_v35  ;;  %v973_v47 = vadd.f32 %v1661_v17, %v972_v36  ;;  %v1044_v52 = vmul.f32 %v460_v40, %v460_v40 }
 0x118   : > { %v1665_v49 = vpop.f32.mrf.mxu0  ;;  %v1963_v56 = vpop.f32.mrf.mxu1 }
 0x119   : > { %v974_v50 = vadd.f32 %v973_v47, %v460_v40  ;;  %v1106_v54 = vadd.f32 %v1105_v44, %v1043_v42  ;;  %v1453_v55 = vpack.c.bf16 %v1665_v49, %v1664_v33  ;;  %v1533_v60 = vpack.c.bf16 %v1963_v56, %v1958_v39 }
 0x11a   : > { %v463_v57 = vpop.f32.mrf.mxu0  ;;  %v1968_v2 = vpop.f32.mrf.mxu1  ;;  %v1047_v14 = vmul.f32 %v1665_v49, %v1665_v49 }
 0x11b   : > { %v1107_v61 = vadd.f32 %v1106_v54, %v1044_v52  ;;  %1565 = vst [vmem:[%s1881_s11 + $0x58] sm:$0xff] %v1453_v55   ;;  %v1448_v62 = vpack.c.bf16 %v463_v57, %v460_v40  ;;  %v975_v63 = vadd.f32 %v974_v50, %v463_v57  ;;  %v1045_v1 = vmul.f32 %v463_v57, %v463_v57 }
 0x11c   : > { %v1668_v4 = vpop.f32.mrf.mxu0  ;;  %1581 = vst [vmem:[%s1881_s11 + $0xd8] sm:$0xff] %v1533_v60   ;;  %v1528_v5 = vpack.c.bf16 %v1968_v2, %v1961_v48  ;;  %v1974_v11 = vpop.f32.mrf.mxu1 }
 0x11d   : > { %1564 = vst [vmem:[%s1881_s11 + $0x50] sm:$0xff] %v1448_v62   ;;  %v976_v8 = vadd.f32 %v1664_v33, %v975_v63  ;;  %v1108_v9 = vadd.f32 %v1107_v61, %v1045_v1  ;;  %v1050_v42 = vmul.f32 %v1668_v4, %v1668_v4 }
 0x11e   : > { %v476_v12 = vpop.f32.mrf.mxu0  ;;  %1580 = vst [vmem:[%s1881_s11 + $0xd0] sm:$0xff] %v1528_v5   ;;  %v1977_v18 = vpop.f32.mrf.mxu1 }
 0x11f   : > { %v1109_v15 = vadd.f32 %v1108_v9, %v1046_v7  ;;  %v977_v17 = vadd.f32 %v1665_v49, %v976_v8  ;;  %v1048_v22 = vmul.f32 %v476_v12, %v476_v12 }
 0x120   : > { %v1669_v20 = vpop.f32.mrf.mxu0  ;;  %v1979_v27 = vpop.f32.mrf.mxu1 }
 0x121   : > { %v978_v21 = vadd.f32 %v977_v17, %v476_v12  ;;  %v1110_v25 = vadd.f32 %v1109_v15, %v1047_v14  ;;  %v1463_v26 = vpack.c.bf16 %v1669_v20, %v1668_v4  ;;  %v1543_v29 = vpack.c.bf16 %v1979_v27, %v1974_v11 }
 0x122   : > { %v479_v28 = vpop.f32.mrf.mxu0  ;;  %v1984_v36 = vpop.f32.mrf.mxu1  ;;  %v1051_v52 = vmul.f32 %v1669_v20, %v1669_v20 }
 0x123   : > { %v1111_v31 = vadd.f32 %v1110_v25, %v1048_v22  ;;  %1567 = vst [vmem:[%s1881_s11 + $0x68] sm:$0xff] %v1463_v26   ;;  %v1458_v33 = vpack.c.bf16 %v479_v28, %v476_v12  ;;  %v979_v34 = vadd.f32 %v978_v21, %v479_v28  ;;  %v1049_v35 = vmul.f32 %v479_v28, %v479_v28 }
 0x124   : > { %v1672_v38 = vpop.f32.mrf.mxu0  ;;  %1583 = vst [vmem:[%s1881_s11 + $0xe8] sm:$0xff] %v1543_v29   ;;  %v1538_v40 = vpack.c.bf16 %v1984_v36, %v1977_v18  ;;  %v1990_v49 = vpop.f32.mrf.mxu1  ;;  %v1056_v29 = vmul.f32 %v1876_v43, %v1876_v43 }
 0x125   : > { %1566 = vst [vmem:[%s1881_s11 + $0x60] sm:$0xff] %v1458_v33   ;;  %v980_v44 = vadd.f32 %v1668_v4, %v979_v34  ;;  %v1112_v47 = vadd.f32 %v1111_v31, %v1049_v35  ;;  %v1057_v35 = vmul.f32 %v1888_v53, %v1888_v53 }
 0x126   : > { %v492_v50 = vpop.f32.mrf.mxu0  ;;  %1582 = vst [vmem:[%s1881_s11 + $0xe0] sm:$0xff] %v1538_v40   ;;  %v1993_v57 = vpop.f32.mrf.mxu1 }
 0x127   : > { %v1113_v54 = vadd.f32 %v1112_v47, %v1050_v42  ;;  %v981_v55 = vadd.f32 %v1669_v20, %v980_v44  ;;  %v1052_v62 = vmul.f32 %v492_v50, %v492_v50  ;;  %v1054_v20 = vmul.f32 %v1672_v38, %v1672_v38 }
 0x128   : > { %v1673_v60 = vpop.f32.mrf.mxu0  ;;  %v1995_v4 = vpop.f32.mrf.mxu1  ;;  %v1059_v47 = vmul.f32 %v1883_v46, %v1883_v46 }
 0x129   : > { %v982_v61 = vadd.f32 %v981_v55, %v492_v50  ;;  %v1114_v63 = vadd.f32 %v1113_v54, %v1051_v52  ;;  %v1473_v1 = vpack.c.bf16 %v1673_v60, %v1672_v38  ;;  %v1553_v7 = vpack.c.bf16 %v1995_v4, %v1990_v49 }
 0x12a   : > { %v495_v5 = vpop.f32.mrf.mxu0  ;;  %v2000_v15 = vpop.f32.mrf.mxu1  ;;  %v1055_v25 = vmul.f32 %v1673_v60, %v1673_v60  ;;  %v1060_v54 = vmul.f32 %v1897_v0, %v1897_v0 }
 0x12b   : > { %v1115_v8 = vadd.f32 %v1114_v63, %v1052_v62  ;;  %1569 = vst [vmem:[%s1881_s11 + $0x78] sm:$0xff] %v1473_v1   ;;  %v1468_v9 = vpack.c.bf16 %v495_v5, %v492_v50  ;;  %v983_v12 = vadd.f32 %v982_v61, %v495_v5  ;;  %v1053_v14 = vmul.f32 %v495_v5, %v495_v5 }
 0x12c   : > { %1585 = vst [vmem:[%s1881_s11 + $0xf8] sm:$0xff] %v1553_v7   ;;  %v1548_v17 = vpack.c.bf16 %v2000_v15, %v1993_v57  ;;  %v1061_v61 = vmul.f32 %v1904_v13, %v1904_v13  ;;  %v1064_v7 = vmul.f32 %v1913_v24, %v1913_v24 }
 0x12d   : > { %1568 = vst [vmem:[%s1881_s11 + $0x70] sm:$0xff] %v1468_v9   ;;  %v984_v21 = vadd.f32 %v1672_v38, %v983_v12  ;;  %v1116_v22 = vadd.f32 %v1115_v8, %v1053_v14  ;;  %v1058_v38 = vmul.f32 %v1874_v41, %v1874_v41  ;;  %v1065_v12 = vmul.f32 %v1920_v37, %v1920_v37 }
 0x12e   : > { %1584 = vst [vmem:[%s1881_s11 + $0xf0] sm:$0xff] %v1548_v17  }
 0x12f   : > { %v985_v26 = vadd.f32 %v1673_v60, %v984_v21  ;;  %v1117_v28 = vadd.f32 %v1116_v22, %v1054_v20  ;;  %v1068_v22 = vmul.f32 %v1929_v51, %v1929_v51 }
 0x131   : > { %v1118_v31 = vadd.f32 %v1117_v28, %v1055_v25  ;;  %v986_v33 = vadd.f32 %v985_v26, %v1876_v43  ;;  %v1069_v28 = vmul.f32 %v1936_v3, %v1936_v3 }
 0x133   : > { %v987_v34 = vadd.f32 %v986_v33, %v1888_v53  ;;  %v1119_v40 = vadd.f32 %v1118_v31, %v1056_v29 }
 0x135   : > { %v988_v42 = vadd.f32 %v1874_v41, %v987_v34  ;;  %v1120_v44 = vadd.f32 %v1119_v40, %v1057_v35  ;;  %v1062_v41 = vmul.f32 %v1894_v59, %v1894_v59  ;;  %v1072_v35 = vmul.f32 %v1945_v16, %v1945_v16 }
 0x137   : > { %v1121_v50 = vadd.f32 %v1120_v44, %v1058_v38  ;;  %v989_v52 = vadd.f32 %v1883_v46, %v988_v42  ;;  %v1063_v46 = vmul.f32 %v1899_v6, %v1899_v6  ;;  %v1073_v42 = vmul.f32 %v1952_v32, %v1952_v32 }
 0x139   : > { %v990_v43 = vadd.f32 %v989_v52, %v1897_v0  ;;  %v1122_v55 = vadd.f32 %v1121_v50, %v1059_v47 }
 0x13b   : > { %v1123_v53 = vadd.f32 %v1122_v55, %v1060_v54  ;;  %v991_v60 = vadd.f32 %v990_v43, %v1904_v13  ;;  %v1076_v43 = vmul.f32 %v1961_v48, %v1961_v48 }
 0x13d   : > { %v992_v62 = vadd.f32 %v1894_v59, %v991_v60  ;;  %v1124_v63 = vadd.f32 %v1123_v53, %v1061_v61  ;;  %v1066_v59 = vmul.f32 %v1910_v19, %v1910_v19  ;;  %v1077_v53 = vmul.f32 %v1968_v2, %v1968_v2 }
 0x13f   : > { %v1125_v1 = vadd.f32 %v1124_v63, %v1062_v41  ;;  %v993_v5 = vadd.f32 %v1899_v6, %v992_v62  ;;  %v1067_v6 = vmul.f32 %v1915_v30, %v1915_v30  ;;  %v1080_v63 = vmul.f32 %v1977_v18, %v1977_v18 }
 0x141   : > { %v994_v0 = vadd.f32 %v993_v5, %v1913_v24  ;;  %v1126_v8 = vadd.f32 %v1125_v1, %v1063_v46  ;;  %v1081_v5 = vmul.f32 %v1984_v36, %v1984_v36 }
 0x143   : > { %v1127_v9 = vadd.f32 %v1126_v8, %v1064_v7  ;;  %v995_v13 = vadd.f32 %v994_v0, %v1920_v37 }
 0x145   : > { %v996_v14 = vadd.f32 %v1910_v19, %v995_v13  ;;  %v1128_v17 = vadd.f32 %v1127_v9, %v1065_v12  ;;  %v1070_v19 = vmul.f32 %v1926_v45, %v1926_v45  ;;  %v1084_v13 = vmul.f32 %v1993_v57, %v1993_v57 }
 0x147   : > { %v1129_v20 = vadd.f32 %v1128_v17, %v1066_v59  ;;  %v997_v21 = vadd.f32 %v1915_v30, %v996_v14  ;;  %v1071_v30 = vmul.f32 %v1931_v58, %v1931_v58  ;;  %v1086_v14 = vmul.f32 %v1990_v49, %v1990_v49 }
 0x149   : > { %v998_v24 = vadd.f32 %v997_v21, %v1929_v51  ;;  %v1130_v25 = vadd.f32 %v1129_v20, %v1067_v6 }
 0x14b   : > { %v1131_v26 = vadd.f32 %v1130_v25, %v1068_v22  ;;  %v999_v37 = vadd.f32 %v998_v24, %v1936_v3 }
 0x14d   : > { %v1000_v29 = vadd.f32 %v1926_v45, %v999_v37  ;;  %v1132_v31 = vadd.f32 %v1131_v26, %v1069_v28  ;;  %v1074_v45 = vmul.f32 %v1942_v10, %v1942_v10 }
 0x14f   : > { %v1133_v33 = vadd.f32 %v1132_v31, %v1070_v19  ;;  %v1001_v34 = vadd.f32 %v1931_v58, %v1000_v29  ;;  %v1075_v58 = vmul.f32 %v1947_v23, %v1947_v23 }
 0x151   : > { %v1002_v51 = vadd.f32 %v1001_v34, %v1945_v16  ;;  %v1134_v40 = vadd.f32 %v1133_v33, %v1071_v30 }
 0x153   : > { %v1135_v38 = vadd.f32 %v1134_v40, %v1072_v35  ;;  %v1003_v3 = vadd.f32 %v1002_v51, %v1952_v32 }
 0x155   : > { %v1004_v44 = vadd.f32 %v1942_v10, %v1003_v3  ;;  %v1136_v47 = vadd.f32 %v1135_v38, %v1073_v42  ;;  %v1078_v10 = vmul.f32 %v1958_v39, %v1958_v39 }
 0x157   : > { %v1137_v50 = vadd.f32 %v1136_v47, %v1074_v45  ;;  %v1005_v52 = vadd.f32 %v1947_v23, %v1004_v44  ;;  %v1079_v23 = vmul.f32 %v1963_v56, %v1963_v56 }
 0x159   : > { %v1006_v16 = vadd.f32 %v1005_v52, %v1961_v48  ;;  %v1138_v54 = vadd.f32 %v1137_v50, %v1075_v58 }
 0x15b   : > { %v1139_v55 = vadd.f32 %v1138_v54, %v1076_v43  ;;  %v1007_v32 = vadd.f32 %v1006_v16, %v1968_v2 }
 0x15d   : > { %v1008_v60 = vadd.f32 %v1958_v39, %v1007_v32  ;;  %v1140_v61 = vadd.f32 %v1139_v55, %v1077_v53  ;;  %v1082_v39 = vmul.f32 %v1974_v11, %v1974_v11 }
 0x15f   : > { %v1141_v41 = vadd.f32 %v1140_v61, %v1078_v10  ;;  %v1009_v62 = vadd.f32 %v1963_v56, %v1008_v60  ;;  %v1083_v56 = vmul.f32 %v1979_v27, %v1979_v27 }
 0x161   : > { %v1010_v48 = vadd.f32 %v1009_v62, %v1977_v18  ;;  %v1142_v46 = vadd.f32 %v1141_v41, %v1079_v23 }
 0x163   : > { %v1143_v1 = vadd.f32 %v1142_v46, %v1080_v63  ;;  %v1011_v2 = vadd.f32 %v1010_v48, %v1984_v36 }
 0x165   : > { %v1012_v0 = vadd.f32 %v1974_v11, %v1011_v2  ;;  %v1144_v7 = vadd.f32 %v1143_v1, %v1081_v5  ;;  %v1085_v11 = vmul.f32 %v2000_v15, %v2000_v15 }
 0x167   : > { %v1145_v8 = vadd.f32 %v1144_v7, %v1082_v39  ;;  %v1013_v18 = vadd.f32 %v1979_v27, %v1012_v0  ;;  %v1087_v27 = vmul.f32 %v1995_v4, %v1995_v4 }
 0x169   : > { %v1014_v9 = vadd.f32 %v1013_v18, %v1993_v57  ;;  %v1146_v12 = vadd.f32 %v1145_v8, %v1083_v56 }
 0x16b   : > { %v1147_v36 = vadd.f32 %v1146_v12, %v1084_v13  ;;  %v1015_v59 = vadd.f32 %v1014_v9, %v2000_v15 }
 0x16d   : > { %v1016_v17 = vadd.f32 %v1990_v49, %v1015_v59  ;;  %v1148_v6 = vadd.f32 %v1147_v36, %v1085_v11 }
 0x16f   : > { %v1017_v20 = vadd.f32 %v1995_v4, %v1016_v17  ;;  %v1149_v57 = vadd.f32 %v1148_v6, %v1086_v14 }
 0x171   : > { %v1018_v21 = vrot.slane %v1017_v20, 4  ;;  %v1150_v24 = vadd.f32 %v1149_v57, %v1087_v27 }
 0x173   : > { %v1019_v22 = vadd.f32 %v1018_v21, %v1017_v20  ;;  %v1151_v25 = vrot.slane %v1150_v24, 4 }
 0x175   : > { %v1020_v26 = vrot.slane %v1019_v22, 2  ;;  %v1152_v37 = vadd.f32 %v1151_v25, %v1150_v24 }
 0x177   : > { %v1021_v15 = vadd.f32 %v1020_v26, %v1019_v22  ;;  %v1153_v28 = vrot.slane %v1152_v37, 2 }
 0x179   : > { %v1022_v19 = vrot.slane %v1021_v15, 1  ;;  %v1154_v29 = vadd.f32 %v1153_v28, %v1152_v37 }
 0x17b   : > { %v1155_v49 = vrot.slane %v1154_v29, 1  ;;  %v1023_v4 = vadd.f32 %v1022_v19, %v1021_v15 }
 0x17d   : > { %v1156_v31 = vadd.f32 %v1155_v49, %v1154_v29 }
 0x17f   : > { %v1158_v30 = vsel %vm1157_vm0, %v1023_v4, %v1156_v31 }
 0x180   : > { %1159 = vst [vmem:[%s184_s17] sm:$0x3] %v1158_v30 }
 0x181 PF: > { %s14_s12 = sadd.s32 1, %s1744_s12  }
 0x182   : > { %p11_p5 = scmp.ge.s32.totalorder %s14_s12, 5  }
 0x184   :  { %13 = sbr.rel (!%p11_p5) target bundleno = 1 (0x1), region = 70 }

// kernel: bottleneck_forward.7
= control target key start
LH: loop header
LB: loop body
LE: loop exit
PB: predicated region body
PF: predicated region fallthrough
CT: control target
= control target key end

     0   :  { %s968_s15 = smov 0   ;;  %s1300_s0 = inlined_call_operand.vmem [shape: bf16[1536,128], index: 0, kind: input, shape index: {}]   ;;  %s1301_s1 = inlined_call_operand.vmem [shape: f32[1536,128], index: 1, kind: input, shape index: {}]   ;;  %s1302_s2 = inlined_call_operand.vmem [shape: f32[1,128], index: 2, kind: input, shape index: {}]   ;;  %s1303_s3 = inlined_call_operand.vmem [shape: f32[1,128], index: 3, kind: input, shape index: {}]   ;;  %s1304_s4 = inlined_call_operand.vmem [shape: f32[1536,128], index: 4, kind: output, shape index: {}]  }
   0x1 LB: > { %s753_s16 = sadd.s32 4294967295, %s941_s15   ;;  %p757_p0 = scmp.ge.s32.totalorder %s941_s15, 1  ;;  %s941_s15 = sphi %s968_s15, %s14_s15  }
   0x2   : > { %p174_p1 = scmp.lt.s32.totalorder %s941_s15, 4 }
   0x4   : > { %p175_p2 = pnand %p757_p0, %p174_p1 }
   0x5   : > { %s758_s17 = sshll.u32 (!%p175_p2), %s753_s16, 6 }
   0x6   : > { %178 = sbr.rel (%p175_p2) target bundleno = 82 (0x52), region = 36  ;;  %p206_p3 = scmp.lt.s32.totalorder (!%p175_p2), %s758_s17, 191 }
   0xb   : > { %s1306_s17 = smov (!%p206_p3, %s758_s17), 191  ;;  %v989_v1 = vld [vmem:[%s1302_s2] ss:$0 sm:$0xff] }
   0xc   : > { %s759_s18 = sshll.u32 %s1306_s17, 2  ;;  %s761_s19 = sshll.u32 %s1306_s17, 3  ;;  %v1002_v5 = vld [vmem:[%s1303_s3] ss:$0 sm:$0xff] }
   0xd   : > { %s983_s22 = scalar_lea.vmem %s1300_s0, %s759_s18  ;;  %s996_s27 = scalar_lea.vmem %s1301_s1, %s761_s19 }
   0xe   : > { %v769_v0 = vld [vmem:[%s983_s22] sm:$0xff]   ;;  %v896_v4 = vld [vmem:[%s983_s22 + $0x8] sm:$0xff]   ;;  %v897_v8 = vld [vmem:[%s983_s22 + $0x10] sm:$0xff]   ;;  %s1023_s6 = scalar_lea.vmem %s1304_s4, %s761_s19 }
   0xf   : > { %v770_v2 = vunpack.c.l.bf16 %v769_v0  ;;  %v771_v3 = vunpack.c.h.bf16 %v769_v0  ;;  %v774_v6 = vunpack.c.l.bf16 %v896_v4  ;;  %v775_v7 = vunpack.c.h.bf16 %v896_v4  ;;  %v898_v13 = vld [vmem:[%s983_s22 + $0x18] sm:$0xff]   ;;  %v493_v14 = vld [vmem:[%s996_s27] sm:$0xff]  ;;  %v494_v15 = vld [vmem:[%s996_s27 + $0x8] sm:$0xff] }
  0x10   : > { %v778_v11 = vunpack.c.l.bf16 %v897_v8  ;;  %v779_v12 = vunpack.c.h.bf16 %v897_v8  ;;  %v782_v18 = vunpack.c.l.bf16 %v898_v13  ;;  %v783_v19 = vunpack.c.h.bf16 %v898_v13  ;;  %v495_v22 = vld [vmem:[%s996_s27 + $0x10] sm:$0xff]  ;;  %v496_v23 = vld [vmem:[%s996_s27 + $0x18] sm:$0xff]  ;;  %v497_v28 = vld [vmem:[%s996_s27 + $0x20] sm:$0xff] }
  0x11   : > { %v358_v9 = vmul.f32 %v770_v2, %v989_v1  ;;  %v359_v10 = vmul.f32 %v771_v3, %v989_v1  ;;  %v360_v16 = vmul.f32 %v774_v6, %v989_v1  ;;  %v361_v17 = vmul.f32 %v775_v7, %v989_v1  ;;  %v498_v29 = vld [vmem:[%s996_s27 + $0x28] sm:$0xff]  ;;  %v899_v32 = vld [vmem:[%s983_s22 + $0x20] sm:$0xff]   ;;  %v499_v37 = vld [vmem:[%s996_s27 + $0x30] sm:$0xff] }
  0x12   : > { %v362_v24 = vmul.f32 %v778_v11, %v989_v1  ;;  %v363_v25 = vmul.f32 %v779_v12, %v989_v1  ;;  %v364_v30 = vmul.f32 %v782_v18, %v989_v1  ;;  %v365_v31 = vmul.f32 %v783_v19, %v989_v1  ;;  %v500_v38 = vld [vmem:[%s996_s27 + $0x38] sm:$0xff]  ;;  %v900_v39 = vld [vmem:[%s983_s22 + $0x28] sm:$0xff]   ;;  %v901_v44 = vld [vmem:[%s983_s22 + $0x30] sm:$0xff]  }
  0x13   : > { %v429_v20 = vadd.f32 %v1002_v5, %v358_v9  ;;  %v430_v21 = vadd.f32 %v1002_v5, %v359_v10  ;;  %v431_v26 = vadd.f32 %v1002_v5, %v360_v16  ;;  %v432_v27 = vadd.f32 %v1002_v5, %v361_v17  ;;  %v902_v49 = vld [vmem:[%s983_s22 + $0x38] sm:$0xff]   ;;  %v501_v58 = vld [vmem:[%s996_s27 + $0x40] sm:$0xff]  ;;  %v502_v59 = vld [vmem:[%s996_s27 + $0x48] sm:$0xff] }
  0x14   : > { %v433_v35 = vadd.f32 %v1002_v5, %v362_v24  ;;  %v434_v36 = vadd.f32 %v1002_v5, %v363_v25  ;;  %v435_v42 = vadd.f32 %v1002_v5, %v364_v30  ;;  %v436_v43 = vadd.f32 %v1002_v5, %v365_v31  ;;  %v503_v3 = vld [vmem:[%s996_s27 + $0x50] sm:$0xff]  ;;  %v504_v4 = vld [vmem:[%s996_s27 + $0x58] sm:$0xff]  ;;  %v505_v10 = vld [vmem:[%s996_s27 + $0x60] sm:$0xff] }
  0x15   : > { %v557_v33 = vadd.f32 %v493_v14, %v429_v20  ;;  %v558_v34 = vadd.f32 %v494_v15, %v430_v21  ;;  %v559_v40 = vadd.f32 %v495_v22, %v431_v26  ;;  %v560_v41 = vadd.f32 %v496_v23, %v432_v27  ;;  %v506_v11 = vld [vmem:[%s996_s27 + $0x68] sm:$0xff]  ;;  %v903_v14 = vld [vmem:[%s983_s22 + $0x40] sm:$0xff]   ;;  %v507_v19 = vld [vmem:[%s996_s27 + $0x70] sm:$0xff] }
  0x16   : > { %v561_v45 = vadd.f32 %v497_v28, %v433_v35  ;;  %v562_v46 = vadd.f32 %v498_v29, %v434_v36  ;;  %v786_v47 = vunpack.c.l.bf16 %v899_v32  ;;  %v787_v48 = vunpack.c.h.bf16 %v899_v32  ;;  %v508_v20 = vld [vmem:[%s996_s27 + $0x78] sm:$0xff]  ;;  %v904_v21 = vld [vmem:[%s983_s22 + $0x48] sm:$0xff]   ;;  %v905_v26 = vld [vmem:[%s983_s22 + $0x50] sm:$0xff]  }
  0x17   : > { %621 = vst [vmem:[%s1023_s6] sm:$0xff] %v557_v33  ;;  %622 = vst [vmem:[%s1023_s6 + $0x8] sm:$0xff] %v558_v34  ;;  %v563_v50 = vadd.f32 %v499_v37, %v435_v42  ;;  %v564_v51 = vadd.f32 %v500_v38, %v436_v43  ;;  %v790_v52 = vunpack.c.l.bf16 %v900_v39  ;;  %v791_v53 = vunpack.c.h.bf16 %v900_v39  ;;  %v906_v31 = vld [vmem:[%s983_s22 + $0x58] sm:$0xff]  }
  0x18   : > { %623 = vst [vmem:[%s1023_s6 + $0x10] sm:$0xff] %v559_v40  ;;  %624 = vst [vmem:[%s1023_s6 + $0x18] sm:$0xff] %v560_v41  ;;  %v366_v54 = vmul.f32 %v786_v47, %v989_v1  ;;  %v367_v55 = vmul.f32 %v787_v48, %v989_v1  ;;  %v794_v56 = vunpack.c.l.bf16 %v901_v44  ;;  %v795_v57 = vunpack.c.h.bf16 %v901_v44  ;;  %v509_v40 = vld [vmem:[%s996_s27 + $0x80] sm:$0xff]  ;;  %v510_v41 = vld [vmem:[%s996_s27 + $0x88] sm:$0xff] }
  0x19   : > { %625 = vst [vmem:[%s1023_s6 + $0x20] sm:$0xff] %v561_v45  ;;  %626 = vst [vmem:[%s1023_s6 + $0x28] sm:$0xff] %v562_v46  ;;  %v368_v60 = vmul.f32 %v790_v52, %v989_v1  ;;  %v369_v61 = vmul.f32 %v791_v53, %v989_v1  ;;  %v798_v62 = vunpack.c.l.bf16 %v902_v49  ;;  %v799_v63 = vunpack.c.h.bf16 %v902_v49  ;;  %v511_v48 = vld [vmem:[%s996_s27 + $0x90] sm:$0xff]  ;;  %v512_v49 = vld [vmem:[%s996_s27 + $0x98] sm:$0xff] }
  0x1a   : > { %627 = vst [vmem:[%s1023_s6 + $0x30] sm:$0xff] %v563_v50  ;;  %628 = vst [vmem:[%s1023_s6 + $0x38] sm:$0xff] %v564_v51  ;;  %v437_v0 = vadd.f32 %v1002_v5, %v366_v54  ;;  %v438_v2 = vadd.f32 %v1002_v5, %v367_v55  ;;  %v370_v6 = vmul.f32 %v794_v56, %v989_v1  ;;  %v802_v29 = vunpack.c.l.bf16 %v903_v14  ;;  %v513_v54 = vld [vmem:[%s996_s27 + $0xa0] sm:$0xff]  ;;  %v514_v55 = vld [vmem:[%s996_s27 + $0xa8] sm:$0xff] }
  0x1b   : > { %v371_v7 = vmul.f32 %v795_v57, %v989_v1  ;;  %v439_v8 = vadd.f32 %v1002_v5, %v368_v60  ;;  %v440_v9 = vadd.f32 %v1002_v5, %v369_v61  ;;  %v372_v12 = vmul.f32 %v798_v62, %v989_v1 }
  0x1c   : > { %v373_v13 = vmul.f32 %v799_v63, %v989_v1  ;;  %v565_v15 = vadd.f32 %v501_v58, %v437_v0  ;;  %v566_v16 = vadd.f32 %v502_v59, %v438_v2  ;;  %v441_v17 = vadd.f32 %v1002_v5, %v370_v6  ;;  %v907_v58 = vld [vmem:[%s983_s22 + $0x60] sm:$0xff]   ;;  %v515_v63 = vld [vmem:[%s996_s27 + $0xb0] sm:$0xff]  ;;  %v516_v0 = vld [vmem:[%s996_s27 + $0xb8] sm:$0xff] }
  0x1d   : > { %v442_v18 = vadd.f32 %v1002_v5, %v371_v7  ;;  %v567_v22 = vadd.f32 %v503_v3, %v439_v8  ;;  %v568_v23 = vadd.f32 %v504_v4, %v440_v9  ;;  %v443_v24 = vadd.f32 %v1002_v5, %v372_v12  ;;  %v908_v2 = vld [vmem:[%s983_s22 + $0x68] sm:$0xff]   ;;  %v909_v8 = vld [vmem:[%s983_s22 + $0x70] sm:$0xff]  }
  0x1e   : > { %v444_v25 = vadd.f32 %v1002_v5, %v373_v13  ;;  %629 = vst [vmem:[%s1023_s6 + $0x40] sm:$0xff] %v565_v15  ;;  %630 = vst [vmem:[%s1023_s6 + $0x48] sm:$0xff] %v566_v16  ;;  %v569_v27 = vadd.f32 %v505_v10, %v441_v17  ;;  %v803_v30 = vunpack.c.h.bf16 %v903_v14  ;;  %v806_v34 = vunpack.c.l.bf16 %v904_v21  ;;  %v910_v13 = vld [vmem:[%s983_s22 + $0x78] sm:$0xff]  }
  0x1f   : > { %v570_v28 = vadd.f32 %v506_v11, %v442_v18  ;;  %631 = vst [vmem:[%s1023_s6 + $0x50] sm:$0xff] %v567_v22  ;;  %632 = vst [vmem:[%s1023_s6 + $0x58] sm:$0xff] %v568_v23  ;;  %v571_v32 = vadd.f32 %v507_v19, %v443_v24  ;;  %v807_v35 = vunpack.c.h.bf16 %v904_v21  ;;  %v374_v36 = vmul.f32 %v802_v29, %v989_v1  ;;  %v517_v22 = vld [vmem:[%s996_s27 + $0xc0] sm:$0xff]  ;;  %v518_v23 = vld [vmem:[%s996_s27 + $0xc8] sm:$0xff] }
  0x20   : > { %v572_v33 = vadd.f32 %v508_v20, %v444_v25  ;;  %633 = vst [vmem:[%s1023_s6 + $0x60] sm:$0xff] %v569_v27  ;;  %v375_v37 = vmul.f32 %v803_v30, %v989_v1  ;;  %v810_v38 = vunpack.c.l.bf16 %v905_v26  ;;  %v811_v39 = vunpack.c.h.bf16 %v905_v26  ;;  %v519_v30 = vld [vmem:[%s996_s27 + $0xd0] sm:$0xff] }
  0x21   : > { %634 = vst [vmem:[%s1023_s6 + $0x68] sm:$0xff] %v570_v28  ;;  %635 = vst [vmem:[%s1023_s6 + $0x70] sm:$0xff] %v571_v32  ;;  %v376_v42 = vmul.f32 %v806_v34, %v989_v1  ;;  %v377_v43 = vmul.f32 %v807_v35, %v989_v1  ;;  %v814_v44 = vunpack.c.l.bf16 %v906_v31  ;;  %v815_v45 = vunpack.c.h.bf16 %v906_v31  ;;  %v520_v31 = vld [vmem:[%s996_s27 + $0xd8] sm:$0xff] }
  0x22   : > { %636 = vst [vmem:[%s1023_s6 + $0x78] sm:$0xff] %v572_v33  ;;  %v445_v46 = vadd.f32 %v1002_v5, %v374_v36  ;;  %v446_v47 = vadd.f32 %v1002_v5, %v375_v37  ;;  %v378_v50 = vmul.f32 %v810_v38, %v989_v1  ;;  %v379_v51 = vmul.f32 %v811_v39, %v989_v1  ;;  %v521_v36 = vld [vmem:[%s996_s27 + $0xe0] sm:$0xff]  ;;  %v522_v37 = vld [vmem:[%s996_s27 + $0xe8] sm:$0xff] }
  0x23   : > { %v447_v52 = vadd.f32 %v1002_v5, %v376_v42  ;;  %v448_v53 = vadd.f32 %v1002_v5, %v377_v43  ;;  %v380_v56 = vmul.f32 %v814_v44, %v989_v1  ;;  %v381_v57 = vmul.f32 %v815_v45, %v989_v1  ;;  %v523_v45 = vld [vmem:[%s996_s27 + $0xf0] sm:$0xff] }
  0x24   : > { %v573_v59 = vadd.f32 %v509_v40, %v445_v46  ;;  %v574_v60 = vadd.f32 %v510_v41, %v446_v47  ;;  %v449_v61 = vadd.f32 %v1002_v5, %v378_v50  ;;  %v450_v62 = vadd.f32 %v1002_v5, %v379_v51  ;;  %v911_v40 = vld [vmem:[%s983_s22 + $0x80] sm:$0xff]   ;;  %v524_v46 = vld [vmem:[%s996_s27 + $0xf8] sm:$0xff]  ;;  %v912_v47 = vld [vmem:[%s983_s22 + $0x88] sm:$0xff]  }
  0x25   : > { %v575_v3 = vadd.f32 %v511_v48, %v447_v52  ;;  %v576_v4 = vadd.f32 %v512_v49, %v448_v53  ;;  %v451_v6 = vadd.f32 %v1002_v5, %v380_v56  ;;  %v452_v7 = vadd.f32 %v1002_v5, %v381_v57  ;;  %v913_v52 = vld [vmem:[%s983_s22 + $0x90] sm:$0xff]   ;;  %v914_v57 = vld [vmem:[%s983_s22 + $0x98] sm:$0xff]  }
  0x26   : > { %637 = vst [vmem:[%s1023_s6 + $0x80] sm:$0xff] %v573_v59  ;;  %638 = vst [vmem:[%s1023_s6 + $0x88] sm:$0xff] %v574_v60  ;;  %v577_v9 = vadd.f32 %v513_v54, %v449_v61  ;;  %v578_v10 = vadd.f32 %v514_v55, %v450_v62  ;;  %v818_v11 = vunpack.c.l.bf16 %v907_v58  ;;  %v819_v12 = vunpack.c.h.bf16 %v907_v58 }
  0x27   : > { %639 = vst [vmem:[%s1023_s6 + $0x90] sm:$0xff] %v575_v3  ;;  %640 = vst [vmem:[%s1023_s6 + $0x98] sm:$0xff] %v576_v4  ;;  %v579_v14 = vadd.f32 %v515_v63, %v451_v6  ;;  %v580_v15 = vadd.f32 %v516_v0, %v452_v7  ;;  %v822_v16 = vunpack.c.l.bf16 %v908_v2  ;;  %v823_v17 = vunpack.c.h.bf16 %v908_v2  ;;  %v525_v3 = vld [vmem:[%s996_s27 + $0x100] sm:$0xff]  ;;  %v526_v4 = vld [vmem:[%s996_s27 + $0x108] sm:$0xff] }
  0x28   : > { %641 = vst [vmem:[%s1023_s6 + $0xa0] sm:$0xff] %v577_v9  ;;  %642 = vst [vmem:[%s1023_s6 + $0xa8] sm:$0xff] %v578_v10  ;;  %v382_v18 = vmul.f32 %v818_v11, %v989_v1  ;;  %v383_v19 = vmul.f32 %v819_v12, %v989_v1  ;;  %v826_v20 = vunpack.c.l.bf16 %v909_v8  ;;  %v827_v21 = vunpack.c.h.bf16 %v909_v8  ;;  %v527_v12 = vld [vmem:[%s996_s27 + $0x110] sm:$0xff] }
  0x29   : > { %643 = vst [vmem:[%s1023_s6 + $0xb0] sm:$0xff] %v579_v14  ;;  %644 = vst [vmem:[%s1023_s6 + $0xb8] sm:$0xff] %v580_v15  ;;  %v384_v24 = vmul.f32 %v822_v16, %v989_v1  ;;  %v385_v25 = vmul.f32 %v823_v17, %v989_v1  ;;  %v830_v26 = vunpack.c.l.bf16 %v910_v13  ;;  %v831_v27 = vunpack.c.h.bf16 %v910_v13  ;;  %v528_v13 = vld [vmem:[%s996_s27 + $0x118] sm:$0xff] }
  0x2a   : > { %v453_v28 = vadd.f32 %v1002_v5, %v382_v18  ;;  %v454_v29 = vadd.f32 %v1002_v5, %v383_v19  ;;  %v386_v32 = vmul.f32 %v826_v20, %v989_v1  ;;  %v387_v33 = vmul.f32 %v827_v21, %v989_v1  ;;  %v529_v18 = vld [vmem:[%s996_s27 + $0x120] sm:$0xff]  ;;  %v530_v19 = vld [vmem:[%s996_s27 + $0x128] sm:$0xff] }
  0x2b   : > { %v455_v34 = vadd.f32 %v1002_v5, %v384_v24  ;;  %v456_v35 = vadd.f32 %v1002_v5, %v385_v25  ;;  %v388_v38 = vmul.f32 %v830_v26, %v989_v1  ;;  %v389_v39 = vmul.f32 %v831_v27, %v989_v1  ;;  %v531_v27 = vld [vmem:[%s996_s27 + $0x130] sm:$0xff] }
  0x2c   : > { %v581_v41 = vadd.f32 %v517_v22, %v453_v28  ;;  %v582_v42 = vadd.f32 %v518_v23, %v454_v29  ;;  %v457_v43 = vadd.f32 %v1002_v5, %v386_v32  ;;  %v458_v44 = vadd.f32 %v1002_v5, %v387_v33  ;;  %v915_v22 = vld [vmem:[%s983_s22 + $0xa0] sm:$0xff]   ;;  %v532_v28 = vld [vmem:[%s996_s27 + $0x138] sm:$0xff]  ;;  %v916_v29 = vld [vmem:[%s983_s22 + $0xa8] sm:$0xff]  }
  0x2d   : > { %v583_v48 = vadd.f32 %v519_v30, %v455_v34  ;;  %v584_v49 = vadd.f32 %v520_v31, %v456_v35  ;;  %v459_v50 = vadd.f32 %v1002_v5, %v388_v38  ;;  %v460_v51 = vadd.f32 %v1002_v5, %v389_v39  ;;  %v917_v34 = vld [vmem:[%s983_s22 + $0xb0] sm:$0xff]   ;;  %v918_v39 = vld [vmem:[%s983_s22 + $0xb8] sm:$0xff]  }
  0x2e   : > { %645 = vst [vmem:[%s1023_s6 + $0xc0] sm:$0xff] %v581_v41  ;;  %646 = vst [vmem:[%s1023_s6 + $0xc8] sm:$0xff] %v582_v42  ;;  %v585_v53 = vadd.f32 %v521_v36, %v457_v43  ;;  %v586_v54 = vadd.f32 %v522_v37, %v458_v44  ;;  %v834_v55 = vunpack.c.l.bf16 %v911_v40  ;;  %v835_v56 = vunpack.c.h.bf16 %v911_v40 }
  0x2f   : > { %647 = vst [vmem:[%s1023_s6 + $0xd0] sm:$0xff] %v583_v48  ;;  %648 = vst [vmem:[%s1023_s6 + $0xd8] sm:$0xff] %v584_v49  ;;  %v587_v58 = vadd.f32 %v523_v45, %v459_v50  ;;  %v588_v59 = vadd.f32 %v524_v46, %v460_v51  ;;  %v838_v60 = vunpack.c.l.bf16 %v912_v47  ;;  %v839_v61 = vunpack.c.h.bf16 %v912_v47  ;;  %v533_v48 = vld [vmem:[%s996_s27 + $0x140] sm:$0xff]  ;;  %v534_v49 = vld [vmem:[%s996_s27 + $0x148] sm:$0xff] }
  0x30   : > { %649 = vst [vmem:[%s1023_s6 + $0xe0] sm:$0xff] %v585_v53  ;;  %650 = vst [vmem:[%s1023_s6 + $0xe8] sm:$0xff] %v586_v54  ;;  %v390_v62 = vmul.f32 %v834_v55, %v989_v1  ;;  %v391_v63 = vmul.f32 %v835_v56, %v989_v1  ;;  %v842_v0 = vunpack.c.l.bf16 %v913_v52  ;;  %v843_v2 = vunpack.c.h.bf16 %v913_v52  ;;  %v535_v56 = vld [vmem:[%s996_s27 + $0x150] sm:$0xff] }
  0x31   : > { %651 = vst [vmem:[%s1023_s6 + $0xf0] sm:$0xff] %v587_v58  ;;  %652 = vst [vmem:[%s1023_s6 + $0xf8] sm:$0xff] %v588_v59  ;;  %v392_v6 = vmul.f32 %v838_v60, %v989_v1  ;;  %v393_v7 = vmul.f32 %v839_v61, %v989_v1  ;;  %v846_v8 = vunpack.c.l.bf16 %v914_v57  ;;  %v847_v9 = vunpack.c.h.bf16 %v914_v57  ;;  %v536_v57 = vld [vmem:[%s996_s27 + $0x158] sm:$0xff] }
  0x32   : > { %v461_v10 = vadd.f32 %v1002_v5, %v390_v62  ;;  %v462_v11 = vadd.f32 %v1002_v5, %v391_v63  ;;  %v394_v14 = vmul.f32 %v842_v0, %v989_v1  ;;  %v395_v15 = vmul.f32 %v843_v2, %v989_v1  ;;  %v537_v62 = vld [vmem:[%s996_s27 + $0x160] sm:$0xff]  ;;  %v538_v63 = vld [vmem:[%s996_s27 + $0x168] sm:$0xff] }
  0x33   : > { %v463_v16 = vadd.f32 %v1002_v5, %v392_v6  ;;  %v464_v17 = vadd.f32 %v1002_v5, %v393_v7  ;;  %v396_v20 = vmul.f32 %v846_v8, %v989_v1  ;;  %v397_v21 = vmul.f32 %v847_v9, %v989_v1  ;;  %v539_v9 = vld [vmem:[%s996_s27 + $0x170] sm:$0xff] }
  0x34   : > { %v589_v23 = vadd.f32 %v525_v3, %v461_v10  ;;  %v590_v24 = vadd.f32 %v526_v4, %v462_v11  ;;  %v465_v25 = vadd.f32 %v1002_v5, %v394_v14  ;;  %v466_v26 = vadd.f32 %v1002_v5, %v395_v15  ;;  %v919_v3 = vld [vmem:[%s983_s22 + $0xc0] sm:$0xff]   ;;  %v540_v10 = vld [vmem:[%s996_s27 + $0x178] sm:$0xff]  ;;  %v920_v11 = vld [vmem:[%s983_s22 + $0xc8] sm:$0xff]  }
  0x35   : > { %v591_v30 = vadd.f32 %v527_v12, %v463_v16  ;;  %v592_v31 = vadd.f32 %v528_v13, %v464_v17  ;;  %v467_v32 = vadd.f32 %v1002_v5, %v396_v20  ;;  %v468_v33 = vadd.f32 %v1002_v5, %v397_v21  ;;  %v921_v16 = vld [vmem:[%s983_s22 + $0xd0] sm:$0xff]   ;;  %v922_v21 = vld [vmem:[%s983_s22 + $0xd8] sm:$0xff]  }
  0x36   : > { %653 = vst [vmem:[%s1023_s6 + $0x100] sm:$0xff] %v589_v23  ;;  %654 = vst [vmem:[%s1023_s6 + $0x108] sm:$0xff] %v590_v24  ;;  %v593_v35 = vadd.f32 %v529_v18, %v465_v25  ;;  %v594_v36 = vadd.f32 %v530_v19, %v466_v26  ;;  %v850_v37 = vunpack.c.l.bf16 %v915_v22  ;;  %v851_v38 = vunpack.c.h.bf16 %v915_v22 }
  0x37   : > { %655 = vst [vmem:[%s1023_s6 + $0x110] sm:$0xff] %v591_v30  ;;  %656 = vst [vmem:[%s1023_s6 + $0x118] sm:$0xff] %v592_v31  ;;  %v595_v40 = vadd.f32 %v531_v27, %v467_v32  ;;  %v596_v41 = vadd.f32 %v532_v28, %v468_v33  ;;  %v854_v42 = vunpack.c.l.bf16 %v916_v29  ;;  %v855_v43 = vunpack.c.h.bf16 %v916_v29  ;;  %v541_v30 = vld [vmem:[%s996_s27 + $0x180] sm:$0xff]  ;;  %v542_v31 = vld [vmem:[%s996_s27 + $0x188] sm:$0xff] }
  0x38   : > { %657 = vst [vmem:[%s1023_s6 + $0x120] sm:$0xff] %v593_v35  ;;  %658 = vst [vmem:[%s1023_s6 + $0x128] sm:$0xff] %v594_v36  ;;  %v398_v44 = vmul.f32 %v850_v37, %v989_v1  ;;  %v399_v45 = vmul.f32 %v851_v38, %v989_v1  ;;  %v858_v46 = vunpack.c.l.bf16 %v917_v34  ;;  %v859_v47 = vunpack.c.h.bf16 %v917_v34  ;;  %v543_v38 = vld [vmem:[%s996_s27 + $0x190] sm:$0xff] }
  0x39   : > { %659 = vst [vmem:[%s1023_s6 + $0x130] sm:$0xff] %v595_v40  ;;  %660 = vst [vmem:[%s1023_s6 + $0x138] sm:$0xff] %v596_v41  ;;  %v400_v50 = vmul.f32 %v854_v42, %v989_v1  ;;  %v401_v51 = vmul.f32 %v855_v43, %v989_v1  ;;  %v862_v52 = vunpack.c.l.bf16 %v918_v39  ;;  %v863_v53 = vunpack.c.h.bf16 %v918_v39  ;;  %v544_v39 = vld [vmem:[%s996_s27 + $0x198] sm:$0xff] }
  0x3a   : > { %v469_v54 = vadd.f32 %v1002_v5, %v398_v44  ;;  %v470_v55 = vadd.f32 %v1002_v5, %v399_v45  ;;  %v402_v58 = vmul.f32 %v858_v46, %v989_v1  ;;  %v403_v59 = vmul.f32 %v859_v47, %v989_v1  ;;  %v545_v44 = vld [vmem:[%s996_s27 + $0x1a0] sm:$0xff]  ;;  %v546_v45 = vld [vmem:[%s996_s27 + $0x1a8] sm:$0xff] }
  0x3b   : > { %v471_v60 = vadd.f32 %v1002_v5, %v400_v50  ;;  %v472_v61 = vadd.f32 %v1002_v5, %v401_v51  ;;  %v404_v0 = vmul.f32 %v862_v52, %v989_v1  ;;  %v405_v2 = vmul.f32 %v863_v53, %v989_v1  ;;  %v547_v53 = vld [vmem:[%s996_s27 + $0x1b0] sm:$0xff] }
  0x3c   : > { %v597_v4 = vadd.f32 %v533_v48, %v469_v54  ;;  %v598_v6 = vadd.f32 %v534_v49, %v470_v55  ;;  %v473_v7 = vadd.f32 %v1002_v5, %v402_v58  ;;  %v474_v8 = vadd.f32 %v1002_v5, %v403_v59  ;;  %v923_v48 = vld [vmem:[%s983_s22 + $0xe0] sm:$0xff]   ;;  %v548_v54 = vld [vmem:[%s996_s27 + $0x1b8] sm:$0xff]  ;;  %v924_v55 = vld [vmem:[%s983_s22 + $0xe8] sm:$0xff]  }
  0x3d   : > { %v599_v12 = vadd.f32 %v535_v56, %v471_v60  ;;  %v600_v13 = vadd.f32 %v536_v57, %v472_v61  ;;  %v475_v14 = vadd.f32 %v1002_v5, %v404_v0  ;;  %v476_v15 = vadd.f32 %v1002_v5, %v405_v2  ;;  %v925_v60 = vld [vmem:[%s983_s22 + $0xf0] sm:$0xff]   ;;  %v926_v2 = vld [vmem:[%s983_s22 + $0xf8] sm:$0xff]  }
  0x3e   : > { %661 = vst [vmem:[%s1023_s6 + $0x140] sm:$0xff] %v597_v4  ;;  %662 = vst [vmem:[%s1023_s6 + $0x148] sm:$0xff] %v598_v6  ;;  %v601_v17 = vadd.f32 %v537_v62, %v473_v7  ;;  %v602_v18 = vadd.f32 %v538_v63, %v474_v8  ;;  %v866_v19 = vunpack.c.l.bf16 %v919_v3  ;;  %v867_v20 = vunpack.c.h.bf16 %v919_v3 }
  0x3f   : > { %663 = vst [vmem:[%s1023_s6 + $0x150] sm:$0xff] %v599_v12  ;;  %664 = vst [vmem:[%s1023_s6 + $0x158] sm:$0xff] %v600_v13  ;;  %v603_v22 = vadd.f32 %v539_v9, %v475_v14  ;;  %v604_v23 = vadd.f32 %v540_v10, %v476_v15  ;;  %v870_v24 = vunpack.c.l.bf16 %v920_v11  ;;  %v871_v25 = vunpack.c.h.bf16 %v920_v11  ;;  %v549_v12 = vld [vmem:[%s996_s27 + $0x1c0] sm:$0xff]  ;;  %v550_v13 = vld [vmem:[%s996_s27 + $0x1c8] sm:$0xff] }
  0x40   : > { %665 = vst [vmem:[%s1023_s6 + $0x160] sm:$0xff] %v601_v17  ;;  %666 = vst [vmem:[%s1023_s6 + $0x168] sm:$0xff] %v602_v18  ;;  %v406_v26 = vmul.f32 %v866_v19, %v989_v1  ;;  %v407_v27 = vmul.f32 %v867_v20, %v989_v1  ;;  %v874_v28 = vunpack.c.l.bf16 %v921_v16  ;;  %v875_v29 = vunpack.c.h.bf16 %v921_v16  ;;  %v551_v20 = vld [vmem:[%s996_s27 + $0x1d0] sm:$0xff] }
  0x41   : > { %667 = vst [vmem:[%s1023_s6 + $0x170] sm:$0xff] %v603_v22  ;;  %668 = vst [vmem:[%s1023_s6 + $0x178] sm:$0xff] %v604_v23  ;;  %v408_v32 = vmul.f32 %v870_v24, %v989_v1  ;;  %v409_v33 = vmul.f32 %v871_v25, %v989_v1  ;;  %v878_v34 = vunpack.c.l.bf16 %v922_v21  ;;  %v879_v35 = vunpack.c.h.bf16 %v922_v21  ;;  %v552_v21 = vld [vmem:[%s996_s27 + $0x1d8] sm:$0xff] }
  0x42   : > { %v477_v36 = vadd.f32 %v1002_v5, %v406_v26  ;;  %v478_v37 = vadd.f32 %v1002_v5, %v407_v27  ;;  %v410_v40 = vmul.f32 %v874_v28, %v989_v1  ;;  %v411_v41 = vmul.f32 %v875_v29, %v989_v1  ;;  %v553_v26 = vld [vmem:[%s996_s27 + $0x1e0] sm:$0xff]  ;;  %v554_v27 = vld [vmem:[%s996_s27 + $0x1e8] sm:$0xff] }
  0x43   : > { %v479_v42 = vadd.f32 %v1002_v5, %v408_v32  ;;  %v480_v43 = vadd.f32 %v1002_v5, %v409_v33  ;;  %v412_v46 = vmul.f32 %v878_v34, %v989_v1  ;;  %v413_v47 = vmul.f32 %v879_v35, %v989_v1  ;;  %v555_v34 = vld [vmem:[%s996_s27 + $0x1f0] sm:$0xff]  ;;  %v556_v35 = vld [vmem:[%s996_s27 + $0x1f8] sm:$0xff] }
  0x44   : > { %v605_v49 = vadd.f32 %v541_v30, %v477_v36  ;;  %v606_v50 = vadd.f32 %v542_v31, %v478_v37  ;;  %v481_v51 = vadd.f32 %v1002_v5, %v410_v40  ;;  %v482_v52 = vadd.f32 %v1002_v5, %v411_v41 }
  0x45   : > { %v607_v56 = vadd.f32 %v543_v38, %v479_v42  ;;  %v608_v57 = vadd.f32 %v544_v39, %v480_v43  ;;  %v483_v58 = vadd.f32 %v1002_v5, %v412_v46  ;;  %v484_v59 = vadd.f32 %v1002_v5, %v413_v47 }
  0x46   : > { %669 = vst [vmem:[%s1023_s6 + $0x180] sm:$0xff] %v605_v49  ;;  %670 = vst [vmem:[%s1023_s6 + $0x188] sm:$0xff] %v606_v50  ;;  %v609_v61 = vadd.f32 %v545_v44, %v481_v51  ;;  %v610_v62 = vadd.f32 %v546_v45, %v482_v52  ;;  %v882_v63 = vunpack.c.l.bf16 %v923_v48  ;;  %v883_v0 = vunpack.c.h.bf16 %v923_v48 }
  0x47   : > { %671 = vst [vmem:[%s1023_s6 + $0x190] sm:$0xff] %v607_v56  ;;  %672 = vst [vmem:[%s1023_s6 + $0x198] sm:$0xff] %v608_v57  ;;  %v611_v3 = vadd.f32 %v547_v53, %v483_v58  ;;  %v612_v4 = vadd.f32 %v548_v54, %v484_v59  ;;  %v886_v6 = vunpack.c.l.bf16 %v924_v55  ;;  %v887_v7 = vunpack.c.h.bf16 %v924_v55 }
  0x48   : > { %673 = vst [vmem:[%s1023_s6 + $0x1a0] sm:$0xff] %v609_v61  ;;  %674 = vst [vmem:[%s1023_s6 + $0x1a8] sm:$0xff] %v610_v62  ;;  %v414_v8 = vmul.f32 %v882_v63, %v989_v1  ;;  %v415_v9 = vmul.f32 %v883_v0, %v989_v1  ;;  %v890_v10 = vunpack.c.l.bf16 %v925_v60  ;;  %v891_v11 = vunpack.c.h.bf16 %v925_v60 }
  0x49   : > { %675 = vst [vmem:[%s1023_s6 + $0x1b0] sm:$0xff] %v611_v3  ;;  %676 = vst [vmem:[%s1023_s6 + $0x1b8] sm:$0xff] %v612_v4  ;;  %v416_v14 = vmul.f32 %v886_v6, %v989_v1  ;;  %v417_v15 = vmul.f32 %v887_v7, %v989_v1  ;;  %v894_v16 = vunpack.c.l.bf16 %v926_v2  ;;  %v895_v17 = vunpack.c.h.bf16 %v926_v2 }
  0x4a   : > { %v485_v18 = vadd.f32 %v1002_v5, %v414_v8  ;;  %v486_v19 = vadd.f32 %v1002_v5, %v415_v9  ;;  %v418_v22 = vmul.f32 %v890_v10, %v989_v1  ;;  %v419_v23 = vmul.f32 %v891_v11, %v989_v1 }
  0x4b   : > { %v487_v24 = vadd.f32 %v1002_v5, %v416_v14  ;;  %v488_v25 = vadd.f32 %v1002_v5, %v417_v15  ;;  %v420_v28 = vmul.f32 %v894_v16, %v989_v1  ;;  %v421_v29 = vmul.f32 %v895_v17, %v989_v1 }
  0x4c   : > { %v613_v30 = vadd.f32 %v549_v12, %v485_v18  ;;  %v614_v31 = vadd.f32 %v550_v13, %v486_v19  ;;  %v489_v32 = vadd.f32 %v1002_v5, %v418_v22  ;;  %v490_v33 = vadd.f32 %v1002_v5, %v419_v23 }
  0x4d   : > { %v615_v36 = vadd.f32 %v551_v20, %v487_v24  ;;  %v616_v37 = vadd.f32 %v552_v21, %v488_v25  ;;  %v491_v38 = vadd.f32 %v1002_v5, %v420_v28  ;;  %v492_v39 = vadd.f32 %v1002_v5, %v421_v29 }
  0x4e   : > { %677 = vst [vmem:[%s1023_s6 + $0x1c0] sm:$0xff] %v613_v30  ;;  %678 = vst [vmem:[%s1023_s6 + $0x1c8] sm:$0xff] %v614_v31  ;;  %v617_v1 = vadd.f32 %v553_v26, %v489_v32  ;;  %v618_v40 = vadd.f32 %v554_v27, %v490_v33 }
  0x4f   : > { %679 = vst [vmem:[%s1023_s6 + $0x1d0] sm:$0xff] %v615_v36  ;;  %680 = vst [vmem:[%s1023_s6 + $0x1d8] sm:$0xff] %v616_v37  ;;  %v619_v41 = vadd.f32 %v555_v34, %v491_v38  ;;  %v620_v42 = vadd.f32 %v556_v35, %v492_v39 }
  0x50   : > { %681 = vst [vmem:[%s1023_s6 + $0x1e0] sm:$0xff] %v617_v1  ;;  %682 = vst [vmem:[%s1023_s6 + $0x1e8] sm:$0xff] %v618_v40 }
  0x51   : > { %683 = vst [vmem:[%s1023_s6 + $0x1f0] sm:$0xff] %v619_v41  ;;  %684 = vst [vmem:[%s1023_s6 + $0x1f8] sm:$0xff] %v620_v42 }
  0x52 PF: > { %s14_s15 = sadd.s32 1, %s941_s15  }
  0x53   : > { %p11_p4 = scmp.ge.s32.totalorder %s14_s15, 5  }
  0x55   :  { %13 = sbr.rel (!%p11_p4) target bundleno = 1 (0x1), region = 69 }

// kernel: bottleneck_forward.6
= control target key start
LH: loop header
LB: loop body
LE: loop exit
PB: predicated region body
PF: predicated region fallthrough
CT: control target
= control target key end

     0   :  { %s2521_s18 = smov 0   ;;  %s3115_s0 = inlined_call_operand.vmem [shape: bf16[1536,128], index: 0, kind: input, shape index: {}]   ;;  %s3116_s1 = inlined_call_operand.vmem [shape: f32[1,128], index: 1, kind: input, shape index: {}]   ;;  %s3117_s2 = inlined_call_operand.vmem [shape: f32[1,128], index: 2, kind: input, shape index: {}]   ;;  %s3118_s3 = inlined_call_operand.vmem [shape: bf16[128,128], index: 3, kind: input, shape index: {}]   ;;  %s3119_s4 = inlined_call_operand.vmem [shape: bf16[1536,128], index: 4, kind: output, shape index: {0}]   ;;  %s3120_s5 = inlined_call_operand.vmem [shape: f32[3,2,128], index: 5, kind: output, shape index: {1}]  }
   0x1 LB: > { %s2527_s19 = sadd.s32 4294967295, %s2489_s18   ;;  %p1834_p0 = scmp.ge.s32.totalorder %s2489_s18, 1  ;;  %s2489_s18 = sphi %s2521_s18, %s16_s18  }
   0x2   : > { %p191_p1 = scmp.lt.s32.totalorder %s2489_s18, 4 }
   0x4   : > { %p192_p2 = pnand %p1834_p0, %p191_p1 }
   0x5   : > { %s1835_s22 = sshll.u32 (!%p192_p2), %s2527_s19, 6  ;;  %s1914_s23 = sshll.u32 (!%p192_p2), %s2527_s19, 9 }
   0x6   : > { %195 = sbr.rel (%p192_p2) target bundleno = 386 (0x182), region = 36  ;;  %p224_p3 = scmp.lt.s32.totalorder (!%p192_p2), %s1835_s22, 191 }
   0x7   : > { %p235_p4 = scmp.lt.s32.totalorder (!%p192_p2), %s2527_s19, 2 }
   0xb   : > { %v2475_v0 = vld [vmem:[%s3118_s3 + $0x38] sm:$0xff]   ;;  %v2476_v1 = vld [vmem:[%s3118_s3 + $0x30] sm:$0xff]   ;;  %s3122_s22 = smov (!%p224_p3, %s1835_s22), 191  ;;  %v2477_v2 = vld [vmem:[%s3118_s3 + $0x28] sm:$0xff]   ;;  %s3124_s19 = smov (!%p235_p4, %s2527_s19), 2 }
   0xc   : > { %2371 = vmatprep.subr.bf16.mxu0 %v2475_v0  ;;  %2451 = vmatprep.subr.bf16.mxu1 %v2475_v0  ;;  %s1836_s27 = sshll.u32 %s3122_s22, 2  ;;  %v2478_v3 = vld [vmem:[%s3118_s3 + $0x20] sm:$0xff]   ;;  %v2479_v13 = vld [vmem:[%s3118_s3 + $0x18] sm:$0xff]   ;;  %v2480_v22 = vld [vmem:[%s3118_s3 + $0x10] sm:$0xff]   ;;  %s1839_s22 = sshll.u32 %s3124_s19, 1 }
   0xd   : > { %2372 = vmatpush3.bf16.msra.mxu0 %v2475_v0  ;;  %2459 = vmatpush3.bf16.msra.mxu1 %v2475_v0  ;;  %s2549_s30 = scalar_lea.vmem %s3115_s0, %s1836_s27  ;;  %v2558_v5 = vld [vmem:[%s3116_s1] ss:$0 sm:$0xff]  ;;  %v2481_v31 = vld [vmem:[%s3118_s3 + $0x8] sm:$0xff]   ;;  %s2791_s26 = scalar_lea.vmem %s3119_s4, %s1836_s27 }
   0xe   : > { %2373 = vmatprep.subr.bf16.mxu0 %v2476_v1  ;;  %2452 = vmatprep.subr.bf16.mxu1 %v2476_v1  ;;  %v1982_v4 = vld [vmem:[%s2549_s30] sm:$0xff]   ;;  %v2269_v8 = vld [vmem:[%s2549_s30 + $0x8] sm:$0xff]   ;;  %v2270_v9 = vld [vmem:[%s2549_s30 + $0x10] sm:$0xff]   ;;  %s238_s29 = scalar_lea.vmem %s3120_s5, %s1839_s22 }
   0xf   : > { %v1983_v6 = vunpack.c.l.bf16 %v1982_v4  ;;  %v1984_v7 = vunpack.c.h.bf16 %v1982_v4  ;;  %v2565_v10 = vld [vmem:[%s3117_s2] ss:$0 sm:$0xff]  ;;  %v1987_v14 = vunpack.c.l.bf16 %v2269_v8  ;;  %v1988_v15 = vunpack.c.h.bf16 %v2269_v8  ;;  %v2271_v26 = vld [vmem:[%s2549_s30 + $0x18] sm:$0xff]   ;;  %v2273_v38 = vld [vmem:[%s2549_s30 + $0x28] sm:$0xff]  }
  0x10   : > { %v1991_v16 = vunpack.c.l.bf16 %v2270_v9  ;;  %v1992_v19 = vunpack.c.h.bf16 %v2270_v9  ;;  %v2272_v29 = vld [vmem:[%s2549_s30 + $0x20] sm:$0xff]   ;;  %v1995_v30 = vunpack.c.l.bf16 %v2271_v26  ;;  %v1996_v35 = vunpack.c.h.bf16 %v2271_v26  ;;  %v2274_v41 = vld [vmem:[%s2549_s30 + $0x30] sm:$0xff]   ;;  %v2275_v42 = vld [vmem:[%s2549_s30 + $0x38] sm:$0xff]  }
  0x11   : > { %2374 = vmatpush3.bf16.msra.mxu0 %v2476_v1  ;;  %2460 = vmatpush3.bf16.msra.mxu1 %v2476_v1  ;;  %v375_v11 = vmul.f32 %v1983_v6, %v2558_v5  ;;  %v376_v12 = vmul.f32 %v1984_v7, %v2558_v5  ;;  %v377_v23 = vmul.f32 %v1987_v14, %v2558_v5  ;;  %v1999_v37 = vunpack.c.l.bf16 %v2272_v29  ;;  %v2482_v43 = vld [vmem:[%s3118_s3] sm:$0xff]   ;;  %v2277_v63 = vld [vmem:[%s2549_s30 + $0x48] sm:$0xff]   ;;  %v2278_v4 = vld [vmem:[%s2549_s30 + $0x50] sm:$0xff]  }
  0x12   : > { %2375 = vmatprep.subr.bf16.mxu0 %v2477_v2  ;;  %2453 = vmatprep.subr.bf16.mxu1 %v2477_v2  ;;  %v378_v24 = vmul.f32 %v1988_v15, %v2558_v5  ;;  %v379_v25 = vmul.f32 %v1991_v16, %v2558_v5  ;;  %v380_v28 = vmul.f32 %v1992_v19, %v2558_v5  ;;  %v2000_v40 = vunpack.c.h.bf16 %v2272_v29  ;;  %v2276_v48 = vld [vmem:[%s2549_s30 + $0x40] sm:$0xff]  }
  0x13   : > { %v446_v17 = vadd.f32 %v2565_v10, %v375_v11  ;;  %v447_v18 = vadd.f32 %v2565_v10, %v376_v12  ;;  %v448_v32 = vadd.f32 %v2565_v10, %v377_v23  ;;  %v381_v39 = vmul.f32 %v1995_v30, %v2558_v5  ;;  %v2279_v23 = vld [vmem:[%s2549_s30 + $0x58] sm:$0xff]  }
  0x14   : > { %v449_v33 = vadd.f32 %v2565_v10, %v378_v24  ;;  %v450_v34 = vadd.f32 %v2565_v10, %v379_v25  ;;  %v451_v36 = vadd.f32 %v2565_v10, %v380_v28  ;;  %v382_v47 = vmul.f32 %v1996_v35, %v2558_v5 }
  0x15   : > { %2376 = vmatpush3.bf16.msra.mxu0 %v2477_v2  ;;  %2461 = vmatpush3.bf16.msra.mxu1 %v2477_v2  ;;  %v510_v20 = vmax.f32 %v446_v17, 0.0  ;;  %v511_v21 = vmax.f32 %v447_v18, 0.0  ;;  %v512_v44 = vmax.f32 %v448_v32, 0.0  ;;  %v383_v50 = vmul.f32 %v1999_v37, %v2558_v5 }
  0x16   : > { %2377 = vmatprep.subr.bf16.mxu0 %v2478_v3  ;;  %2454 = vmatprep.subr.bf16.mxu1 %v2478_v3  ;;  %v513_v45 = vmax.f32 %v449_v33, 0.0  ;;  %v514_v46 = vmax.f32 %v450_v34, 0.0  ;;  %v515_v49 = vmax.f32 %v451_v36, 0.0  ;;  %v2003_v51 = vunpack.c.l.bf16 %v2273_v38 }
  0x17   : > { %v574_v27 = vpack.c.bf16 %v511_v21, %v510_v20  ;;  %v2004_v52 = vunpack.c.h.bf16 %v2273_v38  ;;  %v2007_v53 = vunpack.c.l.bf16 %v2274_v41  ;;  %v2008_v54 = vunpack.c.h.bf16 %v2274_v41 }
  0x18   : > { %v2011_v55 = vunpack.c.l.bf16 %v2275_v42  ;;  %v2012_v56 = vunpack.c.h.bf16 %v2275_v42  ;;  %v384_v57 = vmul.f32 %v2000_v40, %v2558_v5  ;;  %v2015_v58 = vunpack.c.l.bf16 %v2276_v48 }
  0x19   : > { %2378 = vmatpush3.bf16.msra.mxu0 %v2478_v3  ;;  %2462 = vmatpush3.bf16.msra.mxu1 %v2478_v3  ;;  %v2016_v59 = vunpack.c.h.bf16 %v2276_v48  ;;  %v575_v60 = vpack.c.bf16 %v513_v45, %v512_v44  ;;  %v452_v61 = vadd.f32 %v2565_v10, %v381_v39  ;;  %v453_v62 = vadd.f32 %v2565_v10, %v382_v47  ;;  %v2284_v44 = vld [vmem:[%s2549_s30 + $0x80] sm:$0xff]  }
  0x1a   : > { %2379 = vmatprep.subr.bf16.mxu0 %v2479_v13  ;;  %2455 = vmatprep.subr.bf16.mxu1 %v2479_v13  ;;  %v576_v0 = vpack.c.bf16 %v515_v49, %v514_v46  ;;  %v454_v1 = vadd.f32 %v2565_v10, %v383_v50  ;;  %v385_v2 = vmul.f32 %v2003_v51, %v2558_v5  ;;  %v2019_v14 = vunpack.c.l.bf16 %v2277_v63 }
  0x1b   : > { %2387 = vmatprep.mubr.bf16.mxu0 %v574_v27  ;;  %v386_v3 = vmul.f32 %v2004_v52, %v2558_v5  ;;  %v387_v6 = vmul.f32 %v2007_v53, %v2558_v5  ;;  %v388_v7 = vmul.f32 %v2008_v54, %v2558_v5  ;;  %v389_v8 = vmul.f32 %v2011_v55, %v2558_v5  ;;  %v2636_v52 = vld [vmem:[%s2549_s30 + $0x60] sm:$0xff]  }
  0x1c   : > { %v390_v9 = vmul.f32 %v2012_v56, %v2558_v5  ;;  %v455_v11 = vadd.f32 %v2565_v10, %v384_v57  ;;  %v391_v12 = vmul.f32 %v2015_v58, %v2558_v5  ;;  %v516_v15 = vmax.f32 %v452_v61, 0.0 }
  0x1d   : > { %2380 = vmatpush3.bf16.msra.mxu0 %v2479_v13  ;;  %2463 = vmatpush3.bf16.msra.mxu1 %v2479_v13  ;;  %v392_v13 = vmul.f32 %v2016_v59, %v2558_v5  ;;  %v517_v16 = vmax.f32 %v453_v62, 0.0  ;;  %v2020_v17 = vunpack.c.h.bf16 %v2277_v63  ;;  %v2023_v18 = vunpack.c.l.bf16 %v2278_v4  ;;  %v2285_v59 = vld [vmem:[%s2549_s30 + $0x88] sm:$0xff]  }
  0x1e   : > { %2381 = vmatprep.subr.bf16.mxu0 %v2480_v22  ;;  %2456 = vmatprep.subr.bf16.mxu1 %v2480_v22  ;;  %v518_v19 = vmax.f32 %v454_v1, 0.0  ;;  %v456_v20 = vadd.f32 %v2565_v10, %v385_v2  ;;  %v457_v21 = vadd.f32 %v2565_v10, %v386_v3  ;;  %v458_v24 = vadd.f32 %v2565_v10, %v387_v6 }
  0x1f   : > { %v459_v25 = vadd.f32 %v2565_v10, %v388_v7  ;;  %v460_v26 = vadd.f32 %v2565_v10, %v389_v8  ;;  %v461_v27 = vadd.f32 %v2565_v10, %v390_v9  ;;  %v519_v28 = vmax.f32 %v455_v11, 0.0  ;;  %v2287_v11 = vld [vmem:[%s2549_s30 + $0x98] sm:$0xff]  }
  0x20   : > { %v462_v29 = vadd.f32 %v2565_v10, %v391_v12  ;;  %v463_v30 = vadd.f32 %v2565_v10, %v392_v13  ;;  %v577_v32 = vpack.c.bf16 %v517_v16, %v516_v15  ;;  %v394_v33 = vmul.f32 %v2020_v17, %v2558_v5 }
  0x21   : > { %2382 = vmatpush3.bf16.msra.mxu0 %v2480_v22  ;;  %2464 = vmatpush3.bf16.msra.mxu1 %v2480_v22  ;;  %v2024_v22 = vunpack.c.h.bf16 %v2278_v4  ;;  %v395_v34 = vmul.f32 %v2023_v18, %v2558_v5  ;;  %v2027_v35 = vunpack.c.l.bf16 %v2279_v23  ;;  %v520_v36 = vmax.f32 %v456_v20, 0.0 }
  0x22   : > { %2383 = vmatprep.subr.bf16.mxu0 %v2481_v31  ;;  %2457 = vmatprep.subr.bf16.mxu1 %v2481_v31  ;;  %v521_v37 = vmax.f32 %v457_v21, 0.0  ;;  %v2028_v39 = vunpack.c.h.bf16 %v2279_v23  ;;  %v522_v40 = vmax.f32 %v458_v24, 0.0  ;;  %v523_v41 = vmax.f32 %v459_v25, 0.0  ;;  %v2288_v24 = vld [vmem:[%s2549_s30 + $0xa0] sm:$0xff]  }
  0x23   : > { %v396_v38 = vmul.f32 %v2024_v22, %v2558_v5  ;;  %v524_v42 = vmax.f32 %v460_v26, 0.0  ;;  %v578_v45 = vpack.c.bf16 %v519_v28, %v518_v19  ;;  %v526_v46 = vmax.f32 %v462_v29, 0.0 }
  0x24   : > { %v527_v47 = vmax.f32 %v463_v30, 0.0  ;;  %v465_v49 = vadd.f32 %v2565_v10, %v394_v33  ;;  %v2632_v50 = vadd.f32 %v2565_v10, %v395_v34  ;;  %v397_v51 = vmul.f32 %v2027_v35, %v2558_v5  ;;  %v2289_v33 = vld [vmem:[%s2549_s30 + $0xa8] sm:$0xff]  }
  0x25   : > { %2384 = vmatpush3.bf16.msra.mxu0 %v2481_v31  ;;  %2465 = vmatpush3.bf16.msra.mxu1 %v2481_v31  ;;  %v393_v31 = vmul.f32 %v2019_v14, %v2558_v5  ;;  %v2639_v53 = vadd.f32 %v2565_v10, %v396_v38  ;;  %v398_v54 = vmul.f32 %v2028_v39, %v2558_v5  ;;  %v2047_v55 = vunpack.c.l.bf16 %v2284_v44 }
  0x26   : > { %2385 = vmatprep.subr.bf16.mxu0 %v2482_v43  ;;  %2458 = vmatprep.subr.bf16.mxu1 %v2482_v43  ;;  %v579_v56 = vpack.c.bf16 %v521_v37, %v520_v36  ;;  %v580_v57 = vpack.c.bf16 %v523_v41, %v522_v40  ;;  %v2031_v62 = vunpack.c.l.bf16 %v2636_v52  ;;  %v2048_v63 = vunpack.c.h.bf16 %v2284_v44 }
  0x27   : > { %v464_v48 = vadd.f32 %v2565_v10, %v393_v31  ;;  %v529_v1 = vmax.f32 %v465_v49, 0.0  ;;  %v530_v2 = vmax.f32 %v2632_v50, 0.0  ;;  %v2651_v3 = vadd.f32 %v2565_v10, %v397_v51 }
  0x28   : > { %v407_v4 = vmul.f32 %v2047_v55, %v2558_v5  ;;  %v531_v6 = vmax.f32 %v2639_v53, 0.0  ;;  %v2656_v7 = vadd.f32 %v2565_v10, %v398_v54  ;;  %v408_v8 = vmul.f32 %v2048_v63, %v2558_v5 }
  0x29   : > { %2386 = vmatpush3.bf16.msra.mxu0 %v2482_v43  ;;  %2466 = vmatpush3.bf16.msra.mxu1 %v2482_v43  ;;  %v525_v43 = vmax.f32 %v461_v27, 0.0  ;;  %v528_v61 = vmax.f32 %v464_v48, 0.0  ;;  %v2051_v9 = vunpack.c.l.bf16 %v2285_v59  ;;  %v2032_v12 = vunpack.c.h.bf16 %v2636_v52 }
  0x2a   : > { %v478_v13 = vadd.f32 %v2565_v10, %v407_v4  ;;  %v2052_v14 = vunpack.c.h.bf16 %v2285_v59  ;;  %v2663_v16 = vmul.f32 %v2031_v62, %v2558_v5  ;;  %v479_v17 = vadd.f32 %v2565_v10, %v408_v8 }
  0x2b   : > { %v2642_v58 = vpack.c.bf16 %v525_v43, %v524_v42  ;;  %v409_v18 = vmul.f32 %v2051_v9, %v2558_v5  ;;  %v2059_v23 = vunpack.c.l.bf16 %v2287_v11  ;;  %v2670_v25 = vpack.c.bf16 %v529_v1, %v528_v61  ;;  %v2291_v1 = vld [vmem:[%s2549_s30 + $0xb8] sm:$0xff]  }
  0x2c   : > { %2388 = vmatmul.mubr.bf16.vlgmr.msra.gmra.mxu0 %v575_v60  ;;  %v2645_v60 = vpack.c.bf16 %v527_v47, %v526_v46  ;;  %v542_v20 = vmax.f32 %v478_v13, 0.0  ;;  %v410_v21 = vmul.f32 %v2052_v14, %v2558_v5  ;;  %v543_v26 = vmax.f32 %v479_v17, 0.0  ;;  %v2290_v46 = vld [vmem:[%s2549_s30 + $0xb0] sm:$0xff]   ;;  %v2281_v47 = vld [vmem:[%s2549_s30 + $0x68] sm:$0xff]  }
  0x2d   : > { %2391 = vmatprep.mubr.bf16.mxu0 %v576_v0  ;;  %v2286_v0 = vld [vmem:[%s2549_s30 + $0x90] sm:$0xff]   ;;  %v480_v27 = vadd.f32 %v2565_v10, %v409_v18  ;;  %v2060_v31 = vunpack.c.h.bf16 %v2287_v11  ;;  %v2063_v37 = vunpack.c.l.bf16 %v2288_v24  ;;  %v2064_v43 = vunpack.c.h.bf16 %v2288_v24  ;;  %v2292_v18 = vld [vmem:[%s2549_s30 + $0xc0] sm:$0xff]  }
  0x2e   : > { %v2055_v15 = vunpack.c.l.bf16 %v2286_v0  ;;  %v2056_v19 = vunpack.c.h.bf16 %v2286_v0  ;;  %v481_v29 = vadd.f32 %v2565_v10, %v410_v21  ;;  %v590_v34 = vpack.c.bf16 %v543_v26, %v542_v20 }
  0x2f   : > { %v544_v35 = vmax.f32 %v480_v27, 0.0  ;;  %v414_v40 = vmul.f32 %v2060_v31, %v2558_v5  ;;  %v415_v44 = vmul.f32 %v2063_v37, %v2558_v5  ;;  %v2068_v54 = vunpack.c.h.bf16 %v2289_v33 }
  0x30   : > { %v411_v22 = vmul.f32 %v2055_v15, %v2558_v5  ;;  %v412_v28 = vmul.f32 %v2056_v19, %v2558_v5  ;;  %v545_v38 = vmax.f32 %v481_v29, 0.0  ;;  %2419 = vmatprep.mubr.bf16.mxu1 %v590_v34  ;;  %v2071_v63 = vunpack.c.l.bf16 %v2290_v46  ;;  %v2282_v19 = vld [vmem:[%s2549_s30 + $0x70] sm:$0xff]  }
  0x31   : > { %v485_v49 = vadd.f32 %v2565_v10, %v414_v40  ;;  %v418_v62 = vmul.f32 %v2068_v54, %v2558_v5  ;;  %v2072_v0 = vunpack.c.h.bf16 %v2290_v46  ;;  %v532_v4 = vmax.f32 %v2651_v3, 0.0  ;;  %v2294_v40 = vld [vmem:[%s2549_s30 + $0xd0] sm:$0xff]  }
  0x32   : > { %v482_v30 = vadd.f32 %v2565_v10, %v411_v22  ;;  %v483_v36 = vadd.f32 %v2565_v10, %v412_v28  ;;  %v591_v48 = vpack.c.bf16 %v545_v38, %v544_v35  ;;  %v2035_v8 = vunpack.c.l.bf16 %v2281_v47 }
  0x33   : > { %v549_v61 = vmax.f32 %v485_v49, 0.0  ;;  %v533_v13 = vmax.f32 %v2656_v7, 0.0  ;;  %v2036_v14 = vunpack.c.h.bf16 %v2281_v47  ;;  %v419_v15 = vmul.f32 %v2071_v63, %v2558_v5 }
  0x34   : > { %2392 = vmatmul.mubr.bf16.gmra.mxu0 %v577_v32  ;;  %v413_v32 = vmul.f32 %v2059_v23, %v2558_v5  ;;  %v546_v39 = vmax.f32 %v482_v30, 0.0  ;;  %v547_v42 = vmax.f32 %v483_v36, 0.0  ;;  %2420 = vmatmul.mubr.bf16.vlgmr.msra.gmra.mxu1 %v591_v48  ;;  %v420_v17 = vmul.f32 %v2072_v0, %v2558_v5 }
  0x35   : > { %2395 = vmatprep.mubr.bf16.mxu0 %v578_v45  ;;  %v2067_v45 = vunpack.c.l.bf16 %v2289_v33  ;;  %v400_v3 = vmul.f32 %v2032_v12, %v2558_v5  ;;  %v2075_v21 = vunpack.c.l.bf16 %v2291_v1  ;;  %v2076_v22 = vunpack.c.h.bf16 %v2291_v1  ;;  %v2283_v33 = vld [vmem:[%s2549_s30 + $0x78] sm:$0xff]  }
  0x36   : > { %v484_v41 = vadd.f32 %v2565_v10, %v413_v32  ;;  %v592_v55 = vpack.c.bf16 %v547_v42, %v546_v39  ;;  %v489_v23 = vadd.f32 %v2565_v10, %v418_v62  ;;  %v490_v24 = vadd.f32 %v2565_v10, %v419_v15  ;;  %v2295_v15 = vld [vmem:[%s2549_s30 + $0xd8] sm:$0xff]  }
  0x37   : > { %v417_v59 = vmul.f32 %v2067_v45, %v2558_v5  ;;  %v491_v27 = vadd.f32 %v2565_v10, %v420_v17  ;;  %v2080_v28 = vunpack.c.h.bf16 %v2292_v18  ;;  %v584_v52 = vpack.c.bf16 %v531_v6, %v530_v2  ;;  %v2293_v6 = vld [vmem:[%s2549_s30 + $0xc8] sm:$0xff]  }
  0x38   : > { %v548_v51 = vmax.f32 %v484_v41, 0.0  ;;  %2423 = vmatprep.mubr.bf16.mxu1 %v592_v55  ;;  %v470_v12 = vadd.f32 %v2565_v10, %v2663_v16  ;;  %v2039_v29 = vunpack.c.l.bf16 %v2282_v19  ;;  %v2040_v30 = vunpack.c.h.bf16 %v2282_v19 }
  0x39   : > { %v488_v7 = vadd.f32 %v2565_v10, %v417_v59  ;;  %v471_v31 = vadd.f32 %v2565_v10, %v400_v3  ;;  %v401_v32 = vmul.f32 %v2035_v8, %v2558_v5  ;;  %v421_v34 = vmul.f32 %v2075_v21, %v2558_v5 }
  0x3a   : > { %v422_v35 = vmul.f32 %v2076_v22, %v2558_v5  ;;  %v585_v36 = vpack.c.bf16 %v533_v13, %v532_v4  ;;  %v402_v50 = vmul.f32 %v2036_v14, %v2558_v5  ;;  %v553_v2 = vmax.f32 %v489_v23, 0.0 }
  0x3b   : > { %v552_v53 = vmax.f32 %v488_v7, 0.0  ;;  %v554_v16 = vmax.f32 %v490_v24, 0.0  ;;  %v555_v37 = vmax.f32 %v491_v27, 0.0  ;;  %v424_v39 = vmul.f32 %v2080_v28, %v2558_v5 }
  0x3c   : > { %2396 = vmatmul.mubr.bf16.gmra.mxu0 %v579_v56  ;;  %v416_v56 = vmul.f32 %v2064_v43, %v2558_v5  ;;  %v534_v41 = vmax.f32 %v470_v12, 0.0  ;;  %v403_v42 = vmul.f32 %v2039_v29, %v2558_v5  ;;  %v404_v43 = vmul.f32 %v2040_v30, %v2558_v5 }
  0x3d   : > { %2399 = vmatprep.mubr.bf16.mxu0 %v580_v57  ;;  %v486_v57 = vadd.f32 %v2565_v10, %v415_v44  ;;  %v2043_v44 = vunpack.c.l.bf16 %v2283_v33  ;;  %v535_v45 = vmax.f32 %v471_v31, 0.0  ;;  %v492_v46 = vadd.f32 %v2565_v10, %v421_v34 }
  0x3e   : > { %v487_v9 = vadd.f32 %v2565_v10, %v416_v56  ;;  %v493_v47 = vadd.f32 %v2565_v10, %v422_v35  ;;  %v2083_v48 = vunpack.c.l.bf16 %v2293_v6  ;;  %v595_v49 = vpack.c.bf16 %v553_v2, %v552_v53 }
  0x3f   : > { %v550_v11 = vmax.f32 %v486_v57, 0.0  ;;  %v2087_v54 = vunpack.c.l.bf16 %v2294_v40  ;;  %v2088_v55 = vunpack.c.h.bf16 %v2294_v40  ;;  %v472_v56 = vadd.f32 %v2565_v10, %v401_v32 }
  0x40   : > { %v551_v20 = vmax.f32 %v487_v9, 0.0  ;;  %v495_v59 = vadd.f32 %v2565_v10, %v424_v39  ;;  %v474_v62 = vadd.f32 %v2565_v10, %v403_v42  ;;  %v475_v63 = vadd.f32 %v2565_v10, %v404_v43 }
  0x41   : > { %v2044_v0 = vunpack.c.h.bf16 %v2283_v33  ;;  %v586_v1 = vpack.c.bf16 %v535_v45, %v534_v41  ;;  %v556_v4 = vmax.f32 %v492_v46, 0.0  ;;  %v557_v8 = vmax.f32 %v493_v47, 0.0  ;;  %v2298_v41 = vld [vmem:[%s2549_s30 + $0xf0] sm:$0xff]  }
  0x42   : > { %v594_v26 = vpack.c.bf16 %v551_v20, %v550_v11  ;;  %v425_v9 = vmul.f32 %v2083_v48, %v2558_v5  ;;  %v427_v13 = vmul.f32 %v2087_v54, %v2558_v5  ;;  %v428_v14 = vmul.f32 %v2088_v55, %v2558_v5 }
  0x43   : > { %v405_v17 = vmul.f32 %v2043_v44, %v2558_v5  ;;  %v559_v3 = vmax.f32 %v495_v59, 0.0  ;;  %v536_v19 = vmax.f32 %v472_v56, 0.0  ;;  %v538_v21 = vmax.f32 %v474_v62, 0.0 }
  0x44   : > { %2400 = vmatmul.mubr.bf16.gmra.mxu0 %v2642_v58  ;;  %v593_v58 = vpack.c.bf16 %v549_v61, %v548_v51  ;;  %v2084_v51 = vunpack.c.h.bf16 %v2293_v6  ;;  %v473_v61 = vadd.f32 %v2565_v10, %v402_v50  ;;  %v406_v22 = vmul.f32 %v2044_v0, %v2558_v5 }
  0x45   : > { %2403 = vmatprep.mubr.bf16.mxu0 %v2645_v60  ;;  %v2079_v60 = vunpack.c.l.bf16 %v2292_v18  ;;  %v539_v7 = vmax.f32 %v475_v63, 0.0  ;;  %v597_v23 = vpack.c.bf16 %v557_v8, %v556_v4  ;;  %v496_v24 = vadd.f32 %v2565_v10, %v425_v9 }
  0x46   : > { %2424 = vmatmul.mubr.bf16.gmra.mxu1 %v593_v58  ;;  %v426_v11 = vmul.f32 %v2084_v51, %v2558_v5  ;;  %v537_v20 = vmax.f32 %v473_v61, 0.0  ;;  %v2296_v58 = vld [vmem:[%s2549_s30 + $0xe0] sm:$0xff]   ;;  %v499_v28 = vadd.f32 %v2565_v10, %v428_v14  ;;  %v476_v32 = vadd.f32 %v2565_v10, %v405_v17 }
  0x47   : > { %2427 = vmatprep.mubr.bf16.mxu1 %v594_v26  ;;  %v423_v38 = vmul.f32 %v2079_v60, %v2558_v5  ;;  %v2091_v26 = vunpack.c.l.bf16 %v2295_v15  ;;  %v498_v60 = vadd.f32 %v2565_v10, %v427_v13  ;;  %v2095_v29 = vunpack.c.l.bf16 %v2296_v58 }
  0x48   : > { %v497_v27 = vadd.f32 %v2565_v10, %v426_v11  ;;  %v2096_v30 = vunpack.c.h.bf16 %v2296_v58  ;;  %v587_v31 = vpack.c.bf16 %v537_v20, %v536_v19  ;;  %v477_v33 = vadd.f32 %v2565_v10, %v406_v22 }
  0x49   : > { %v494_v57 = vadd.f32 %v2565_v10, %v423_v38  ;;  %v588_v34 = vpack.c.bf16 %v539_v7, %v538_v21  ;;  %v560_v35 = vmax.f32 %v496_v24, 0.0  ;;  %v562_v53 = vmax.f32 %v498_v60, 0.0 }
  0x4a   : > { %v561_v50 = vmax.f32 %v497_v27, 0.0  ;;  %v563_v2 = vmax.f32 %v499_v28, 0.0  ;;  %v432_v38 = vmul.f32 %v2096_v30, %v2558_v5  ;;  %v540_v39 = vmax.f32 %v476_v32, 0.0 }
  0x4b   : > { %v558_v18 = vmax.f32 %v494_v57, 0.0  ;;  %v541_v40 = vmax.f32 %v477_v33, 0.0  ;;  %v2103_v51 = vunpack.c.l.bf16 %v2298_v41  ;;  %v2104_v54 = vunpack.c.h.bf16 %v2298_v41 }
  0x4c   : > { %2404 = vmatmul.mubr.bf16.gmra.mxu0 %v2670_v25  ;;  %v596_v25 = vpack.c.bf16 %v555_v37, %v554_v16  ;;  %v2297_v16 = vld [vmem:[%s2549_s30 + $0xe8] sm:$0xff]   ;;  %v431_v37 = vmul.f32 %v2095_v29, %v2558_v5  ;;  %v599_v44 = vpack.c.bf16 %v561_v50, %v560_v35  ;;  %v600_v45 = vpack.c.bf16 %v563_v2, %v562_v53 }
  0x4d   : > { %2407 = vmatprep.mubr.bf16.mxu0 %v584_v52  ;;  %v2092_v52 = vunpack.c.h.bf16 %v2295_v15  ;;  %v598_v12 = vpack.c.bf16 %v559_v3, %v558_v18  ;;  %v2099_v43 = vunpack.c.l.bf16 %v2297_v16  ;;  %v2100_v47 = vunpack.c.h.bf16 %v2297_v16 }
  0x4e   : > { %2428 = vmatmul.mubr.bf16.gmra.mxu1 %v595_v49  ;;  %v502_v48 = vadd.f32 %v2565_v10, %v431_v37  ;;  %v503_v49 = vadd.f32 %v2565_v10, %v432_v38  ;;  %v589_v55 = vpack.c.bf16 %v541_v40, %v540_v39  ;;  %v435_v63 = vmul.f32 %v2103_v51, %v2558_v5 }
  0x4f   : > { %2431 = vmatprep.mubr.bf16.mxu1 %v596_v25  ;;  %v430_v6 = vmul.f32 %v2092_v52, %v2558_v5  ;;  %v433_v56 = vmul.f32 %v2099_v43, %v2558_v5  ;;  %v434_v59 = vmul.f32 %v2100_v47, %v2558_v5  ;;  %v436_v0 = vmul.f32 %v2104_v54, %v2558_v5 }
  0x50   : > { %v566_v61 = vmax.f32 %v502_v48, 0.0  ;;  %v567_v62 = vmax.f32 %v503_v49, 0.0  ;;  %v506_v15 = vadd.f32 %v2565_v10, %v435_v63  ;;  %v1279_v28 = vlaneseq }
  0x51   : > { %v501_v46 = vadd.f32 %v2565_v10, %v430_v6  ;;  %v504_v4 = vadd.f32 %v2565_v10, %v433_v56  ;;  %v505_v9 = vadd.f32 %v2565_v10, %v434_v59  ;;  %v507_v17 = vadd.f32 %v2565_v10, %v436_v0 }
  0x52   : > { %v602_v14 = vpack.c.bf16 %v567_v62, %v566_v61  ;;  %v570_v21 = vmax.f32 %v506_v15, 0.0  ;;  %v2770_v52 = vshrl.u32 %v1279_v28, 7  ;;  %v2775_v29 = vstv %s1914_s23 }
  0x53   : > { %v565_v57 = vmax.f32 %v501_v46, 0.0  ;;  %v568_v18 = vmax.f32 %v504_v4, 0.0  ;;  %v569_v3 = vmax.f32 %v505_v9, 0.0  ;;  %v571_v22 = vmax.f32 %v507_v17, 0.0 }
  0x54   : > { %2408 = vmatmul.mubr.bf16.gmra.mxu0 %v585_v36  ;;  %v429_v36 = vmul.f32 %v2091_v26, %v2558_v5  ;;  %v1283_v30 = vadd.s32 24, %v2770_v52  ;;  %v1286_v50 = vadd.s32 48, %v2770_v52  ;;  %v1285_v6 = vadd.s32 40, %v2770_v52 }
  0x55   : > { %2411 = vmatprep.mubr.bf16.mxu0 %v586_v1  ;;  %v2299_v1 = vld [vmem:[%s2549_s30 + $0xf8] sm:$0xff]   ;;  %v603_v58 = vpack.c.bf16 %v569_v3, %v568_v18  ;;  %v604_v24 = vpack.c.bf16 %v571_v22, %v570_v21  ;;  %v1287_v38 = vadd.s32 56, %v2770_v52  ;;  %v1288_v41 = vadd.s32 64, %v2770_v52 }
  0x56   : > { %2432 = vmatmul.mubr.bf16.gmra.mxu1 %v597_v23  ;;  %v500_v42 = vadd.f32 %v2565_v10, %v429_v36  ;;  %v2107_v11 = vunpack.c.l.bf16 %v2299_v1  ;;  %v2108_v13 = vunpack.c.h.bf16 %v2299_v1  ;;  %v1349_v36 = vadd.s32 %v2775_v29, %v1283_v30 }
  0x57   : > { %2435 = vmatprep.mubr.bf16.mxu1 %v598_v12  ;;  %v1281_v12 = vadd.s32 8, %v2770_v52  ;;  %v1352_v40 = vadd.s32 %v2775_v29, %v1286_v50  ;;  %v1351_v49 = vadd.s32 %v2775_v29, %v1285_v6  ;;  %v1353_v54 = vadd.s32 %v2775_v29, %v1287_v38 }
  0x58   : > { %v564_v25 = vmax.f32 %v500_v42, 0.0  ;;  %v437_v19 = vmul.f32 %v2107_v11, %v2558_v5  ;;  %v438_v20 = vmul.f32 %v2108_v13, %v2558_v5  ;;  %v1282_v5 = vadd.s32 16, %v2770_v52 }
  0x59   : > { %vm1413_vm3 = vcmp.lt.s32.totalorder %v1349_v36, 1280  ;;  %v1354_v61 = vadd.s32 %v2775_v29, %v1288_v41  ;;  %vm1416_vm5 = vcmp.lt.s32.totalorder %v1352_v40, 1280  ;;  %v1289_v63 = vadd.s32 72, %v2770_v52 }
  0x5a   : > { %v601_v8 = vpack.c.bf16 %v565_v57, %v564_v25  ;;  %v508_v7 = vadd.f32 %v2565_v10, %v437_v19  ;;  %v509_v23 = vadd.f32 %v2565_v10, %v438_v20  ;;  %v1346_v10 = vadd.s32 %v2775_v29, %v2770_v52 }
  0x5b   : > { %v1348_v33 = vadd.s32 %v2775_v29, %v1282_v5  ;;  %vm1415_vm6 = vcmp.lt.s32.totalorder %v1351_v49, 1280  ;;  %vm1417_vm7 = vcmp.lt.s32.totalorder %v1353_v54, 1280  ;;  %v1291_v13 = vadd.s32 88, %v2770_v52 }
  0x5c   : > { %2412 = vmatmul.mubr.bf16.gmra.mxu0 %v587_v31  ;;  %v572_v26 = vmax.f32 %v508_v7, 0.0  ;;  %v573_v27 = vmax.f32 %v509_v23, 0.0  ;;  %v1284_v31 = vadd.s32 32, %v2770_v52  ;;  %vm1410_vm0 = vcmp.lt.s32.totalorder %v1346_v10, 1280 }
  0x5d   : > { %2415 = vmatprep.mubr.bf16.mxu0 %v588_v34  ;;  %v1347_v34 = vadd.s32 %v2775_v29, %v1281_v12  ;;  %vm1412_vm1 = vcmp.lt.s32.totalorder %v1348_v33, 1280  ;;  %vm1418_vm8 = vcmp.lt.s32.totalorder %v1354_v61, 1280  ;;  %v1355_v21 = vadd.s32 %v2775_v29, %v1289_v63 }
  0x5e   : > { %2436 = vmatmul.mubr.bf16.gmra.mxu1 %v599_v44  ;;  %v605_v60 = vpack.c.bf16 %v573_v27, %v572_v26  ;;  %v1350_v53 = vadd.s32 %v2775_v29, %v1284_v31  ;;  %v1357_v27 = vadd.s32 %v2775_v29, %v1291_v13  ;;  %v1295_v30 = vadd.s32 120, %v2770_v52 }
  0x5f   : > { %2439 = vmatprep.mubr.bf16.mxu1 %v600_v45  ;;  %vm1411_vm2 = vcmp.lt.s32.totalorder %v1347_v34, 1280  ;;  %vm1419_vm10 = vcmp.lt.s32.totalorder %v1355_v21, 1280  ;;  %v1296_v6 = vadd.s32 128, %v2770_v52  ;;  %v1297_v13 = vadd.s32 136, %v2770_v52 }
  0x60   : > { %vm1414_vm4 = vcmp.lt.s32.totalorder %v1350_v53, 1280  ;;  %vm1421_vm11 = vcmp.lt.s32.totalorder %v1357_v27, 1280  ;;  %v1361_v40 = vadd.s32 %v2775_v29, %v1295_v30 }
  0x62   : > { %vm1425_vm14 = vcmp.lt.s32.totalorder %v1361_v40, 1280 }
  0x64   : > { %2416 = vmatmul.mubr.bf16.gmra.mxu0 %v589_v55  ;;  %v1290_v55 = vadd.s32 80, %v2770_v52 }
  0x66   : > { %2440 = vmatmul.mubr.bf16.gmra.mxu1 %v601_v8  ;;  %v1356_v11 = vadd.s32 %v2775_v29, %v1290_v55  ;;  %v1298_v55 = vadd.s32 144, %v2770_v52 }
  0x67   : > { %2443 = vmatprep.mubr.bf16.mxu1 %v602_v14 }
  0x68   : > { %vm1420_vm9 = vcmp.lt.s32.totalorder %v1356_v11, 1280 }
  0x6e   : > { %2444 = vmatmul.mubr.bf16.gmra.mxu1 %v603_v58 }
  0x6f   : > { %2447 = vmatprep.mubr.bf16.mxu1 %v604_v24  ;;  %v1292_v24 = vadd.s32 96, %v2770_v52 }
  0x71   : > { %v1358_v50 = vadd.s32 %v2775_v29, %v1292_v24 }
  0x73   : > { %vm1422_vm12 = vcmp.lt.s32.totalorder %v1358_v50, 1280 }
  0x76   : > { %2448 = vmatmul.mubr.bf16.gmra.mxu1 %v605_v60  ;;  %v1294_v60 = vadd.s32 112, %v2770_v52 }
  0xec   : > { %v2389_v32 = vpop.f32.mrf.mxu0 }
  0xed   : > { %v1476_v42 = vsel %vm1412_vm1, %v2389_v32, 0.0 }
  0xee   : > { %v704_v35 = vpop.f32.mrf.mxu0  ;;  %v1609_v56 = vmul.f32 %v1476_v42, %v1476_v42 }
  0xef   : > { %v1474_v16 = vsel %vm1410_vm0, %v704_v35, 0.0 }
  0xf0   : > { %v2390_v2 = vpop.f32.mrf.mxu0  ;;  %v1607_v45 = vmul.f32 %v1474_v16, %v1474_v16 }
  0xf1   : > { %v2117_v37 = vpack.c.bf16 %v2390_v2, %v2389_v32  ;;  %v1477_v51 = vsel %vm1413_vm3, %v2390_v2, 0.0  ;;  %v1293_v32 = vadd.s32 104, %v2770_v52  ;;  %v1360_v2 = vadd.s32 %v2775_v29, %v1294_v60 }
  0xf2   : > { %v707_v39 = vpop.f32.mrf.mxu0  ;;  %v1610_v0 = vmul.f32 %v1477_v51, %v1477_v51 }
  0xf3   : > { %2300 = vst [vmem:[%s2791_s26 + $0x8] sm:$0xff] %v2117_v37   ;;  %v2112_v43 = vpack.c.bf16 %v707_v39, %v704_v35  ;;  %v1475_v44 = vsel %vm1411_vm2, %v707_v39, 0.0  ;;  %vm1424_vm13 = vcmp.lt.s32.totalorder %v1360_v2, 1280 }
  0xf4   : > { %v1538_v46 = vadd.f32 %v1475_v44, %v1474_v16  ;;  %v1608_v47 = vmul.f32 %v1475_v44, %v1475_v44  ;;  %v2393_v48 = vpop.f32.mrf.mxu0  ;;  %v2822_v41 = vpop.f32.mrf.mxu1 }
  0xf5   : > { %2113 = vst [vmem:[%s2791_s26] sm:$0xff] %v2112_v43   ;;  %v1480_v3 = vsel %vm1416_vm5, %v2393_v48, 0.0 }
  0xf6   : > { %v1539_v25 = vadd.f32 %v1538_v46, %v1476_v42  ;;  %v1671_v57 = vadd.f32 %v1608_v47, %v1607_v45  ;;  %v720_v59 = vpop.f32.mrf.mxu0  ;;  %v1613_v28 = vmul.f32 %v1480_v3, %v1480_v3  ;;  %v1359_v45 = vadd.s32 %v2775_v29, %v1293_v32 }
  0xf7   : > { %v1478_v62 = vsel %vm1414_vm4, %v720_v59, 0.0  ;;  %v1303_v32 = vadd.s32 184, %v2770_v52 }
  0xf8   : > { %v1672_v1 = vadd.f32 %v1671_v57, %v1609_v56  ;;  %v1540_v4 = vadd.f32 %v1539_v25, %v1477_v51  ;;  %v2394_v8 = vpop.f32.mrf.mxu0  ;;  %v1611_v15 = vmul.f32 %v1478_v62, %v1478_v62  ;;  %v2828_v51 = vpop.f32.mrf.mxu1  ;;  %v1362_v56 = vadd.s32 %v2775_v29, %v1296_v6 }
  0xf9   : > { %v2127_v9 = vpack.c.bf16 %v2394_v8, %v2393_v48  ;;  %v1481_v26 = vsel %vm1417_vm7, %v2394_v8, 0.0  ;;  %vm1423_vm15 = vcmp.lt.s32.totalorder %v1359_v45, 1280  ;;  %v1301_v6 = vadd.s32 168, %v2770_v52 }
  0xfa   : > { %v1541_v14 = vadd.f32 %v1540_v4, %v1478_v62  ;;  %v1673_v17 = vadd.f32 %v1672_v1, %v1610_v0  ;;  %v723_v18 = vpop.f32.mrf.mxu0  ;;  %v1614_v33 = vmul.f32 %v1481_v26, %v1481_v26  ;;  %v2834_v62 = vpop.f32.mrf.mxu1  ;;  %v1299_v0 = vadd.s32 152, %v2770_v52 }
  0xfb   : > { %2302 = vst [vmem:[%s2791_s26 + $0x18] sm:$0xff] %v2127_v9   ;;  %v2122_v19 = vpack.c.bf16 %v723_v18, %v720_v59  ;;  %v1479_v20 = vsel %vm1415_vm6, %v723_v18, 0.0  ;;  %v2197_v1 = vpack.c.bf16 %v2834_v62, %v2822_v41  ;;  %vm1426_vm0 = vcmp.lt.s32.totalorder %v1362_v56, 1280 }
  0xfc   : > { %v1674_v22 = vadd.f32 %v1673_v17, %v1611_v15  ;;  %v1542_v58 = vadd.f32 %v1541_v14, %v1479_v20  ;;  %v1612_v7 = vmul.f32 %v1479_v20, %v1479_v20  ;;  %v2397_v23 = vpop.f32.mrf.mxu0  ;;  %v2840_v14 = vpop.f32.mrf.mxu1  ;;  %v1364_v17 = vadd.s32 %v2775_v29, %v1298_v55 }
  0xfd   : > { %2301 = vst [vmem:[%s2791_s26 + $0x10] sm:$0xff] %v2122_v19   ;;  %v1484_v42 = vsel %vm1420_vm9, %v2397_v23, 0.0  ;;  %2316 = vst [vmem:[%s2791_s26 + $0x88] sm:$0xff] %v2197_v1   ;;  %v2192_v18 = vpack.c.bf16 %v2840_v14, %v2828_v51  ;;  %v2872_v45 = vadd.s32 %v2775_v29, %v1303_v32 }
  0xfe   : > { %v1543_v5 = vadd.f32 %v1542_v58, %v1480_v3  ;;  %v1675_v12 = vadd.f32 %v1674_v22, %v1612_v7  ;;  %v736_v10 = vpop.f32.mrf.mxu0  ;;  %v1617_v25 = vmul.f32 %v1484_v42, %v1484_v42  ;;  %v1300_v22 = vadd.s32 160, %v2770_v52 }
  0xff   : > { %v1482_v31 = vsel %vm1418_vm8, %v736_v10, 0.0  ;;  %2315 = vst [vmem:[%s2791_s26 + $0x80] sm:$0xff] %v2192_v18   ;;  %vm1428_vm1 = vcmp.lt.s32.totalorder %v1364_v17, 1280  ;;  %vm1433_vm6 = vcmp.lt.s32.totalorder %v2872_v45, 1280 }
 0x100   : > { %v1676_v34 = vadd.f32 %v1675_v12, %v1613_v28  ;;  %v1544_v35 = vadd.f32 %v1543_v5, %v1481_v26  ;;  %v2398_v36 = vpop.f32.mrf.mxu0  ;;  %v1615_v37 = vmul.f32 %v1482_v31, %v1482_v31  ;;  %v1365_v26 = vadd.s32 %v2775_v29, %v1299_v0 }
 0x101   : > { %v2137_v53 = vpack.c.bf16 %v2398_v36, %v2397_v23  ;;  %v1485_v54 = vsel %vm1421_vm11, %v2398_v36, 0.0  ;;  %v1363_v12 = vadd.s32 %v2775_v29, %v1297_v13  ;;  %v1366_v50 = vadd.s32 %v2775_v29, %v1300_v22 }
 0x102   : > { %v1545_v16 = vadd.f32 %v1544_v35, %v1482_v31  ;;  %v1677_v38 = vadd.f32 %v1676_v34, %v1614_v33  ;;  %v739_v39 = vpop.f32.mrf.mxu0  ;;  %v1618_v4 = vmul.f32 %v1485_v54, %v1485_v54  ;;  %v1302_v31 = vadd.s32 176, %v2770_v52 }
 0x103   : > { %2304 = vst [vmem:[%s2791_s26 + $0x28] sm:$0xff] %v2137_v53   ;;  %v2132_v43 = vpack.c.bf16 %v739_v39, %v736_v10  ;;  %v1483_v44 = vsel %vm1419_vm10, %v739_v39, 0.0  ;;  %vm1429_vm2 = vcmp.lt.s32.totalorder %v1365_v26, 1280  ;;  %vm1427_vm3 = vcmp.lt.s32.totalorder %v1363_v12, 1280 }
 0x104   : > { %v1678_v46 = vadd.f32 %v1677_v38, %v1615_v37  ;;  %v1546_v47 = vadd.f32 %v1545_v16, %v1483_v44  ;;  %v1616_v48 = vmul.f32 %v1483_v44, %v1483_v44  ;;  %v2401_v49 = vpop.f32.mrf.mxu0  ;;  %v1368_v44 = vadd.s32 %v2775_v29, %v1302_v31 }
 0x105   : > { %2303 = vst [vmem:[%s2791_s26 + $0x20] sm:$0xff] %v2132_v43   ;;  %v1488_v7 = vsel %vm1424_vm13, %v2401_v49, 0.0  ;;  %vm1430_vm4 = vcmp.lt.s32.totalorder %v1366_v50, 1280  ;;  %v1308_v12 = vadd.s32 224, %v2770_v52 }
 0x106   : > { %v1547_v57 = vadd.f32 %v1546_v47, %v1484_v42  ;;  %v1679_v59 = vadd.f32 %v1678_v46, %v1616_v48  ;;  %v752_v61 = vpop.f32.mrf.mxu0  ;;  %v2847_v58 = vpop.f32.mrf.mxu1  ;;  %v1621_v33 = vmul.f32 %v1488_v7, %v1488_v7  ;;  %vm1432_vm5 = vcmp.lt.s32.totalorder %v1368_v44, 1280 }
 0x107   : > { %v1486_v63 = vsel %vm1422_vm12, %v752_v61, 0.0  ;;  %v1310_v44 = vadd.s32 240, %v2770_v52 }
 0x108   : > { %v1680_v8 = vadd.f32 %v1679_v59, %v1617_v25  ;;  %v1548_v9 = vadd.f32 %v1547_v57, %v1485_v54  ;;  %v2402_v11 = vpop.f32.mrf.mxu0  ;;  %v1619_v19 = vmul.f32 %v1486_v63, %v1486_v63  ;;  %v2855_v10 = vpop.f32.mrf.mxu1  ;;  %v1367_v59 = vadd.s32 %v2775_v29, %v1301_v6 }
 0x109   : > { %v2147_v15 = vpack.c.bf16 %v2402_v11, %v2401_v49  ;;  %v1489_v30 = vsel %vm1425_vm14, %v2402_v11, 0.0  ;;  %v1306_v11 = vadd.s32 208, %v2770_v52 }
 0x10a   : > { %v1549_v3 = vadd.f32 %v1548_v9, %v1486_v63  ;;  %v1681_v20 = vadd.f32 %v1680_v8, %v1618_v4  ;;  %v755_v21 = vpop.f32.mrf.mxu0  ;;  %v2862_v53 = vpop.f32.mrf.mxu1  ;;  %v1622_v37 = vmul.f32 %v1489_v30, %v1489_v30  ;;  %v1304_v4 = vadd.s32 192, %v2770_v52 }
 0x10b   : > { %2306 = vst [vmem:[%s2791_s26 + $0x38] sm:$0xff] %v2147_v15   ;;  %v2142_v23 = vpack.c.bf16 %v755_v21, %v752_v61  ;;  %v1487_v24 = vsel %vm1423_vm15, %v755_v21, 0.0  ;;  %v2207_v16 = vpack.c.bf16 %v2862_v53, %v2847_v58  ;;  %vm1431_vm7 = vcmp.lt.s32.totalorder %v1367_v59, 1280 }
 0x10c   : > { %v1682_v27 = vadd.f32 %v1681_v20, %v1619_v19  ;;  %v1550_v60 = vadd.f32 %v1549_v3, %v1487_v24  ;;  %v1620_v28 = vmul.f32 %v1487_v24, %v1487_v24  ;;  %v2405_v5 = vpop.f32.mrf.mxu0  ;;  %v2868_v42 = vpop.f32.mrf.mxu1  ;;  %v1307_v3 = vadd.s32 216, %v2770_v52 }
 0x10d   : > { %2305 = vst [vmem:[%s2791_s26 + $0x30] sm:$0xff] %v2142_v23   ;;  %2318 = vst [vmem:[%s2791_s26 + $0x98] sm:$0xff] %v2207_v16   ;;  %v2202_v46 = vpack.c.bf16 %v2868_v42, %v2855_v10  ;;  %v1492_v56 = vsel %vm1428_vm1, %v2405_v5, 0.0  ;;  %v1305_v21 = vadd.s32 200, %v2770_v52 }
 0x10e   : > { %v1551_v34 = vadd.f32 %v1550_v60, %v1488_v7  ;;  %v1683_v35 = vadd.f32 %v1682_v27, %v1620_v28  ;;  %v768_v36 = vpop.f32.mrf.mxu0  ;;  %v2877_v55 = vpop.f32.mrf.mxu1  ;;  %v1625_v13 = vmul.f32 %v1492_v56, %v1492_v56  ;;  %v1370_v27 = vadd.s32 %v2775_v29, %v1304_v4 }
 0x10f   : > { %v1490_v2 = vsel %vm1426_vm0, %v768_v36, 0.0  ;;  %2317 = vst [vmem:[%s2791_s26 + $0x90] sm:$0xff] %v2202_v46   ;;  %v1371_v16 = vadd.s32 %v2775_v29, %v1305_v21  ;;  %v1309_v4 = vadd.s32 232, %v2770_v52 }
 0x110   : > { %v1684_v38 = vadd.f32 %v1683_v35, %v1621_v33  ;;  %v1552_v39 = vadd.f32 %v1551_v34, %v1489_v30  ;;  %v2406_v40 = vpop.f32.mrf.mxu0  ;;  %v1623_v48 = vmul.f32 %v1490_v2, %v1490_v2  ;;  %v2885_v8 = vpop.f32.mrf.mxu1  ;;  %v1373_v35 = vadd.s32 %v2775_v29, %v1307_v3 }
 0x111   : > { %v2157_v43 = vpack.c.bf16 %v2406_v40, %v2405_v5  ;;  %v1493_v9 = vsel %vm1429_vm2, %v2406_v40, 0.0  ;;  %v1372_v5 = vadd.s32 %v2775_v29, %v1306_v11  ;;  %vm1434_vm8 = vcmp.lt.s32.totalorder %v1370_v27, 1280 }
 0x112   : > { %v1553_v47 = vadd.f32 %v1552_v39, %v1490_v2  ;;  %v1685_v49 = vadd.f32 %v1684_v38, %v1622_v37  ;;  %v771_v54 = vpop.f32.mrf.mxu0  ;;  %v2892_v19 = vpop.f32.mrf.mxu1  ;;  %v1626_v7 = vmul.f32 %v1493_v9, %v1493_v9  ;;  %vm1437_vm10 = vcmp.lt.s32.totalorder %v1373_v35, 1280 }
 0x113   : > { %2308 = vst [vmem:[%s2791_s26 + $0x48] sm:$0xff] %v2157_v43   ;;  %v2152_v25 = vpack.c.bf16 %v771_v54, %v768_v36  ;;  %v1491_v57 = vsel %vm1427_vm3, %v771_v54, 0.0  ;;  %v2217_v22 = vpack.c.bf16 %v2892_v19, %v2877_v55  ;;  %vm1436_vm9 = vcmp.lt.s32.totalorder %v1372_v5, 1280 }
 0x114   : > { %v1686_v61 = vadd.f32 %v1685_v49, %v1623_v48  ;;  %v1554_v63 = vadd.f32 %v1553_v47, %v1491_v57  ;;  %v1624_v0 = vmul.f32 %v1491_v57, %v1491_v57  ;;  %v2409_v1 = vpop.f32.mrf.mxu0  ;;  %v2899_v60 = vpop.f32.mrf.mxu1  ;;  %v1374_v47 = vadd.s32 %v2775_v29, %v1308_v12 }
 0x115   : > { %2307 = vst [vmem:[%s2791_s26 + $0x40] sm:$0xff] %v2152_v25   ;;  %2320 = vst [vmem:[%s2791_s26 + $0xa8] sm:$0xff] %v2217_v22   ;;  %v2212_v30 = vpack.c.bf16 %v2899_v60, %v2885_v8  ;;  %v1496_v50 = vsel %vm1432_vm5, %v2409_v1, 0.0  ;;  %v1311_v25 = vadd.s32 248, %v2770_v52  ;;  %vm1435_vm11 = vcmp.lt.s32.totalorder %v1371_v16, 1280 }
 0x116   : > { %v1555_v15 = vadd.f32 %v1554_v63, %v1492_v56  ;;  %v1687_v17 = vadd.f32 %v1686_v61, %v1624_v0  ;;  %v784_v18 = vpop.f32.mrf.mxu0  ;;  %v2907_v36 = vpop.f32.mrf.mxu1  ;;  %v1629_v48 = vmul.f32 %v1496_v50, %v1496_v50  ;;  %vm1438_vm12 = vcmp.lt.s32.totalorder %v1374_v47, 1280 }
 0x117   : > { %v1494_v20 = vsel %vm1430_vm4, %v784_v18, 0.0  ;;  %2319 = vst [vmem:[%s2791_s26 + $0xa0] sm:$0xff] %v2212_v30   ;;  %v1377_v21 = vadd.s32 %v2775_v29, %v1311_v25  ;;  %v1313_v5 = vadd.s32 264, %v2770_v52  ;;  %v1314_v16 = vadd.s32 272, %v2770_v52 }
 0x118   : > { %v1688_v23 = vadd.f32 %v1687_v17, %v1625_v13  ;;  %v1556_v24 = vadd.f32 %v1555_v15, %v1493_v9  ;;  %v2410_v26 = vpop.f32.mrf.mxu0  ;;  %v1627_v32 = vmul.f32 %v1494_v20, %v1494_v20  ;;  %v2914_v43 = vpop.f32.mrf.mxu1  ;;  %v1376_v13 = vadd.s32 %v2775_v29, %v1310_v44 }
 0x119   : > { %v2167_v28 = vpack.c.bf16 %v2410_v26, %v2409_v1  ;;  %v1497_v46 = vsel %vm1433_vm6, %v2410_v26, 0.0  ;;  %v1312_v26 = vadd.s32 256, %v2770_v52  ;;  %vm1441_vm14 = vcmp.lt.s32.totalorder %v1377_v21, 1280 }
 0x11a   : > { %v1557_v31 = vadd.f32 %v1556_v24, %v1494_v20  ;;  %v1689_v33 = vadd.f32 %v1688_v23, %v1626_v7  ;;  %v787_v34 = vpop.f32.mrf.mxu0  ;;  %v2922_v57 = vpop.f32.mrf.mxu1  ;;  %v1630_v61 = vmul.f32 %v1497_v46, %v1497_v46  ;;  %vm1440_vm13 = vcmp.lt.s32.totalorder %v1376_v13, 1280 }
 0x11b   : > { %2310 = vst [vmem:[%s2791_s26 + $0x58] sm:$0xff] %v2167_v28   ;;  %v2162_v2 = vpack.c.bf16 %v787_v34, %v784_v18  ;;  %v1495_v6 = vsel %vm1431_vm7, %v787_v34, 0.0  ;;  %v2227_v45 = vpack.c.bf16 %v2922_v57, %v2907_v36  ;;  %v1379_v47 = vadd.s32 %v2775_v29, %v1313_v5 }
 0x11c   : > { %v1690_v37 = vadd.f32 %v1689_v33, %v1627_v32  ;;  %v1558_v38 = vadd.f32 %v1557_v31, %v1495_v6  ;;  %v1628_v39 = vmul.f32 %v1495_v6, %v1495_v6  ;;  %v2413_v40 = vpop.f32.mrf.mxu0  ;;  %v2927_v9 = vpop.f32.mrf.mxu1  ;;  %v1375_v31 = vadd.s32 %v2775_v29, %v1309_v4 }
 0x11d   : > { %2309 = vst [vmem:[%s2791_s26 + $0x50] sm:$0xff] %v2162_v2   ;;  %2322 = vst [vmem:[%s2791_s26 + $0xb8] sm:$0xff] %v2227_v45   ;;  %v2222_v15 = vpack.c.bf16 %v2927_v9, %v2914_v43  ;;  %v1500_v7 = vsel %vm1436_vm9, %v2413_v40, 0.0  ;;  %vm1443_vm1 = vcmp.lt.s32.totalorder %v1379_v47, 1280 }
 0x11e   : > { %v1559_v49 = vadd.f32 %v1558_v38, %v1496_v50  ;;  %v1691_v54 = vadd.f32 %v1690_v37, %v1628_v39  ;;  %v800_v56 = vpop.f32.mrf.mxu0  ;;  %v2934_v22 = vpop.f32.mrf.mxu1  ;;  %v1633_v34 = vmul.f32 %v1500_v7, %v1500_v7  ;;  %v1378_v39 = vadd.s32 %v2775_v29, %v1312_v26 }
 0x11f   : > { %v1498_v59 = vsel %vm1434_vm8, %v800_v56, 0.0  ;;  %2321 = vst [vmem:[%s2791_s26 + $0xb0] sm:$0xff] %v2222_v15   ;;  %vm1439_vm15 = vcmp.lt.s32.totalorder %v1375_v31, 1280  ;;  %v1318_v31 = vadd.s32 304, %v2770_v52 }
 0x120   : > { %v1692_v63 = vadd.f32 %v1691_v54, %v1629_v48  ;;  %v1560_v0 = vadd.f32 %v1559_v49, %v1497_v46  ;;  %v2414_v1 = vpop.f32.mrf.mxu0  ;;  %v1631_v18 = vmul.f32 %v1498_v59, %v1498_v59  ;;  %v2942_v32 = vpop.f32.mrf.mxu1  ;;  %vm1442_vm0 = vcmp.lt.s32.totalorder %v1378_v39, 1280 }
 0x121   : > { %v2177_v11 = vpack.c.bf16 %v2414_v1, %v2413_v40  ;;  %v1501_v33 = vsel %vm1437_vm10, %v2414_v1, 0.0 }
 0x122   : > { %v1561_v17 = vadd.f32 %v1560_v0, %v1498_v59  ;;  %v1693_v3 = vadd.f32 %v1692_v63, %v1630_v61  ;;  %v803_v20 = vpop.f32.mrf.mxu0  ;;  %v2948_v37 = vpop.f32.mrf.mxu1  ;;  %v1634_v40 = vmul.f32 %v1501_v33, %v1501_v33  ;;  %v1380_v63 = vadd.s32 %v2775_v29, %v1314_v16 }
 0x123   : > { %2312 = vst [vmem:[%s2791_s26 + $0x68] sm:$0xff] %v2177_v11   ;;  %v2172_v23 = vpack.c.bf16 %v803_v20, %v800_v56  ;;  %v1499_v24 = vsel %vm1435_vm11, %v803_v20, 0.0  ;;  %v2237_v35 = vpack.c.bf16 %v2948_v37, %v2934_v22  ;;  %v1315_v56 = vadd.s32 280, %v2770_v52 }
 0x124   : > { %v1694_v27 = vadd.f32 %v1693_v3, %v1631_v18  ;;  %v1562_v28 = vadd.f32 %v1561_v17, %v1499_v24  ;;  %v1632_v12 = vmul.f32 %v1499_v24, %v1499_v24  ;;  %v2417_v30 = vpop.f32.mrf.mxu0  ;;  %v2954_v49 = vpop.f32.mrf.mxu1  ;;  %v1316_v20 = vadd.s32 288, %v2770_v52 }
 0x125   : > { %2311 = vst [vmem:[%s2791_s26 + $0x60] sm:$0xff] %v2172_v23   ;;  %2324 = vst [vmem:[%s2791_s26 + $0xc8] sm:$0xff] %v2237_v35   ;;  %v2232_v25 = vpack.c.bf16 %v2954_v49, %v2942_v32  ;;  %v1504_v4 = vsel %vm1440_vm13, %v2417_v30, 0.0  ;;  %v1381_v24 = vadd.s32 %v2775_v29, %v1315_v56  ;;  %vm1444_vm2 = vcmp.lt.s32.totalorder %v1380_v63, 1280 }
 0x126   : > { %v1563_v50 = vadd.f32 %v1562_v28, %v1500_v7  ;;  %v1695_v2 = vadd.f32 %v1694_v27, %v1632_v12  ;;  %v816_v6 = vpop.f32.mrf.mxu0  ;;  %v2962_v1 = vpop.f32.mrf.mxu1  ;;  %v1637_v13 = vmul.f32 %v1504_v4, %v1504_v4  ;;  %v1317_v28 = vadd.s32 296, %v2770_v52 }
 0x127   : > { %v1502_v38 = vsel %vm1438_vm12, %v816_v6, 0.0  ;;  %2323 = vst [vmem:[%s2791_s26 + $0xc0] sm:$0xff] %v2232_v25   ;;  %vm1445_vm3 = vcmp.lt.s32.totalorder %v1381_v24, 1280  ;;  %v1319_v16 = vadd.s32 312, %v2770_v52 }
 0x128   : > { %v1696_v46 = vadd.f32 %v1695_v2, %v1633_v34  ;;  %v1564_v44 = vadd.f32 %v1563_v50, %v1501_v33  ;;  %v2418_v48 = vpop.f32.mrf.mxu0  ;;  %v1635_v45 = vmul.f32 %v1502_v38, %v1502_v38  ;;  %v2969_v7 = vpop.f32.mrf.mxu1  ;;  %v1382_v50 = vadd.s32 %v2775_v29, %v1316_v20 }
 0x129   : > { %v2187_v54 = vpack.c.bf16 %v2418_v48, %v2417_v30  ;;  %v1505_v23 = vsel %vm1441_vm14, %v2418_v48, 0.0  ;;  %v1506_v30 = vsel %vm1442_vm0, %v2828_v51, 0.0  ;;  %v1384_v48 = vadd.s32 %v2775_v29, %v1318_v31 }
 0x12a   : > { %v1565_v59 = vadd.f32 %v1564_v44, %v1502_v38  ;;  %v1697_v61 = vadd.f32 %v1696_v46, %v1634_v40  ;;  %v819_v0 = vpop.f32.mrf.mxu0  ;;  %v2975_v12 = vpop.f32.mrf.mxu1  ;;  %v1638_v33 = vmul.f32 %v1505_v23, %v1505_v23  ;;  %v1639_v38 = vmul.f32 %v1506_v30, %v1506_v30 }
 0x12b   : > { %2314 = vst [vmem:[%s2791_s26 + $0x78] sm:$0xff] %v2187_v54   ;;  %v2182_v11 = vpack.c.bf16 %v819_v0, %v816_v6  ;;  %v1503_v15 = vsel %vm1439_vm15, %v819_v0, 0.0  ;;  %v2247_v21 = vpack.c.bf16 %v2975_v12, %v2962_v1  ;;  %v1507_v6 = vsel %vm1443_vm1, %v2840_v14, 0.0 }
 0x12c   : > { %v1698_v17 = vadd.f32 %v1697_v61, %v1635_v45  ;;  %v1566_v18 = vadd.f32 %v1565_v59, %v1503_v15  ;;  %v1636_v3 = vmul.f32 %v1503_v15, %v1503_v15  ;;  %v2983_v2 = vpop.f32.mrf.mxu1  ;;  %v1383_v40 = vadd.s32 %v2775_v29, %v1317_v28 }
 0x12d   : > { %2313 = vst [vmem:[%s2791_s26 + $0x70] sm:$0xff] %v2182_v11   ;;  %2326 = vst [vmem:[%s2791_s26 + $0xd8] sm:$0xff] %v2247_v21   ;;  %v2242_v51 = vpack.c.bf16 %v2983_v2, %v2969_v7  ;;  %v1508_v44 = vsel %vm1444_vm2, %v2822_v41, 0.0  ;;  %v1320_v14 = vadd.s32 320, %v2770_v52  ;;  %v1640_v56 = vmul.f32 %v1507_v6, %v1507_v6 }
 0x12e   : > { %v1567_v26 = vadd.f32 %v1566_v18, %v1504_v4  ;;  %v1699_v27 = vadd.f32 %v1698_v17, %v1636_v3  ;;  %v2992_v46 = vpop.f32.mrf.mxu1  ;;  %vm1446_vm4 = vcmp.lt.s32.totalorder %v1382_v50, 1280  ;;  %v1509_v59 = vsel %vm1445_vm3, %v2834_v62, 0.0 }
 0x12f   : > { %2325 = vst [vmem:[%s2791_s26 + $0xd0] sm:$0xff] %v2242_v51   ;;  %v1385_v45 = vadd.s32 %v2775_v29, %v1319_v16  ;;  %v1321_v61 = vadd.s32 328, %v2770_v52  ;;  %v1641_v63 = vmul.f32 %v1508_v44, %v1508_v44  ;;  %vm1447_vm5 = vcmp.lt.s32.totalorder %v1383_v40, 1280 }
 0x130   : > { %v1568_v5 = vadd.f32 %v1567_v26, %v1505_v23  ;;  %v1700_v34 = vadd.f32 %v1699_v27, %v1637_v13  ;;  %v2999_v25 = vpop.f32.mrf.mxu1  ;;  %v1510_v11 = vsel %vm1446_vm4, %v2855_v10, 0.0  ;;  %v1322_v15 = vadd.s32 336, %v2770_v52 }
 0x131   : > { %v1386_v17 = vadd.s32 %v2775_v29, %v1320_v14  ;;  %v1642_v18 = vmul.f32 %v1509_v59, %v1509_v59  ;;  %vm1448_vm6 = vcmp.lt.s32.totalorder %v1384_v48, 1280  ;;  %v1511_v24 = vsel %vm1447_vm5, %v2868_v42, 0.0 }
 0x132   : > { %v1701_v39 = vadd.f32 %v1700_v34, %v1638_v33  ;;  %v1569_v35 = vadd.f32 %v1568_v5, %v1506_v30  ;;  %v3005_v4 = vpop.f32.mrf.mxu1  ;;  %v1323_v13 = vadd.s32 344, %v2770_v52  ;;  %v1387_v10 = vadd.s32 %v2775_v29, %v1321_v61 }
 0x133   : > { %v2257_v62 = vpack.c.bf16 %v3005_v4, %v2992_v46  ;;  %v1643_v28 = vmul.f32 %v1510_v11, %v1510_v11  ;;  %vm1449_vm7 = vcmp.lt.s32.totalorder %v1385_v45, 1280  ;;  %v1512_v21 = vsel %vm1448_vm6, %v2847_v58, 0.0 }
 0x134   : > { %v1570_v54 = vadd.f32 %v1569_v35, %v1507_v6  ;;  %v1702_v47 = vadd.f32 %v1701_v39, %v1639_v38  ;;  %v3012_v23 = vpop.f32.mrf.mxu1  ;;  %v1388_v33 = vadd.s32 %v2775_v29, %v1322_v15  ;;  %vm1450_vm8 = vcmp.lt.s32.totalorder %v1386_v17, 1280 }
 0x135   : > { %2328 = vst [vmem:[%s2791_s26 + $0xe8] sm:$0xff] %v2257_v62   ;;  %v2252_v26 = vpack.c.bf16 %v3012_v23, %v2999_v25  ;;  %v1644_v34 = vmul.f32 %v1511_v24, %v1511_v24  ;;  %v1324_v50 = vadd.s32 352, %v2770_v52  ;;  %v1513_v16 = vsel %vm1449_vm7, %v2862_v53, 0.0 }
 0x136   : > { %v1571_v41 = vadd.f32 %v1570_v54, %v1508_v44  ;;  %v1703_v0 = vadd.f32 %v1702_v47, %v1640_v56  ;;  %v3020_v31 = vpop.f32.mrf.mxu1  ;;  %v1389_v51 = vadd.s32 %v2775_v29, %v1323_v13  ;;  %vm1451_vm9 = vcmp.lt.s32.totalorder %v1387_v10, 1280 }
 0x137   : > { %2327 = vst [vmem:[%s2791_s26 + $0xe0] sm:$0xff] %v2252_v26   ;;  %v1645_v38 = vmul.f32 %v1512_v21, %v1512_v21  ;;  %v1325_v35 = vadd.s32 360, %v2770_v52  ;;  %vm1452_vm10 = vcmp.lt.s32.totalorder %v1388_v33, 1280  ;;  %v1514_v44 = vsel %vm1450_vm8, %v2885_v8, 0.0 }
 0x138   : > { %v1704_v3 = vadd.f32 %v1703_v0, %v1641_v63  ;;  %v1572_v20 = vadd.f32 %v1571_v41, %v1509_v59  ;;  %v3026_v6 = vpop.f32.mrf.mxu1  ;;  %v1326_v48 = vadd.s32 368, %v2770_v52  ;;  %v1646_v14 = vmul.f32 %v1513_v16, %v1513_v16 }
 0x139   : > { %v1390_v47 = vadd.s32 %v2775_v29, %v1324_v50  ;;  %vm1453_vm11 = vcmp.lt.s32.totalorder %v1389_v51, 1280  ;;  %v1515_v45 = vsel %vm1451_vm9, %v2899_v60, 0.0  ;;  %v1327_v61 = vadd.s32 376, %v2770_v52 }
 0x13a   : > { %v1573_v27 = vadd.f32 %v1572_v20, %v1510_v11  ;;  %v1705_v30 = vadd.f32 %v1704_v3, %v1642_v18  ;;  %v3031_v40 = vpop.f32.mrf.mxu1  ;;  %v1647_v41 = vmul.f32 %v1514_v44, %v1514_v44  ;;  %v1391_v11 = vadd.s32 %v2775_v29, %v1325_v35 }
 0x13b   : > { %v2267_v53 = vpack.c.bf16 %v3031_v40, %v3020_v31  ;;  %v1516_v15 = vsel %vm1452_vm10, %v2877_v55, 0.0  ;;  %v1392_v17 = vadd.s32 %v2775_v29, %v1326_v48  ;;  %v1328_v62 = vadd.s32 384, %v2770_v52 }
 0x13c   : > { %v1706_v42 = vadd.f32 %v1705_v30, %v1643_v28  ;;  %v1574_v5 = vadd.f32 %v1573_v27, %v1511_v24  ;;  %v3039_v59 = vpop.f32.mrf.mxu1  ;;  %v1648_v3 = vmul.f32 %v1515_v45, %v1515_v45  ;;  %vm1454_vm12 = vcmp.lt.s32.totalorder %v1390_v47, 1280 }
 0x13d   : > { %2330 = vst [vmem:[%s2791_s26 + $0xf8] sm:$0xff] %v2267_v53   ;;  %v2262_v8 = vpack.c.bf16 %v3039_v59, %v3026_v6  ;;  %v1517_v20 = vsel %vm1453_vm11, %v2892_v19, 0.0  ;;  %v1393_v24 = vadd.s32 %v2775_v29, %v1327_v61  ;;  %v1329_v13 = vadd.s32 392, %v2770_v52 }
 0x13e   : > { %v1575_v39 = vadd.f32 %v1574_v5, %v1512_v21  ;;  %v1707_v58 = vadd.f32 %v1706_v42, %v1644_v34  ;;  %v1649_v10 = vmul.f32 %v1516_v15, %v1516_v15  ;;  %vm1455_vm13 = vcmp.lt.s32.totalorder %v1391_v11, 1280 }
 0x13f   : > { %2329 = vst [vmem:[%s2791_s26 + $0xf0] sm:$0xff] %v2262_v8   ;;  %v1518_v55 = vsel %vm1454_vm12, %v2914_v43, 0.0  ;;  %v1330_v28 = vadd.s32 400, %v2770_v52  ;;  %v1394_v30 = vadd.s32 %v2775_v29, %v1328_v62  ;;  %v1650_v21 = vmul.f32 %v1517_v20, %v1517_v20 }
 0x140   : > { %v1708_v54 = vadd.f32 %v1707_v58, %v1645_v38  ;;  %v1576_v56 = vadd.f32 %v1575_v39, %v1513_v16  ;;  %vm1456_vm14 = vcmp.lt.s32.totalorder %v1392_v17, 1280  ;;  %v1519_v19 = vsel %vm1455_vm13, %v2927_v9, 0.0 }
 0x141   : > { %v1331_v5 = vadd.s32 408, %v2770_v52  ;;  %v1395_v34 = vadd.s32 %v2775_v29, %v1329_v13  ;;  %v1651_v16 = vmul.f32 %v1518_v55, %v1518_v55  ;;  %vm1457_vm15 = vcmp.lt.s32.totalorder %v1393_v24, 1280 }
 0x142   : > { %v1577_v63 = vadd.f32 %v1576_v56, %v1514_v44  ;;  %v1709_v0 = vadd.f32 %v1708_v54, %v1646_v14  ;;  %v1520_v43 = vsel %vm1456_vm14, %v2907_v36, 0.0  ;;  %v1396_v38 = vadd.s32 %v2775_v29, %v1330_v28 }
 0x143   : > { %vm1458_vm0 = vcmp.lt.s32.totalorder %v1394_v30, 1280  ;;  %v1652_v35 = vmul.f32 %v1519_v19, %v1519_v19  ;;  %v1332_v44 = vadd.s32 416, %v2770_v52  ;;  %v1521_v9 = vsel %vm1457_vm15, %v2922_v57, 0.0 }
 0x144   : > { %v1710_v60 = vadd.f32 %v1709_v0, %v1647_v41  ;;  %v1578_v18 = vadd.f32 %v1577_v63, %v1515_v45  ;;  %v1397_v48 = vadd.s32 %v2775_v29, %v1331_v5  ;;  %vm1459_vm1 = vcmp.lt.s32.totalorder %v1395_v34, 1280 }
 0x145   : > { %v1653_v53 = vmul.f32 %v1520_v43, %v1520_v43  ;;  %v1333_v56 = vadd.s32 424, %v2770_v52  ;;  %vm1460_vm2 = vcmp.lt.s32.totalorder %v1396_v38, 1280  ;;  %v1522_v36 = vsel %vm1458_vm0, %v2942_v32, 0.0 }
 0x146   : > { %v1579_v26 = vadd.f32 %v1578_v18, %v1516_v15  ;;  %v1711_v27 = vadd.f32 %v1710_v60, %v1648_v3  ;;  %v1334_v47 = vadd.s32 432, %v2770_v52  ;;  %v1654_v45 = vmul.f32 %v1521_v9, %v1521_v9 }
 0x147   : > { %v1398_v63 = vadd.s32 %v2775_v29, %v1332_v44  ;;  %vm1461_vm3 = vcmp.lt.s32.totalorder %v1397_v48, 1280  ;;  %v1523_v57 = vsel %vm1459_vm1, %v2954_v49, 0.0  ;;  %v1335_v41 = vadd.s32 440, %v2770_v52 }
 0x148   : > { %v1712_v33 = vadd.f32 %v1711_v27, %v1649_v10  ;;  %v1580_v42 = vadd.f32 %v1579_v26, %v1517_v20  ;;  %v1655_v11 = vmul.f32 %v1522_v36, %v1522_v36  ;;  %v1399_v17 = vadd.s32 %v2775_v29, %v1333_v56 }
 0x149   : > { %v1524_v62 = vsel %vm1460_vm2, %v2934_v22, 0.0  ;;  %v1400_v32 = vadd.s32 %v2775_v29, %v1334_v47  ;;  %v1336_v60 = vadd.s32 448, %v2770_v52  ;;  %v1656_v20 = vmul.f32 %v1523_v57, %v1523_v57 }
 0x14a   : > { %v1581_v50 = vadd.f32 %v1580_v42, %v1518_v55  ;;  %v1713_v51 = vadd.f32 %v1712_v33, %v1650_v21  ;;  %vm1462_vm4 = vcmp.lt.s32.totalorder %v1398_v63, 1280  ;;  %v1525_v24 = vsel %vm1461_vm3, %v2948_v37, 0.0 }
 0x14b   : > { %v1401_v49 = vadd.s32 %v2775_v29, %v1335_v41  ;;  %v1337_v13 = vadd.s32 456, %v2770_v52  ;;  %v1657_v10 = vmul.f32 %v1524_v62, %v1524_v62  ;;  %vm1463_vm5 = vcmp.lt.s32.totalorder %v1399_v17, 1280 }
 0x14c   : > { %v1714_v39 = vadd.f32 %v1713_v51, %v1651_v16  ;;  %v1582_v58 = vadd.f32 %v1581_v50, %v1519_v19  ;;  %v1526_v22 = vsel %vm1462_vm4, %v2969_v7, 0.0  ;;  %v1338_v55 = vadd.s32 464, %v2770_v52 }
 0x14d   : > { %v1402_v28 = vadd.s32 %v2775_v29, %v1336_v60  ;;  %v1658_v30 = vmul.f32 %v1525_v24, %v1525_v24  ;;  %vm1464_vm6 = vcmp.lt.s32.totalorder %v1400_v32, 1280  ;;  %v1527_v37 = vsel %vm1463_vm5, %v2983_v2, 0.0 }
 0x14e   : > { %v1583_v14 = vadd.f32 %v1582_v58, %v1520_v43  ;;  %v1715_v54 = vadd.f32 %v1714_v39, %v1652_v35  ;;  %v1339_v42 = vadd.s32 472, %v2770_v52  ;;  %v1403_v19 = vadd.s32 %v2775_v29, %v1337_v13 }
 0x14f   : > { %v1659_v34 = vmul.f32 %v1526_v22, %v1526_v22  ;;  %vm1465_vm7 = vcmp.lt.s32.totalorder %v1401_v49, 1280  ;;  %v1528_v7 = vsel %vm1464_vm6, %v2962_v1, 0.0  ;;  %v1404_v16 = vadd.s32 %v2775_v29, %v1338_v55 }
 0x150   : > { %v1716_v61 = vadd.f32 %v1715_v54, %v1653_v53  ;;  %v1584_v8 = vadd.f32 %v1583_v14, %v1521_v9  ;;  %vm1466_vm8 = vcmp.lt.s32.totalorder %v1402_v28, 1280  ;;  %v1660_v38 = vmul.f32 %v1527_v37, %v1527_v37 }
 0x151   : > { %v1340_v39 = vadd.s32 480, %v2770_v52  ;;  %v1529_v2 = vsel %vm1465_vm7, %v2975_v12, 0.0  ;;  %v1405_v58 = vadd.s32 %v2775_v29, %v1339_v42  ;;  %vm1467_vm9 = vcmp.lt.s32.totalorder %v1403_v19, 1280 }
 0x152   : > { %v1585_v0 = vadd.f32 %v1584_v8, %v1522_v36  ;;  %v1717_v15 = vadd.f32 %v1716_v61, %v1654_v45  ;;  %v1661_v35 = vmul.f32 %v1528_v7, %v1528_v7  ;;  %v1341_v48 = vadd.s32 488, %v2770_v52 }
 0x153   : > { %vm1468_vm10 = vcmp.lt.s32.totalorder %v1404_v16, 1280  ;;  %v1530_v1 = vsel %vm1466_vm8, %v2999_v25, 0.0  ;;  %v1342_v53 = vadd.s32 496, %v2770_v52  ;;  %v1662_v14 = vmul.f32 %v1529_v2, %v1529_v2 }
 0x154   : > { %v1718_v18 = vadd.f32 %v1717_v15, %v1655_v11  ;;  %v1586_v3 = vadd.f32 %v1585_v0, %v1523_v57  ;;  %v1406_v36 = vadd.s32 %v2775_v29, %v1340_v39  ;;  %vm1469_vm11 = vcmp.lt.s32.totalorder %v1405_v58, 1280 }
 0x155   : > { %v1531_v12 = vsel %vm1467_vm9, %v3012_v23, 0.0  ;;  %v1343_v47 = vadd.s32 504, %v2770_v52  ;;  %v1663_v61 = vmul.f32 %v1530_v1, %v1530_v1  ;;  %v1407_v63 = vadd.s32 %v2775_v29, %v1341_v48 }
 0x156   : > { %v1587_v26 = vadd.f32 %v1586_v3, %v1524_v62  ;;  %v1719_v27 = vadd.f32 %v1718_v18, %v1656_v20  ;;  %v1532_v57 = vsel %vm1468_vm10, %v2992_v46, 0.0  ;;  %v1408_v25 = vadd.s32 %v2775_v29, %v1342_v53 }
 0x157   : > { %v1664_v11 = vmul.f32 %v1531_v12, %v1531_v12  ;;  %vm1470_vm12 = vcmp.lt.s32.totalorder %v1406_v36, 1280  ;;  %v1533_v15 = vsel %vm1469_vm11, %v3005_v4, 0.0  ;;  %v1409_v17 = vadd.s32 %v2775_v29, %v1343_v47 }
 0x158   : > { %v1720_v21 = vadd.f32 %v1719_v27, %v1657_v10  ;;  %v1588_v33 = vadd.f32 %v1587_v26, %v1525_v24  ;;  %v1665_v23 = vmul.f32 %v1532_v57, %v1532_v57  ;;  %vm1471_vm13 = vcmp.lt.s32.totalorder %v1407_v63, 1280 }
 0x159   : > { %v1534_v32 = vsel %vm1470_vm12, %v3026_v6, 0.0  ;;  %v1666_v60 = vmul.f32 %v1533_v15, %v1533_v15  ;;  %vm1472_vm14 = vcmp.lt.s32.totalorder %v1408_v25, 1280  ;;  %v1535_v3 = vsel %vm1471_vm13, %v3039_v59, 0.0 }
 0x15a   : > { %v1589_v5 = vadd.f32 %v1588_v33, %v1526_v22  ;;  %v1721_v50 = vadd.f32 %v1720_v21, %v1658_v30  ;;  %v1667_v24 = vmul.f32 %v1534_v32, %v1534_v32  ;;  %vm1473_vm15 = vcmp.lt.s32.totalorder %v1409_v17, 1280 }
 0x15b   : > { %v1536_v4 = vsel %vm1472_vm14, %v3020_v31, 0.0  ;;  %v1668_v10 = vmul.f32 %v1535_v3, %v1535_v3  ;;  %v1537_v26 = vsel %vm1473_vm15, %v3031_v40, 0.0  ;;  %vm1740_vm0 = vcmask 1040384  }
 0x15c   : > { %v1722_v51 = vadd.f32 %v1721_v50, %v1659_v34  ;;  %v1590_v43 = vadd.f32 %v1589_v5, %v1527_v37  ;;  %v1669_v6 = vmul.f32 %v1536_v4, %v1536_v4  ;;  %v1670_v55 = vmul.f32 %v1537_v26, %v1537_v26 }
 0x15e   : > { %v1591_v44 = vadd.f32 %v1590_v43, %v1528_v7  ;;  %v1723_v9 = vadd.f32 %v1722_v51, %v1660_v38 }
 0x160   : > { %v1724_v54 = vadd.f32 %v1723_v9, %v1661_v35  ;;  %v1592_v56 = vadd.f32 %v1591_v44, %v1529_v2 }
 0x162   : > { %v1593_v45 = vadd.f32 %v1592_v56, %v1530_v1  ;;  %v1725_v8 = vadd.f32 %v1724_v54, %v1662_v14 }
 0x164   : > { %v1726_v41 = vadd.f32 %v1725_v8, %v1663_v61  ;;  %v1594_v0 = vadd.f32 %v1593_v45, %v1531_v12 }
 0x166   : > { %v1595_v62 = vadd.f32 %v1594_v0, %v1532_v57  ;;  %v1727_v52 = vadd.f32 %v1726_v41, %v1664_v11 }
 0x168   : > { %v1728_v18 = vadd.f32 %v1727_v52, %v1665_v23  ;;  %v1596_v46 = vadd.f32 %v1595_v62, %v1533_v15 }
 0x16a   : > { %v1597_v20 = vadd.f32 %v1596_v46, %v1534_v32  ;;  %v1729_v49 = vadd.f32 %v1728_v18, %v1666_v60 }
 0x16c   : > { %v1730_v29 = vadd.f32 %v1729_v49, %v1667_v24  ;;  %v1598_v13 = vadd.f32 %v1597_v20, %v1535_v3 }
 0x16e   : > { %v1599_v27 = vadd.f32 %v1598_v13, %v1536_v4  ;;  %v1731_v22 = vadd.f32 %v1730_v29, %v1668_v10 }
 0x170   : > { %v1600_v28 = vadd.f32 %v1599_v27, %v1537_v26  ;;  %v1732_v30 = vadd.f32 %v1731_v22, %v1669_v6 }
 0x172   : > { %v1601_v59 = vrot.slane %v1600_v28, 4  ;;  %v1733_v21 = vadd.f32 %v1732_v30, %v1670_v55 }
 0x174   : > { %v1602_v33 = vadd.f32 %v1601_v59, %v1600_v28  ;;  %v1734_v37 = vrot.slane %v1733_v21, 4 }
 0x176   : > { %v1603_v42 = vrot.slane %v1602_v33, 2  ;;  %v1735_v19 = vadd.f32 %v1734_v37, %v1733_v21 }
 0x178   : > { %v1604_v31 = vadd.f32 %v1603_v42, %v1602_v33  ;;  %v1736_v5 = vrot.slane %v1735_v19, 2 }
 0x17a   : > { %v1605_v34 = vrot.slane %v1604_v31, 1  ;;  %v1737_v50 = vadd.f32 %v1736_v5, %v1735_v19 }
 0x17c   : > { %v1738_v40 = vrot.slane %v1737_v50, 1  ;;  %v1606_v7 = vadd.f32 %v1605_v34, %v1604_v31 }
 0x17e   : > { %v1739_v16 = vadd.f32 %v1738_v40, %v1737_v50 }
 0x180   : > { %v1741_v51 = vsel %vm1740_vm0, %v1606_v7, %v1739_v16 }
 0x181   : > { %1742 = vst [vmem:[%s238_s29] sm:$0x3] %v1741_v51 }
 0x182 PF: > { %s16_s18 = sadd.s32 1, %s2489_s18  }
 0x183   : > { %p13_p5 = scmp.ge.s32.totalorder %s16_s18, 5  }
 0x185   :  { %15 = sbr.rel (!%p13_p5) target bundleno = 1 (0x1), region = 78 }

// kernel: bottleneck_forward.5
= control target key start
LH: loop header
LB: loop body
LE: loop exit
PB: predicated region body
PF: predicated region fallthrough
CT: control target
= control target key end

     0   :  { %s4650_s18 = smov 0   ;;  %s6061_s0 = inlined_call_operand.vmem [shape: bf16[1536,128], index: 0, kind: input, shape index: {}]   ;;  %s6062_s1 = inlined_call_operand.vmem [shape: f32[1,128], index: 1, kind: input, shape index: {}]   ;;  %s6063_s2 = inlined_call_operand.vmem [shape: f32[1,128], index: 2, kind: input, shape index: {}]   ;;  %s6064_s3 = inlined_call_operand.vmem [shape: bf16[9,128,128], index: 3, kind: input, shape index: {}]   ;;  %s6065_s4 = inlined_call_operand.vmem [shape: bf16[1536,128], index: 4, kind: output, shape index: {0}]   ;;  %s6066_s5 = inlined_call_operand.vmem [shape: f32[5,2,128], index: 5, kind: output, shape index: {1}]  }
   0x1 LB: > { %s4656_s19 = sadd.s32 4294967295, %s4617_s18   ;;  %p3322_p0 = scmp.ge.s32.totalorder %s4617_s18, 1  ;;  %s4617_s18 = sphi %s4650_s18, %s16_s18  }
   0x2   : > { %p191_p1 = scmp.lt.s32.totalorder %s4617_s18, 6 }
   0x4   : > { %p192_p2 = pnand %p3322_p0, %p191_p1 }
   0x6   : > { %195 = sbr.rel (%p192_p2) target bundleno = 563 (0x233), region = 36 }
   0xb   : > { %v4539_v0 = vld [vmem:[%s6064_s3 + $0x78] sm:$0xff]   ;;  %v4540_v1 = vld [vmem:[%s6064_s3 + $0x70] sm:$0xff]   ;;  %v4619_v2 = vmov 0   ;;  %vm464_vm0 = vcmask 1040384   ;;  %v4541_v5 = vld [vmem:[%s6064_s3 + $0x68] sm:$0xff]   ;;  %vm580_vm1 = vcmask 1046528  }
   0xc   : > { %v4666_v3 = vrot.slane %v4619_v2, 7  ;;  %4082 = vmatprep.subr.bf16.mxu0 %v4539_v0  ;;  %4514 = vmatprep.subr.bf16.mxu1 %v4539_v0  ;;  %v4542_v9 = vld [vmem:[%s6064_s3 + $0x60] sm:$0xff]   ;;  %s3323_s28 = sshll.u32 %s4656_s19, 5  ;;  %v4543_v11 = vld [vmem:[%s6064_s3 + $0x58] sm:$0xff]   ;;  %v4544_v16 = vld [vmem:[%s6064_s3 + $0x50] sm:$0xff]   ;;  %vm1076_vm2 = vcmask 1045504  }
   0xd   : > { %4083 = vmatpush3.bf16.msra.mxu0 %v4539_v0  ;;  %4522 = vmatpush3.bf16.msra.mxu1 %v4539_v0  ;;  %p224_p3 = scmp.lt.s32.totalorder %s3323_s28, 191  ;;  %v4705_v12 = vld [vmem:[%s6062_s1] ss:$0 sm:$0xff]  ;;  %v4545_v36 = vld [vmem:[%s6064_s3 + $0x48] sm:$0xff]   ;;  %v4547_v0 = vld [vmem:[%s6064_s3 + $0x38] sm:$0xff]   ;;  %p235_p4 = scmp.lt.s32.totalorder %s4656_s19, 4 }
   0xe   : > { %v4670_v4 = vsel %vm464_vm0, 0, %v4666_v3  ;;  %4084 = vmatprep.subr.bf16.mxu0 %v4540_v1  ;;  %4515 = vmatprep.subr.bf16.mxu1 %v4540_v1  ;;  %v4677_v6 = vsel %vm464_vm0, %v4666_v3, 0  ;;  %v4718_v23 = vld [vmem:[%s6063_s2] ss:$0 sm:$0xff]  ;;  %vm5078_vm3 = vmneg %vm464_vm0 }
   0xf   : > { %v581_v7 = vrot.slane %v4670_v4, 1  ;;  %v582_v8 = vrot.slane %v4677_v6, 1  ;;  %s6176_s28 = smov (!%p224_p3, %s3323_s28), 191  ;;  %v4546_v54 = vld [vmem:[%s6064_s3 + $0x40] sm:$0xff]   ;;  %s6178_s19 = smov (!%p235_p4, %s4656_s19), 4 }
  0x10   : > { %s3324_s6 = sshll.u32 %s6176_s28, 2  ;;  %s3327_s28 = sshll.u32 %s6178_s19, 1 }
  0x11   : > { %4085 = vmatpush3.bf16.msra.mxu0 %v4540_v1  ;;  %4523 = vmatpush3.bf16.msra.mxu1 %v4540_v1  ;;  %v4686_v10 = vsel %vm580_vm1, %v581_v7, %v582_v8  ;;  %s4700_s9 = scalar_lea.vmem %s6061_s0, %s3324_s6  ;;  %s5970_s27 = scalar_lea.vmem %s6065_s4, %s3324_s6 }
  0x12   : > { %4086 = vmatprep.subr.bf16.mxu0 %v4541_v5  ;;  %4516 = vmatprep.subr.bf16.mxu1 %v4541_v5  ;;  %6085 = vst [vmem:[#allocation2_spill] sm:$0xff] %v4686_v10  ;;  %v3841_v13 = vld [vmem:[%s4700_s9 + $0x30] sm:$0xff]   ;;  %v3842_v14 = vld [vmem:[%s4700_s9 + $0x38] sm:$0xff]   ;;  %v3693_v15 = vld [vmem:[%s4700_s9] sm:$0xff]   ;;  %s238_s30 = scalar_lea.vmem %s6066_s5, %s3327_s28 }
  0x13   : > { %4098 = vmatprep.mubr.bf16.mxu0 %v4686_v10  ;;  %v3718_v17 = vunpack.c.l.bf16 %v3841_v13  ;;  %v3719_v18 = vunpack.c.h.bf16 %v3841_v13  ;;  %v3722_v19 = vunpack.c.l.bf16 %v3842_v14  ;;  %v3723_v20 = vunpack.c.h.bf16 %v3842_v14  ;;  %v3843_v21 = vld [vmem:[%s4700_s9 + $0x40] sm:$0xff]   ;;  %v3836_v22 = vld [vmem:[%s4700_s9 + $0x8] sm:$0xff]  }
  0x14   : > { %v3694_v24 = vunpack.c.l.bf16 %v3693_v15  ;;  %v3695_v25 = vunpack.c.h.bf16 %v3693_v15  ;;  %v3726_v26 = vunpack.c.l.bf16 %v3843_v21  ;;  %v3727_v27 = vunpack.c.h.bf16 %v3843_v21  ;;  %v3844_v49 = vld [vmem:[%s4700_s9 + $0x48] sm:$0xff]   ;;  %v4548_v15 = vld [vmem:[%s6064_s3 + $0xb8] sm:$0xff]  }
  0x15   : > { %4087 = vmatpush3.bf16.msra.mxu0 %v4541_v5  ;;  %4524 = vmatpush3.bf16.msra.mxu1 %v4541_v5  ;;  %v323_v28 = vmul.f32 %v3718_v17, %v4705_v12  ;;  %v324_v29 = vmul.f32 %v3719_v18, %v4705_v12  ;;  %v325_v30 = vmul.f32 %v3722_v19, %v4705_v12  ;;  %v3698_v35 = vunpack.c.l.bf16 %v3836_v22  ;;  %v3837_v18 = vld [vmem:[%s4700_s9 + $0x10] sm:$0xff]  }
  0x16   : > { %4088 = vmatprep.subr.bf16.mxu0 %v4542_v9  ;;  %4517 = vmatprep.subr.bf16.mxu1 %v4542_v9  ;;  %v326_v31 = vmul.f32 %v3723_v20, %v4705_v12  ;;  %v311_v32 = vmul.f32 %v3694_v24, %v4705_v12  ;;  %v312_v33 = vmul.f32 %v3695_v25, %v4705_v12  ;;  %v3699_v40 = vunpack.c.h.bf16 %v3836_v22 }
  0x17   : > { %v327_v34 = vmul.f32 %v3726_v26, %v4705_v12  ;;  %v362_v37 = vadd.f32 %v4718_v23, %v323_v28  ;;  %v363_v38 = vadd.f32 %v4718_v23, %v324_v29  ;;  %v364_v39 = vadd.f32 %v4718_v23, %v325_v30  ;;  %v4549_v26 = vld [vmem:[%s6064_s3 + $0x30] sm:$0xff]  }
  0x18   : > { %v365_v41 = vadd.f32 %v4718_v23, %v326_v31  ;;  %v350_v42 = vadd.f32 %v4718_v23, %v311_v32  ;;  %v351_v43 = vadd.f32 %v4718_v23, %v312_v33  ;;  %v328_v44 = vmul.f32 %v3727_v27, %v4705_v12  ;;  %v4550_v27 = vld [vmem:[%s6064_s3 + $0xb0] sm:$0xff]  }
  0x19   : > { %4089 = vmatpush3.bf16.msra.mxu0 %v4542_v9  ;;  %4525 = vmatpush3.bf16.msra.mxu1 %v4542_v9  ;;  %v394_v45 = vmax.f32 %v362_v37, 0.0  ;;  %v395_v46 = vmax.f32 %v363_v38, 0.0  ;;  %v396_v47 = vmax.f32 %v364_v39, 0.0  ;;  %v366_v48 = vadd.f32 %v4718_v23, %v327_v34  ;;  %v3845_v34 = vld [vmem:[%s4700_s9 + $0x50] sm:$0xff]  }
  0x1a   : > { %4090 = vmatprep.subr.bf16.mxu0 %v4543_v11  ;;  %4518 = vmatprep.subr.bf16.mxu1 %v4543_v11  ;;  %v397_v50 = vmax.f32 %v365_v41, 0.0  ;;  %v382_v51 = vmax.f32 %v350_v42, 0.0  ;;  %v383_v52 = vmax.f32 %v351_v43, 0.0  ;;  %v367_v53 = vadd.f32 %v4718_v23, %v328_v44 }
  0x1b   : > { %v420_v55 = vpack.c.bf16 %v395_v46, %v394_v45  ;;  %v398_v56 = vmax.f32 %v366_v48, 0.0  ;;  %v313_v57 = vmul.f32 %v3698_v35, %v4705_v12  ;;  %v314_v58 = vmul.f32 %v3699_v40, %v4705_v12  ;;  %v4552_v48 = vld [vmem:[%s6064_s3 + $0xa8] sm:$0xff]  }
  0x1c   : > { %v421_v59 = vpack.c.bf16 %v397_v50, %v396_v47  ;;  %v414_v60 = vpack.c.bf16 %v383_v52, %v382_v51  ;;  %v399_v61 = vmax.f32 %v367_v53, 0.0  ;;  %v3730_v62 = vunpack.c.l.bf16 %v3844_v49  ;;  %v4551_v47 = vld [vmem:[%s6064_s3 + $0x28] sm:$0xff]   ;;  %v3838_v53 = vld [vmem:[%s4700_s9 + $0x18] sm:$0xff]  }
  0x1d   : > { %4091 = vmatpush3.bf16.msra.mxu0 %v4543_v11  ;;  %4526 = vmatpush3.bf16.msra.mxu1 %v4543_v11  ;;  %v4745_v63 = vrot.slane %v420_v55, 7  ;;  %v352_v1 = vadd.f32 %v4718_v23, %v313_v57  ;;  %v353_v2 = vadd.f32 %v4718_v23, %v314_v58  ;;  %v3731_v5 = vunpack.c.h.bf16 %v3844_v49  ;;  %v3846_v58 = vld [vmem:[%s4700_s9 + $0x58] sm:$0xff]  }
  0x1e   : > { %4092 = vmatprep.subr.bf16.mxu0 %v4544_v16  ;;  %4519 = vmatprep.subr.bf16.mxu1 %v4544_v16  ;;  %v4752_v7 = vrot.slane %v421_v59, 7  ;;  %v4754_v8 = vrot.slane %v414_v60, 7  ;;  %v422_v9 = vpack.c.bf16 %v399_v61, %v398_v56  ;;  %v329_v11 = vmul.f32 %v3730_v62, %v4705_v12 }
  0x1f   : > { %v4759_v13 = vsel %vm464_vm0, 0, %v4745_v63  ;;  %v4763_v14 = vsel %vm464_vm0, %v4745_v63, 0  ;;  %v385_v17 = vmax.f32 %v353_v2, 0.0  ;;  %v330_v37 = vmul.f32 %v3731_v5, %v4705_v12 }
  0x20   : > { %v602_v19 = vrot.slane %v4759_v13, 1  ;;  %v603_v20 = vrot.slane %v4763_v14, 1  ;;  %v4773_v21 = vsel %vm464_vm0, 0, %v4752_v7  ;;  %v4777_v22 = vsel %vm464_vm0, %v4752_v7, 0 }
  0x21   : > { %4093 = vmatpush3.bf16.msra.mxu0 %v4544_v16  ;;  %4527 = vmatpush3.bf16.msra.mxu1 %v4544_v16  ;;  %v384_v16 = vmax.f32 %v352_v1, 0.0  ;;  %v605_v24 = vrot.slane %v4773_v21, 1  ;;  %v606_v25 = vrot.slane %v4777_v22, 1  ;;  %v4789_v28 = vsel %vm464_vm0, 0, %v4754_v8 }
  0x22   : > { %4094 = vmatprep.subr.bf16.mxu0 %v4545_v36  ;;  %4520 = vmatprep.subr.bf16.mxu1 %v4545_v36  ;;  %v4793_v29 = vsel %vm464_vm0, %v4754_v8, 0  ;;  %v4796_v30 = vsel %vm580_vm1, %v602_v19, %v603_v20  ;;  %v584_v31 = vrot.slane %v4789_v28, 1  ;;  %v4800_v33 = vrot.slane %v422_v9, 7  ;;  %v4554_v19 = vld [vmem:[%s6064_s3 + $0xa0] sm:$0xff]  }
  0x23   : > { %6086 = vst [vmem:[#allocation3_spill] sm:$0xff] %v4796_v30  ;;  %v585_v32 = vrot.slane %v4793_v29, 1  ;;  %4114 = vmatprep.mubr.bf16.mxu1 %v4796_v30  ;;  %v4805_v35 = vsel %vm580_vm1, %v605_v24, %v606_v25  ;;  %v3702_v38 = vunpack.c.l.bf16 %v3837_v18  ;;  %v368_v42 = vadd.f32 %v4718_v23, %v329_v11  ;;  %v4553_v11 = vld [vmem:[%s6064_s3 + $0x20] sm:$0xff]  }
  0x24   : > { %6087 = vst [vmem:[#allocation4_spill] sm:$0xff] %v4805_v35  ;;  %v4813_v40 = vsel %vm464_vm0, 0, %v4800_v33  ;;  %v4817_v41 = vsel %vm464_vm0, %v4800_v33, 0  ;;  %v369_v46 = vadd.f32 %v4718_v23, %v330_v37  ;;  %v3703_v50 = vunpack.c.h.bf16 %v3837_v18 }
  0x25   : > { %4095 = vmatpush3.bf16.msra.mxu0 %v4545_v36  ;;  %4528 = vmatpush3.bf16.msra.mxu1 %v4545_v36  ;;  %v415_v36 = vpack.c.bf16 %v385_v17, %v384_v16  ;;  %v4809_v39 = vsel %vm580_vm1, %v584_v31, %v585_v32  ;;  %v608_v43 = vrot.slane %v4813_v40, 1  ;;  %v609_v44 = vrot.slane %v4817_v41, 1 }
  0x26   : > { %4096 = vmatprep.subr.bf16.mxu0 %v4546_v54  ;;  %4521 = vmatprep.subr.bf16.mxu1 %v4546_v54  ;;  %v400_v49 = vmax.f32 %v368_v42, 0.0  ;;  %v315_v51 = vmul.f32 %v3702_v38, %v4705_v12  ;;  %v3734_v52 = vunpack.c.l.bf16 %v3845_v34  ;;  %v401_v57 = vmax.f32 %v369_v46, 0.0  ;;  %v3839_v42 = vld [vmem:[%s4700_s9 + $0x20] sm:$0xff]  }
  0x27   : > { %v4824_v45 = vrot.slane %v415_v36, 7  ;;  %v316_v61 = vmul.f32 %v3703_v50, %v4705_v12  ;;  %v3735_v1 = vunpack.c.h.bf16 %v3845_v34  ;;  %v3706_v5 = vunpack.c.l.bf16 %v3838_v53  ;;  %v4555_v50 = vld [vmem:[%s6064_s3 + $0x18] sm:$0xff]  }
  0x28   : > { %v354_v62 = vadd.f32 %v4718_v23, %v315_v51  ;;  %v331_v2 = vmul.f32 %v3734_v52, %v4705_v12  ;;  %v3707_v17 = vunpack.c.h.bf16 %v3838_v53  ;;  %v3738_v31 = vunpack.c.l.bf16 %v3846_v58 }
  0x29   : > { %4097 = vmatpush3.bf16.msra.mxu0 %v4546_v54  ;;  %4529 = vmatpush3.bf16.msra.mxu1 %v4546_v54  ;;  %v4836_v54 = vsel %vm580_vm1, %v608_v43, %v609_v44  ;;  %v4840_v55 = vsel %vm464_vm0, 0, %v4824_v45  ;;  %v4844_v56 = vsel %vm464_vm0, %v4824_v45, 0  ;;  %v332_v20 = vmul.f32 %v3735_v1, %v4705_v12 }
  0x2a   : > { %4130 = vmatprep.subr.bf16.mxu1 %v4547_v0  ;;  %4178 = vmatprep.subr.bf16.mxu0 %v4548_v15  ;;  %6088 = vst [vmem:[#allocation5_spill] sm:$0xff] %v4836_v54  ;;  %v587_v59 = vrot.slane %v4840_v55, 1  ;;  %v588_v60 = vrot.slane %v4844_v56, 1  ;;  %v386_v16 = vmax.f32 %v354_v62, 0.0  ;;  %v370_v24 = vadd.f32 %v4718_v23, %v331_v2 }
  0x2b   : > { %v317_v25 = vmul.f32 %v3706_v5, %v4705_v12  ;;  %v3739_v32 = vunpack.c.h.bf16 %v3846_v58  ;;  %v371_v37 = vadd.f32 %v4718_v23, %v332_v20  ;;  %v333_v53 = vmul.f32 %v3738_v31, %v4705_v12 }
  0x2c   : > { %4099 = vmatmul.mubr.bf16.vlgmr.msra.gmra.mxu0 %v4686_v10  ;;  %4115 = vmatmul.mubr.bf16.vlgmr.msra.gmra.mxu1 %v4805_v35  ;;  %v4855_v9 = vsel %vm580_vm1, %v587_v59, %v588_v60  ;;  %v402_v38 = vmax.f32 %v370_v24, 0.0  ;;  %v3710_v60 = vunpack.c.l.bf16 %v3839_v42  ;;  %v1101_v35 = vrot.slane %v4773_v21, 2 }
  0x2d   : > { %4131 = vmatpush3.bf16.msra.mxu1 %v4547_v0  ;;  %4179 = vmatpush3.bf16.msra.mxu0 %v4548_v15  ;;  %v423_v0 = vpack.c.bf16 %v401_v57, %v400_v49  ;;  %v355_v15 = vadd.f32 %v4718_v23, %v316_v61  ;;  %v356_v49 = vadd.f32 %v4718_v23, %v317_v25  ;;  %v403_v51 = vmax.f32 %v371_v37, 0.0  ;;  %v3847_v37 = vld [vmem:[%s4700_s9 + $0x60] sm:$0xff]  }
  0x2e   : > { %4132 = vmatprep.subr.bf16.mxu1 %v4549_v26  ;;  %4180 = vmatprep.subr.bf16.mxu0 %v4550_v27  ;;  %v334_v57 = vmul.f32 %v3739_v32, %v4705_v12  ;;  %v1102_v30 = vrot.slane %v4777_v22, 2 }
  0x2f   : > { %4102 = vmatprep.mubr.bf16.mxu0 %v4809_v39  ;;  %4118 = vmatprep.mubr.bf16.mxu1 %v4836_v54  ;;  %v4861_v18 = vrot.slane %v423_v0, 7  ;;  %v388_v59 = vmax.f32 %v356_v49, 0.0  ;;  %v424_v61 = vpack.c.bf16 %v403_v51, %v402_v38  ;;  %v372_v0 = vadd.f32 %v4718_v23, %v333_v53 }
  0x30   : > { %v373_v1 = vadd.f32 %v4718_v23, %v334_v57 }
  0x31   : > { %4133 = vmatpush3.bf16.msra.mxu1 %v4549_v26  ;;  %4181 = vmatpush3.bf16.msra.mxu0 %v4550_v27  ;;  %v387_v26 = vmax.f32 %v355_v15, 0.0  ;;  %v318_v27 = vmul.f32 %v3707_v17, %v4705_v12  ;;  %v4873_v34 = vsel %vm464_vm0, 0, %v4861_v18  ;;  %v4877_v36 = vsel %vm464_vm0, %v4861_v18, 0 }
  0x32   : > { %4134 = vmatprep.subr.bf16.mxu1 %v4551_v47  ;;  %4182 = vmatprep.subr.bf16.mxu0 %v4552_v48  ;;  %v611_v43 = vrot.slane %v4873_v34, 1  ;;  %v612_v44 = vrot.slane %v4877_v36, 1  ;;  %v3711_v15 = vunpack.c.h.bf16 %v3839_v42  ;;  %v4912_v24 = vrot.slane %v424_v61, 7 }
  0x33   : > { %v416_v46 = vpack.c.bf16 %v387_v26, %v386_v16  ;;  %v357_v52 = vadd.f32 %v4718_v23, %v318_v27  ;;  %v319_v16 = vmul.f32 %v3710_v60, %v4705_v12  ;;  %v404_v25 = vmax.f32 %v372_v0, 0.0  ;;  %v4558_v27 = vld [vmem:[%s6064_s3 + $0x90] sm:$0xff]  }
  0x34   : > { %4103 = vmatmul.mubr.bf16.gmra.mxu0 %v4855_v9  ;;  %v405_v26 = vmax.f32 %v373_v1, 0.0  ;;  %v320_v31 = vmul.f32 %v3711_v15, %v4705_v12  ;;  %v4928_v42 = vsel %vm464_vm0, 0, %v4912_v24  ;;  %v3742_v61 = vunpack.c.l.bf16 %v3847_v37 }
  0x35   : > { %4135 = vmatpush3.bf16.msra.mxu1 %v4551_v47  ;;  %4183 = vmatpush3.bf16.msra.mxu0 %v4552_v48  ;;  %v4556_v47 = vld [vmem:[%s6064_s3 + $0x98] sm:$0xff]   ;;  %v4894_v48 = vsel %vm580_vm1, %v611_v43, %v612_v44  ;;  %v4896_v58 = vrot.slane %v416_v46, 7  ;;  %v389_v62 = vmax.f32 %v357_v52, 0.0  ;;  %v358_v32 = vadd.f32 %v4718_v23, %v319_v16  ;;  %v3840_v46 = vld [vmem:[%s4700_s9 + $0x28] sm:$0xff]  }
  0x36   : > { %4136 = vmatprep.subr.bf16.mxu1 %v4553_v11  ;;  %4184 = vmatprep.subr.bf16.mxu0 %v4554_v19  ;;  %6089 = vst [vmem:[#allocation6_spill] sm:$0xff] %v4894_v48  ;;  %v4932_v43 = vsel %vm464_vm0, %v4912_v24, 0  ;;  %v614_v49 = vrot.slane %v4928_v42, 1  ;;  %v425_v52 = vpack.c.bf16 %v405_v26, %v404_v25  ;;  %v359_v53 = vadd.f32 %v4718_v23, %v320_v31  ;;  %v3848_v16 = vld [vmem:[%s4700_s9 + $0x68] sm:$0xff]  }
  0x37   : > { %4119 = vmatmul.mubr.bf16.gmra.mxu1 %v4894_v48  ;;  %v4903_v2 = vsel %vm464_vm0, 0, %v4896_v58  ;;  %v4907_v5 = vsel %vm464_vm0, %v4896_v58, 0  ;;  %v615_v51 = vrot.slane %v4932_v43, 1  ;;  %v390_v60 = vmax.f32 %v358_v32, 0.0  ;;  %v4560_v25 = vld [vmem:[%s6064_s3 + $0x88] sm:$0xff]  }
  0x38   : > { %v590_v17 = vrot.slane %v4903_v2, 1  ;;  %v591_v20 = vrot.slane %v4907_v5, 1  ;;  %v4957_v15 = vrot.slane %v425_v52, 7  ;;  %v3746_v10 = vunpack.c.l.bf16 %v3848_v16 }
  0x39   : > { %4137 = vmatpush3.bf16.msra.mxu1 %v4553_v11  ;;  %4185 = vmatpush3.bf16.msra.mxu0 %v4554_v19  ;;  %v417_v11 = vpack.c.bf16 %v389_v62, %v388_v59  ;;  %v4557_v19 = vld [vmem:[%s6064_s3 + $0x10] sm:$0xff]   ;;  %v4559_v62 = vld [vmem:[%s6064_s3 + $0x8] sm:$0xff]   ;;  %v1107_v21 = vrot.slane %v4873_v34, 2  ;;  %v1108_v22 = vrot.slane %v4877_v36, 2  ;;  %v1086_v36 = vrot.slane %v4903_v2, 2 }
  0x3a   : > { %4138 = vmatprep.subr.bf16.mxu1 %v4555_v50  ;;  %4186 = vmatprep.subr.bf16.mxu0 %v4556_v47  ;;  %v4924_v38 = vsel %vm580_vm1, %v590_v17, %v591_v20  ;;  %v3743_v17 = vunpack.c.h.bf16 %v3847_v37  ;;  %v335_v20 = vmul.f32 %v3742_v61, %v4705_v12  ;;  %v4970_v31 = vsel %vm464_vm0, 0, %v4957_v15  ;;  %v4566_v34 = vld [vmem:[%s6064_s3 + $0x130] sm:$0xff]   ;;  %v4568_v2 = vld [vmem:[%s6064_s3 + $0x128] sm:$0xff]  }
  0x3b   : > { %v4934_v44 = vrot.slane %v417_v11, 7  ;;  %4106 = vmatprep.mubr.bf16.mxu0 %v4924_v38  ;;  %v3714_v11 = vunpack.c.l.bf16 %v3840_v46  ;;  %v4974_v32 = vsel %vm464_vm0, %v4957_v15, 0  ;;  %v3715_v37 = vunpack.c.h.bf16 %v3840_v46 }
  0x3c   : > { %v374_v61 = vadd.f32 %v4718_v23, %v335_v20 }
  0x3d   : > { %4139 = vmatpush3.bf16.msra.mxu1 %v4555_v50  ;;  %v4943_v57 = vsel %vm464_vm0, 0, %v4934_v44  ;;  %v4947_v59 = vsel %vm464_vm0, %v4934_v44, 0  ;;  %4187 = vmatpush3.bf16.msra.mxu0 %v4556_v47  ;;  %v4953_v50 = vsel %vm580_vm1, %v614_v49, %v615_v51  ;;  %v391_v47 = vmax.f32 %v359_v53, 0.0 }
  0x3e   : > { %4140 = vmatprep.subr.bf16.mxu1 %v4557_v19  ;;  %6090 = vst [vmem:[#allocation7_spill] sm:$0xff] %v4953_v50  ;;  %v593_v0 = vrot.slane %v4943_v57, 1  ;;  %v594_v1 = vrot.slane %v4947_v59, 1  ;;  %4188 = vmatprep.subr.bf16.mxu0 %v4558_v27  ;;  %v617_v49 = vrot.slane %v4970_v31, 1  ;;  %v618_v51 = vrot.slane %v4974_v32, 1 }
  0x3f   : > { %4122 = vmatprep.mubr.bf16.mxu1 %v4953_v50  ;;  %v418_v52 = vpack.c.bf16 %v391_v47, %v390_v60  ;;  %v336_v53 = vmul.f32 %v3743_v17, %v4705_v12  ;;  %v3747_v47 = vunpack.c.h.bf16 %v3848_v16  ;;  %v406_v17 = vmax.f32 %v374_v61, 0.0 }
  0x40   : > { %v4966_v26 = vsel %vm580_vm1, %v593_v0, %v594_v1  ;;  %v321_v0 = vmul.f32 %v3714_v11, %v4705_v12  ;;  %v322_v1 = vmul.f32 %v3715_v37, %v4705_v12  ;;  %v4987_v46 = vsel %vm580_vm1, %v617_v49, %v618_v51 }
  0x41   : > { %4141 = vmatpush3.bf16.msra.mxu1 %v4557_v19  ;;  %4107 = vmatmul.mubr.bf16.gmra.mxu0 %v4966_v26  ;;  %v4561_v19 = vld [vmem:[%s6064_s3] sm:$0xff]   ;;  %6091 = vst [vmem:[#allocation8_spill] sm:$0xff] %v4987_v46  ;;  %v4989_v50 = vrot.slane %v418_v52, 7  ;;  %v375_v60 = vadd.f32 %v4718_v23, %v336_v53  ;;  %v337_v37 = vmul.f32 %v3746_v10, %v4705_v12  ;;  %v5011_v53 = vld [vmem:[%s6064_s3 + $0xf8] sm:$0xff]  }
  0x42   : > { %4142 = vmatprep.subr.bf16.mxu1 %v4559_v62  ;;  %4189 = vmatpush3.bf16.msra.mxu0 %v4558_v27  ;;  %v4562_v27 = vld [vmem:[%s6064_s3 + $0x80] sm:$0xff]   ;;  %v360_v20 = vadd.f32 %v4718_v23, %v321_v0  ;;  %v361_v11 = vadd.f32 %v4718_v23, %v322_v1  ;;  %v338_v52 = vmul.f32 %v3747_v47, %v4705_v12 }
  0x43   : > { %4190 = vmatprep.subr.bf16.mxu0 %v4560_v25  ;;  %4123 = vmatmul.mubr.bf16.gmra.mxu1 %v4987_v46  ;;  %v5001_v49 = vsel %vm464_vm0, 0, %v4989_v50  ;;  %v5005_v16 = vsel %vm464_vm0, %v4989_v50, 0  ;;  %v407_v51 = vmax.f32 %v375_v60, 0.0  ;;  %v376_v48 = vadd.f32 %v4718_v23, %v337_v37 }
  0x44   : > { %v596_v61 = vrot.slane %v5001_v49, 1  ;;  %v597_v10 = vrot.slane %v5005_v16, 1  ;;  %v392_v0 = vmax.f32 %v360_v20, 0.0  ;;  %v393_v1 = vmax.f32 %v361_v11, 0.0 }
  0x45   : > { %4143 = vmatpush3.bf16.msra.mxu1 %v4559_v62  ;;  %v426_v46 = vpack.c.bf16 %v407_v51, %v406_v17  ;;  %v377_v60 = vadd.f32 %v4718_v23, %v338_v52  ;;  %v5020_v62 = vld [vmem:[%s6064_s3 + $0x138] sm:$0xff]   ;;  %v1077_v37 = vrot.slane %v4670_v4, 2  ;;  %v1078_v51 = vrot.slane %v4677_v6, 2 }
  0x46   : > { %4191 = vmatpush3.bf16.msra.mxu0 %v4560_v25  ;;  %4144 = vmatprep.subr.bf16.mxu1 %v4561_v19  ;;  %v5023_v47 = vsel %vm580_vm1, %v596_v61, %v597_v10  ;;  %v419_v54 = vpack.c.bf16 %v393_v1, %v392_v0  ;;  %v408_v25 = vmax.f32 %v376_v48, 0.0 }
  0x47   : > { %4192 = vmatprep.subr.bf16.mxu0 %v4562_v27  ;;  %4110 = vmatprep.mubr.bf16.mxu0 %v5023_v47  ;;  %v5026_v20 = vrot.slane %v426_v46, 7  ;;  %v409_v17 = vmax.f32 %v377_v60, 0.0  ;;  %v5060_v1 = vsel %vm1076_vm2, %v1077_v37, %v1078_v51 }
  0x48   : > { %v5028_v11 = vrot.slane %v419_v54, 7 }
  0x49   : > { %4145 = vmatpush3.bf16.msra.mxu1 %v4561_v19  ;;  %v5035_v52 = vsel %vm464_vm0, 0, %v5026_v20  ;;  %v5039_v46 = vsel %vm464_vm0, %v5026_v20, 0  ;;  %v427_v48 = vpack.c.bf16 %v409_v17, %v408_v25 }
  0x4a   : > { %4193 = vmatpush3.bf16.msra.mxu0 %v4562_v27  ;;  %4226 = vmatprep.subr.bf16.mxu1 %v5011_v53  ;;  %v620_v54 = vrot.slane %v5035_v52, 1  ;;  %v621_v4 = vrot.slane %v5039_v46, 1  ;;  %v5046_v6 = vsel %vm464_vm0, 0, %v5028_v11  ;;  %v5050_v19 = vsel %vm464_vm0, %v5028_v11, 0 }
  0x4b   : > { %4274 = vmatprep.subr.bf16.mxu0 %v5020_v62  ;;  %v599_v27 = vrot.slane %v5046_v6, 1  ;;  %v600_v61 = vrot.slane %v5050_v19, 1  ;;  %v5054_v10 = vrot.slane %v427_v48, 7 }
  0x4c   : > { %v5057_v0 = vsel %vm580_vm1, %v620_v54, %v621_v4  ;;  %v1080_v54 = vrot.slane %v4789_v28, 2  ;;  %v1081_v4 = vrot.slane %v4793_v29, 2  ;;  %v1104_v29 = vrot.slane %v4813_v40, 2 }
  0x4d   : > { %6092 = vst [vmem:[#allocation9_spill] sm:$0xff] %v5057_v0  ;;  %4126 = vmatprep.mubr.bf16.mxu1 %v5057_v0  ;;  %v5064_v60 = vsel %vm580_vm1, %v599_v27, %v600_v61  ;;  %v5068_v25 = vsel %vm464_vm0, 0, %v5054_v10  ;;  %v5072_v17 = vsel %vm464_vm0, %v5054_v10, 0  ;;  %v1098_v27 = vrot.slane %v4759_v13, 2 }
  0x4e   : > { %6093 = vst [vmem:[#allocation10_spill] sm:$0xff] %v5064_v60  ;;  %4111 = vmatmul.mubr.bf16.gmra.mxu0 %v5064_v60  ;;  %v623_v48 = vrot.slane %v5068_v25, 1  ;;  %v624_v37 = vrot.slane %v5072_v17, 1  ;;  %v1099_v61 = vrot.slane %v4763_v14, 2  ;;  %v1083_v60 = vrot.slane %v4840_v55, 2 }
  0x4f   : > { %4194 = vmatprep.mubr.bf16.mxu0 %v5060_v1  ;;  %v1105_v13 = vrot.slane %v4817_v41, 2  ;;  %v5103_v14 = vsel %vm1076_vm2, %v1101_v35, %v1102_v30  ;;  %v1110_v55 = vrot.slane %v4928_v42, 2  ;;  %v1111_v40 = vrot.slane %v4932_v43, 2  ;;  %v4565_v43 = vld [vmem:[%s6064_s3 + $0xf0] sm:$0xff]  }
  0x50   : > { %v5088_v0 = vsel %vm580_vm1, %v623_v48, %v624_v37  ;;  %v5095_v28 = vsel %vm1076_vm2, %v1098_v27, %v1099_v61  ;;  %v3849_v48 = vld [vmem:[%s4700_s9 + $0x70] sm:$0xff]   ;;  %v1113_v41 = vrot.slane %v4970_v31, 2  ;;  %v1114_v27 = vrot.slane %v4974_v32, 2  ;;  %v3850_v61 = vld [vmem:[%s4700_s9 + $0x78] sm:$0xff]  }
  0x51   : > { %4127 = vmatmul.mubr.bf16.gmra.mxu1 %v5088_v0  ;;  %v5110_v37 = vsel %vm1076_vm2, %v1104_v29, %v1105_v13  ;;  %v5117_v30 = vsel %vm1076_vm2, %v1080_v54, %v1081_v4  ;;  %v1084_v35 = vrot.slane %v4844_v56, 2  ;;  %v5125_v42 = vsel %vm1076_vm2, %v1107_v21, %v1108_v22 }
  0x52   : > { %4146 = vmatprep.mubr.msk.bf16.mxu1 %vm5078_vm3, %v4666_v3  ;;  %v1087_v31 = vrot.slane %v4907_v5, 2  ;;  %v5132_v32 = vsel %vm1076_vm2, %v1110_v55, %v1111_v40  ;;  %v5135_v56 = vsel %vm1076_vm2, %v1113_v41, %v1114_v27  ;;  %v3750_v54 = vunpack.c.l.bf16 %v3849_v48 }
  0x53   : > { %v3751_v4 = vunpack.c.h.bf16 %v3849_v48  ;;  %v3754_v29 = vunpack.c.l.bf16 %v3850_v61  ;;  %v3755_v13 = vunpack.c.h.bf16 %v3850_v61  ;;  %v5162_v27 = vsel %vm1076_vm2, %v1083_v60, %v1084_v35  ;;  %v4569_v60 = vld [vmem:[%s6064_s3 + $0xe0] sm:$0xff]  }
  0x54   : > { %v339_v5 = vmul.f32 %v3750_v54, %v4705_v12  ;;  %v1089_v61 = vrot.slane %v4943_v57, 2  ;;  %v4570_v54 = vld [vmem:[%s6064_s3 + $0x120] sm:$0xff]  }
  0x55   : > { %v340_v21 = vmul.f32 %v3751_v4, %v4705_v12  ;;  %v341_v22 = vmul.f32 %v3754_v29, %v4705_v12  ;;  %v342_v55 = vmul.f32 %v3755_v13, %v4705_v12  ;;  %v1090_v29 = vrot.slane %v4947_v59, 2 }
  0x56   : > { %4195 = vmatmul.mubr.bf16.vlgmr.msra.gmra.mxu0 %v5060_v1  ;;  %v378_v48 = vadd.f32 %v4718_v23, %v339_v5  ;;  %v1092_v59 = vrot.slane %v5001_v49, 2  ;;  %v4571_v49 = vld [vmem:[%s6064_s3 + $0xd8] sm:$0xff]  }
  0x57   : > { %4275 = vmatpush3.bf16.msra.mxu0 %v5020_v62  ;;  %4198 = vmatprep.mubr.bf16.mxu0 %v5117_v30  ;;  %v4567_v62 = vld [vmem:[%s6064_s3 + $0xe8] sm:$0xff]   ;;  %v379_v40 = vadd.f32 %v4718_v23, %v340_v21  ;;  %v380_v12 = vadd.f32 %v4718_v23, %v341_v22  ;;  %v381_v41 = vadd.f32 %v4718_v23, %v342_v55  ;;  %v1096_v21 = vrot.slane %v5050_v19, 2  ;;  %v4573_v22 = vld [vmem:[%s6064_s3 + $0xd0] sm:$0xff]  }
  0x58   : > { %4276 = vmatprep.subr.bf16.mxu0 %v4566_v34  ;;  %v410_v4 = vmax.f32 %v378_v48, 0.0  ;;  %v4576_v55 = vld [vmem:[%s6064_s3 + $0x108] sm:$0xff]   ;;  %v4578_v48 = vld [vmem:[%s6064_s3 + $0x100] sm:$0xff]  }
  0x59   : > { %4147 = vmatmul.mubr.msk.bf16.vlgmr.msra.gmra.mxu1 %vm5078_vm3, %v4666_v3  ;;  %v411_v13 = vmax.f32 %v379_v40, 0.0  ;;  %v412_v23 = vmax.f32 %v380_v12, 0.0  ;;  %v413_v5 = vmax.f32 %v381_v41, 0.0  ;;  %v4575_v19 = vld [vmem:[%s6064_s3 + $0xc8] sm:$0xff]   ;;  %v4580_v40 = vld [vmem:[%s6064_s3 + $0x1b8] sm:$0xff]   ;;  %v1116_v41 = vrot.slane %v5035_v52, 2 }
  0x5a   : > { %4227 = vmatpush3.bf16.msra.mxu1 %v5011_v53  ;;  %4150 = vmatprep.mubr.msk.bf16.mxu1 %vm5078_vm3, %v4754_v8  ;;  %v5165_v53 = vsel %vm1076_vm2, %v1086_v36, %v1087_v31  ;;  %v4572_v36 = vld [vmem:[%s6064_s3 + $0x118] sm:$0xff]   ;;  %v4574_v31 = vld [vmem:[%s6064_s3 + $0x110] sm:$0xff]   ;;  %v1119_v52 = vrot.slane %v5068_v25, 2 }
  0x5b   : > { %4228 = vmatprep.subr.bf16.mxu1 %v4565_v43  ;;  %4277 = vmatpush3.bf16.msra.mxu0 %v4566_v34  ;;  %v5176_v35 = vpack.c.bf16 %v411_v13, %v410_v4  ;;  %v5178_v57 = vpack.c.bf16 %v413_v5, %v412_v23  ;;  %v1093_v34 = vrot.slane %v5005_v16, 2  ;;  %v4579_v12 = vld [vmem:[%s6064_s3 + $0x178] sm:$0xff]  }
  0x5c   : > { %4278 = vmatprep.subr.bf16.mxu0 %v4568_v2 }
  0x5d   : > { %v5199_v16 = vsel %vm1076_vm2, %v1092_v59, %v1093_v34  ;;  %v5268_v4 = vrot.slane %v5176_v35, 7  ;;  %v5286_v23 = vrot.slane %v5178_v57, 7 }
  0x5e   : > { %4199 = vmatmul.mubr.bf16.gmra.mxu0 %v5162_v27  ;;  %4229 = vmatpush3.bf16.msra.mxu1 %v4565_v43  ;;  %v5193_v43 = vsel %vm1076_vm2, %v1089_v61, %v1090_v29  ;;  %v1117_v61 = vrot.slane %v5039_v46, 2  ;;  %v1120_v46 = vrot.slane %v5072_v17, 2 }
  0x5f   : > { %4202 = vmatprep.mubr.bf16.mxu0 %v5165_v53  ;;  %4230 = vmatprep.subr.bf16.mxu1 %v4567_v62  ;;  %v5276_v29 = vsel %vm464_vm0, 0, %v5268_v4  ;;  %v5280_v13 = vsel %vm464_vm0, %v5268_v4, 0  ;;  %v5301_v35 = vsel %vm464_vm0, 0, %v5286_v23  ;;  %v5305_v57 = vsel %vm464_vm0, %v5286_v23, 0 }
  0x60   : > { %4279 = vmatpush3.bf16.msra.mxu0 %v4568_v2  ;;  %v1095_v2 = vrot.slane %v5046_v6, 2  ;;  %v1923_v5 = vrot.slane %v5276_v29, 2  ;;  %v1924_v25 = vrot.slane %v5280_v13, 2  ;;  %v5294_v17 = vsel %vm1076_vm2, %v1119_v52, %v1120_v46  ;;  %v4593_v52 = vld [vmem:[%s6064_s3 + $0x140] sm:$0xff]   ;;  %v4596_v46 = vld [vmem:[%s6064_s3 + $0x238] sm:$0xff]  }
  0x61   : > { %4151 = vmatmul.mubr.msk.bf16.gmra.mxu1 %vm5078_vm3, %v4824_v45  ;;  %4280 = vmatprep.subr.bf16.mxu0 %v4570_v54  ;;  %v1926_v59 = vrot.slane %v5301_v35, 2  ;;  %v1927_v34 = vrot.slane %v5305_v57, 2 }
  0x62   : > { %4154 = vmatprep.mubr.msk.bf16.mxu1 %vm5078_vm3, %v4896_v58  ;;  %4231 = vmatpush3.bf16.msra.mxu1 %v4567_v62  ;;  %v5221_v6 = vsel %vm1076_vm2, %v1095_v2, %v1096_v21  ;;  %v4577_v62 = vld [vmem:[%s6064_s3 + $0xc0] sm:$0xff]   ;;  %v4588_v2 = vld [vmem:[%s6064_s3 + $0x198] sm:$0xff]  }
  0x63   : > { %4232 = vmatprep.subr.bf16.mxu1 %v4569_v60  ;;  %v4587_v21 = vld [vmem:[%s6064_s3 + $0x158] sm:$0xff]  }
  0x64   : > { %4281 = vmatpush3.bf16.msra.mxu0 %v4570_v54  ;;  %v5265_v54 = vsel %vm1076_vm2, %v1116_v41, %v1117_v61  ;;  %v6098_v41 = vld [vmem:[#allocation4_spill] sm:$0xff]  ;;  %v6099_v61 = vld [vmem:[#allocation5_spill] sm:$0xff] }
  0x65   : > { %4282 = vmatprep.subr.bf16.mxu0 %v4572_v36 }
  0x66   : > { %4203 = vmatmul.mubr.bf16.gmra.mxu0 %v5193_v43  ;;  %4233 = vmatpush3.bf16.msra.mxu1 %v4569_v60  ;;  %v5297_v60 = vsel %vm1076_vm2, %v1923_v5, %v1924_v25  ;;  %v4595_v5 = vld [vmem:[%s6064_s3 + $0x1f8] sm:$0xff]   ;;  %v6100_v25 = vld [vmem:[#allocation6_spill] sm:$0xff] }
  0x67   : > { %4206 = vmatprep.mubr.bf16.mxu0 %v5199_v16  ;;  %4234 = vmatprep.subr.bf16.mxu1 %v4571_v49 }
  0x68   : > { %4283 = vmatpush3.bf16.msra.mxu0 %v4572_v36  ;;  %v5312_v36 = vsel %vm1076_vm2, %v1926_v59, %v1927_v34  ;;  %v6101_v59 = vld [vmem:[#allocation7_spill] sm:$0xff]  ;;  %v6102_v34 = vld [vmem:[#allocation8_spill] sm:$0xff] }
  0x69   : > { %4155 = vmatmul.mubr.msk.bf16.gmra.mxu1 %vm5078_vm3, %v4934_v44  ;;  %4284 = vmatprep.subr.bf16.mxu0 %v4574_v31 }
  0x6a   : > { %4158 = vmatprep.mubr.msk.bf16.mxu1 %vm5078_vm3, %v4989_v50  ;;  %4235 = vmatpush3.bf16.msra.mxu1 %v4571_v49  ;;  %v4582_v49 = vld [vmem:[%s6064_s3 + $0x1b0] sm:$0xff]  }
  0x6b   : > { %4236 = vmatprep.subr.bf16.mxu1 %v4573_v22 }
  0x6c   : > { %4285 = vmatpush3.bf16.msra.mxu0 %v4574_v31  ;;  %v4584_v31 = vld [vmem:[%s6064_s3 + $0x1a8] sm:$0xff]  }
  0x6d   : > { %4286 = vmatprep.subr.bf16.mxu0 %v4576_v55 }
  0x6e   : > { %4207 = vmatmul.mubr.bf16.gmra.mxu0 %v5221_v6  ;;  %4237 = vmatpush3.bf16.msra.mxu1 %v4573_v22  ;;  %v4590_v22 = vld [vmem:[%s6064_s3 + $0x190] sm:$0xff]  }
  0x6f   : > { %4210 = vmatprep.mubr.bf16.mxu0 %v5095_v28  ;;  %4238 = vmatprep.subr.bf16.mxu1 %v4575_v19 }
  0x70   : > { %4287 = vmatpush3.bf16.msra.mxu0 %v4576_v55  ;;  %v6096_v55 = vld [vmem:[#allocation10_spill] sm:$0xff] }
  0x71   : > { %4159 = vmatmul.mubr.msk.bf16.gmra.mxu1 %vm5078_vm3, %v5028_v11  ;;  %4288 = vmatprep.subr.bf16.mxu0 %v4578_v48 }
  0x72   : > { %4162 = vmatprep.mubr.msk.bf16.mxu1 %vm5078_vm3, %v4745_v63  ;;  %4239 = vmatpush3.bf16.msra.mxu1 %v4575_v19  ;;  %v6097_v19 = vld [vmem:[#allocation3_spill] sm:$0xff] }
  0x73   : > { %4240 = vmatprep.subr.bf16.mxu1 %v4577_v62 }
  0x74   : > { %4289 = vmatpush3.bf16.msra.mxu0 %v4578_v48  ;;  %v4589_v48 = vld [vmem:[%s6064_s3 + $0x150] sm:$0xff]  }
  0x75   : > { %4370 = vmatprep.subr.bf16.mxu0 %v4580_v40 }
  0x76   : > { %4211 = vmatmul.mubr.bf16.gmra.mxu0 %v5103_v14  ;;  %4241 = vmatpush3.bf16.msra.mxu1 %v4577_v62  ;;  %v4592_v62 = vld [vmem:[%s6064_s3 + $0x188] sm:$0xff]  }
  0x77   : > { %4214 = vmatprep.mubr.bf16.mxu0 %v5110_v37  ;;  %4322 = vmatprep.subr.bf16.mxu1 %v4579_v12 }
  0x79   : > { %4163 = vmatmul.mubr.msk.bf16.gmra.mxu1 %vm5078_vm3, %v4752_v7 }
  0x7a   : > { %4166 = vmatprep.mubr.msk.bf16.mxu1 %vm5078_vm3, %v4800_v33 }
  0x7e   : > { %4215 = vmatmul.mubr.bf16.gmra.mxu0 %v5125_v42 }
  0x7f   : > { %4218 = vmatprep.mubr.bf16.mxu0 %v5132_v32 }
  0x81   : > { %4167 = vmatmul.mubr.msk.bf16.gmra.mxu1 %vm5078_vm3, %v4861_v18 }
  0x82   : > { %4170 = vmatprep.mubr.msk.bf16.mxu1 %vm5078_vm3, %v4912_v24 }
  0x86   : > { %4219 = vmatmul.mubr.bf16.gmra.mxu0 %v5135_v56 }
  0x87   : > { %4222 = vmatprep.mubr.bf16.mxu0 %v5265_v54 }
  0x89   : > { %4171 = vmatmul.mubr.msk.bf16.gmra.mxu1 %vm5078_vm3, %v4957_v15 }
  0x8a   : > { %4174 = vmatprep.mubr.msk.bf16.mxu1 %vm5078_vm3, %v5026_v20 }
  0x8e   : > { %4223 = vmatmul.mubr.bf16.gmra.mxu0 %v5294_v17 }
  0x8f   : > { %4290 = vmatprep.mubr.bf16.mxu0 %v4809_v39  ;;  %v4581_v39 = vld [vmem:[%s6064_s3 + $0x170] sm:$0xff]  }
  0x91   : > { %4175 = vmatmul.mubr.msk.bf16.gmra.mxu1 %vm5078_vm3, %v5054_v10 }
  0x92   : > { %4242 = vmatprep.mubr.msk.bf16.mxu1 %vm5078_vm3, %v4754_v8  ;;  %v4583_v8 = vld [vmem:[%s6064_s3 + $0x168] sm:$0xff]  }
  0x96   : > { %4291 = vmatmul.mubr.bf16.vlgmr.msra.gmra.mxu0 %v4855_v9  ;;  %v4586_v9 = vld [vmem:[%s6064_s3 + $0x1a0] sm:$0xff]  }
  0x97   : > { %4371 = vmatpush3.bf16.msra.mxu0 %v4580_v40  ;;  %4294 = vmatprep.mubr.bf16.mxu0 %v4924_v38  ;;  %v4591_v40 = vld [vmem:[%s6064_s3 + $0x148] sm:$0xff]  }
  0x98   : > { %4372 = vmatprep.subr.bf16.mxu0 %v4582_v49 }
  0x99   : > { %4243 = vmatmul.mubr.msk.bf16.vlgmr.msra.gmra.mxu1 %vm5078_vm3, %v4824_v45  ;;  %v4585_v45 = vld [vmem:[%s6064_s3 + $0x160] sm:$0xff]  }
  0x9a   : > { %4323 = vmatpush3.bf16.msra.mxu1 %v4579_v12  ;;  %4246 = vmatprep.mubr.msk.bf16.mxu1 %vm5078_vm3, %v4896_v58  ;;  %v4594_v12 = vld [vmem:[%s6064_s3 + $0x180] sm:$0xff]  }
  0x9b   : > { %4324 = vmatprep.subr.bf16.mxu1 %v4581_v39  ;;  %4373 = vmatpush3.bf16.msra.mxu0 %v4582_v49  ;;  %v6103_v49 = vld [vmem:[#allocation9_spill] sm:$0xff] }
  0x9c   : > { %4374 = vmatprep.subr.bf16.mxu0 %v4584_v31 }
  0x9e   : > { %4295 = vmatmul.mubr.bf16.gmra.mxu0 %v4966_v26  ;;  %4325 = vmatpush3.bf16.msra.mxu1 %v4581_v39  ;;  %v1657_v39 = vrot.slane %v5276_v29, 1  ;;  %v1661_v29 = vrot.slane %v5305_v57, 1  ;;  %v4604_v57 = vld [vmem:[%s6064_s3 + $0x218] sm:$0xff]  }
  0x9f   : > { %4298 = vmatprep.mubr.bf16.mxu0 %v5023_v47  ;;  %4326 = vmatprep.subr.bf16.mxu1 %v4583_v8 }
  0xa0   : > { %4375 = vmatpush3.bf16.msra.mxu0 %v4584_v31  ;;  %v1658_v31 = vrot.slane %v5280_v13, 1 }
  0xa1   : > { %4247 = vmatmul.mubr.msk.bf16.gmra.mxu1 %vm5078_vm3, %v4934_v44  ;;  %4376 = vmatprep.subr.bf16.mxu0 %v4586_v9 }
  0xa2   : > { %4250 = vmatprep.mubr.msk.bf16.mxu1 %vm5078_vm3, %v4989_v50  ;;  %4327 = vmatpush3.bf16.msra.mxu1 %v4583_v8  ;;  %v5419_v8 = vsel %vm580_vm1, %v1657_v39, %v1658_v31 }
  0xa3   : > { %4328 = vmatprep.subr.bf16.mxu1 %v4585_v45 }
  0xa4   : > { %4377 = vmatpush3.bf16.msra.mxu0 %v4586_v9  ;;  %v1660_v9 = vrot.slane %v5301_v35, 1  ;;  %v4598_v35 = vld [vmem:[%s6064_s3 + $0x230] sm:$0xff]  }
  0xa5   : > { %4378 = vmatprep.subr.bf16.mxu0 %v4588_v2 }
  0xa6   : > { %4299 = vmatmul.mubr.bf16.gmra.mxu0 %v6096_v55  ;;  %4329 = vmatpush3.bf16.msra.mxu1 %v4585_v45  ;;  %v5432_v13 = vsel %vm580_vm1, %v1660_v9, %v1661_v29  ;;  %v4605_v45 = vld [vmem:[%s6064_s3 + $0x1d0] sm:$0xff]  }
  0xa7   : > { %4302 = vmatprep.mubr.bf16.mxu0 %v6097_v19  ;;  %4330 = vmatprep.subr.bf16.mxu1 %v4587_v21 }
  0xa8   : > { %4379 = vmatpush3.bf16.msra.mxu0 %v4588_v2 }
  0xa9   : > { %4251 = vmatmul.mubr.msk.bf16.gmra.mxu1 %vm5078_vm3, %v5028_v11  ;;  %4380 = vmatprep.subr.bf16.mxu0 %v4590_v22 }
  0xaa   : > { %4254 = vmatprep.mubr.msk.bf16.mxu1 %vm5078_vm3, %v4745_v63  ;;  %4331 = vmatpush3.bf16.msra.mxu1 %v4587_v21 }
  0xab   : > { %4332 = vmatprep.subr.bf16.mxu1 %v4589_v48 }
  0xac   : > { %4381 = vmatpush3.bf16.msra.mxu0 %v4590_v22 }
  0xad   : > { %4382 = vmatprep.subr.bf16.mxu0 %v4592_v62 }
  0xae   : > { %4303 = vmatmul.mubr.bf16.gmra.mxu0 %v6098_v41  ;;  %4333 = vmatpush3.bf16.msra.mxu1 %v4589_v48  ;;  %v4607_v48 = vld [vmem:[%s6064_s3 + $0x1c8] sm:$0xff]  }
  0xaf   : > { %4306 = vmatprep.mubr.bf16.mxu0 %v6099_v61  ;;  %4334 = vmatprep.subr.bf16.mxu1 %v4591_v40 }
  0xb0   : > { %4383 = vmatpush3.bf16.msra.mxu0 %v4592_v62 }
  0xb1   : > { %4255 = vmatmul.mubr.msk.bf16.gmra.mxu1 %vm5078_vm3, %v4752_v7  ;;  %4384 = vmatprep.subr.bf16.mxu0 %v4594_v12 }
  0xb2   : > { %4258 = vmatprep.mubr.msk.bf16.mxu1 %vm5078_vm3, %v4800_v33  ;;  %4335 = vmatpush3.bf16.msra.mxu1 %v4591_v40 }
  0xb3   : > { %4336 = vmatprep.subr.bf16.mxu1 %v4593_v52 }
  0xb4   : > { %4385 = vmatpush3.bf16.msra.mxu0 %v4594_v12  ;;  %v4610_v12 = vld [vmem:[%s6064_s3 + $0x200] sm:$0xff]  }
  0xb5   : > { %4466 = vmatprep.subr.bf16.mxu0 %v4596_v46 }
  0xb6   : > { %4307 = vmatmul.mubr.bf16.gmra.mxu0 %v6100_v25  ;;  %4337 = vmatpush3.bf16.msra.mxu1 %v4593_v52 }
  0xb7   : > { %4310 = vmatprep.mubr.bf16.mxu0 %v6101_v59  ;;  %4418 = vmatprep.subr.bf16.mxu1 %v4595_v5 }
  0xb9   : > { %4259 = vmatmul.mubr.msk.bf16.gmra.mxu1 %vm5078_vm3, %v4861_v18 }
  0xba   : > { %4262 = vmatprep.mubr.msk.bf16.mxu1 %vm5078_vm3, %v4912_v24 }
  0xbe   : > { %4311 = vmatmul.mubr.bf16.gmra.mxu0 %v6102_v34 }
  0xbf   : > { %4314 = vmatprep.mubr.bf16.mxu0 %v6103_v49 }
  0xc1   : > { %4263 = vmatmul.mubr.msk.bf16.gmra.mxu1 %vm5078_vm3, %v4957_v15 }
  0xc2   : > { %4266 = vmatprep.mubr.msk.bf16.mxu1 %vm5078_vm3, %v5026_v20 }
  0xc6   : > { %4315 = vmatmul.mubr.bf16.gmra.mxu0 %v5088_v0 }
  0xc7   : > { %4318 = vmatprep.mubr.bf16.mxu0 %v5419_v8 }
  0xc9   : > { %4267 = vmatmul.mubr.msk.bf16.gmra.mxu1 %vm5078_vm3, %v5054_v10 }
  0xca   : > { %4270 = vmatprep.mubr.msk.bf16.mxu1 %vm5078_vm3, %v5268_v4 }
  0xce   : > { %4319 = vmatmul.mubr.bf16.gmra.mxu0 %v5432_v13 }
  0xcf   : > { %4386 = vmatprep.mubr.msk.bf16.mxu0 %vm5078_vm3, %v4896_v58  ;;  %v4597_v58 = vld [vmem:[%s6064_s3 + $0x1f0] sm:$0xff]  }
  0xd1   : > { %4271 = vmatmul.mubr.msk.bf16.gmra.mxu1 %vm5078_vm3, %v5286_v23 }
  0xd2   : > { %4338 = vmatprep.mubr.bf16.mxu1 %v5117_v30  ;;  %v4600_v30 = vld [vmem:[%s6064_s3 + $0x228] sm:$0xff]  }
  0xd6   : > { %4387 = vmatmul.mubr.msk.bf16.vlgmr.msra.gmra.mxu0 %vm5078_vm3, %v4934_v44  ;;  %v4599_v44 = vld [vmem:[%s6064_s3 + $0x1e8] sm:$0xff]  }
  0xd7   : > { %4467 = vmatpush3.bf16.msra.mxu0 %v4596_v46  ;;  %4390 = vmatprep.mubr.msk.bf16.mxu0 %vm5078_vm3, %v4989_v50  ;;  %v4602_v50 = vld [vmem:[%s6064_s3 + $0x220] sm:$0xff]  }
  0xd8   : > { %4468 = vmatprep.subr.bf16.mxu0 %v4598_v35  ;;  %v4609_v46 = vld [vmem:[%s6064_s3 + $0x1c0] sm:$0xff]  }
  0xd9   : > { %4339 = vmatmul.mubr.bf16.vlgmr.msra.gmra.mxu1 %v5162_v27  ;;  %v4601_v27 = vld [vmem:[%s6064_s3 + $0x1e0] sm:$0xff]  }
  0xda   : > { %4419 = vmatpush3.bf16.msra.mxu1 %v4595_v5  ;;  %4342 = vmatprep.mubr.bf16.mxu1 %v5165_v53 }
  0xdb   : > { %4420 = vmatprep.subr.bf16.mxu1 %v4597_v58  ;;  %4469 = vmatpush3.bf16.msra.mxu0 %v4598_v35 }
  0xdc   : > { %4470 = vmatprep.subr.bf16.mxu0 %v4600_v30 }
  0xde   : > { %4391 = vmatmul.mubr.msk.bf16.gmra.mxu0 %vm5078_vm3, %v5028_v11  ;;  %4421 = vmatpush3.bf16.msra.mxu1 %v4597_v58  ;;  %v4606_v11 = vld [vmem:[%s6064_s3 + $0x210] sm:$0xff]  }
  0xdf   : > { %4394 = vmatprep.mubr.msk.bf16.mxu0 %vm5078_vm3, %v4745_v63  ;;  %4422 = vmatprep.subr.bf16.mxu1 %v4599_v44  ;;  %v4603_v63 = vld [vmem:[%s6064_s3 + $0x1d8] sm:$0xff]  }
  0xe0   : > { %4471 = vmatpush3.bf16.msra.mxu0 %v4600_v30 }
  0xe1   : > { %4343 = vmatmul.mubr.bf16.gmra.mxu1 %v5193_v43  ;;  %4472 = vmatprep.subr.bf16.mxu0 %v4602_v50 }
  0xe2   : > { %4346 = vmatprep.mubr.bf16.mxu1 %v5199_v16  ;;  %4423 = vmatpush3.bf16.msra.mxu1 %v4599_v44 }
  0xe3   : > { %4424 = vmatprep.subr.bf16.mxu1 %v4601_v27 }
  0xe4   : > { %4473 = vmatpush3.bf16.msra.mxu0 %v4602_v50 }
  0xe5   : > { %4474 = vmatprep.subr.bf16.mxu0 %v4604_v57 }
  0xe6   : > { %4395 = vmatmul.mubr.msk.bf16.gmra.mxu0 %vm5078_vm3, %v4752_v7  ;;  %4425 = vmatpush3.bf16.msra.mxu1 %v4601_v27  ;;  %v4608_v7 = vld [vmem:[%s6064_s3 + $0x208] sm:$0xff]  }
  0xe7   : > { %4398 = vmatprep.mubr.msk.bf16.mxu0 %vm5078_vm3, %v4800_v33  ;;  %4426 = vmatprep.subr.bf16.mxu1 %v4603_v63 }
  0xe8   : > { %4475 = vmatpush3.bf16.msra.mxu0 %v4604_v57 }
  0xe9   : > { %4347 = vmatmul.mubr.bf16.gmra.mxu1 %v5221_v6  ;;  %4476 = vmatprep.subr.bf16.mxu0 %v4606_v11 }
  0xea   : > { %4350 = vmatprep.mubr.bf16.mxu1 %v5095_v28  ;;  %4427 = vmatpush3.bf16.msra.mxu1 %v4603_v63 }
  0xeb   : > { %4428 = vmatprep.subr.bf16.mxu1 %v4605_v45 }
  0xec   : > { %v5495_v2 = vpop.f32.mrf.mxu0  ;;  %v5497_v21 = vpop.f32.mrf.mxu1  ;;  %4477 = vmatpush3.bf16.msra.mxu0 %v4606_v11 }
  0xed   : > { %4478 = vmatprep.subr.bf16.mxu0 %v4608_v7 }
  0xee   : > { %v5503_v33 = vpop.f32.mrf.mxu0  ;;  %v5505_v22 = vpop.f32.mrf.mxu1  ;;  %4399 = vmatmul.mubr.msk.bf16.gmra.mxu0 %vm5078_vm3, %v4861_v18  ;;  %4429 = vmatpush3.bf16.msra.mxu1 %v4605_v45 }
  0xef   : > { %4402 = vmatprep.mubr.msk.bf16.mxu0 %vm5078_vm3, %v4912_v24  ;;  %4430 = vmatprep.subr.bf16.mxu1 %v4607_v48 }
  0xf0   : > { %v5510_v62 = vpop.f32.mrf.mxu0  ;;  %v5512_v40 = vpop.f32.mrf.mxu1  ;;  %4479 = vmatpush3.bf16.msra.mxu0 %v4608_v7 }
  0xf1   : > { %4351 = vmatmul.mubr.bf16.gmra.mxu1 %v5103_v14  ;;  %4480 = vmatprep.subr.bf16.mxu0 %v4610_v12 }
  0xf2   : > { %v5523_v52 = vpop.f32.mrf.mxu0  ;;  %v5529_v5 = vpop.f32.mrf.mxu1  ;;  %4354 = vmatprep.mubr.bf16.mxu1 %v5110_v37  ;;  %4431 = vmatpush3.bf16.msra.mxu1 %v4607_v48 }
  0xf3   : > { %4432 = vmatprep.subr.bf16.mxu1 %v4609_v46 }
  0xf4   : > { %v5531_v39 = vpop.f32.mrf.mxu0  ;;  %4481 = vmatpush3.bf16.msra.mxu0 %v4610_v12 }
  0xf6   : > { %v5534_v18 = vpop.f32.mrf.mxu0  ;;  %4403 = vmatmul.mubr.msk.bf16.gmra.mxu0 %vm5078_vm3, %v4957_v15  ;;  %4433 = vmatpush3.bf16.msra.mxu1 %v4609_v46 }
  0xf7   : > { %v5536_v24 = vpop.f32.mrf.mxu1  ;;  %4406 = vmatprep.mubr.msk.bf16.mxu0 %vm5078_vm3, %v5026_v20 }
  0xf8   : > { %v5546_v9 = vpop.f32.mrf.mxu0 }
  0xf9   : > { %v5544_v31 = vpop.f32.mrf.mxu1  ;;  %4355 = vmatmul.mubr.bf16.gmra.mxu1 %v5125_v42 }
  0xfa   : > { %4358 = vmatprep.mubr.bf16.mxu1 %v5132_v32  ;;  %v5552_v35 = vpop.f32.mrf.mxu0 }
  0xfb   : > { %v5550_v29 = vpop.f32.mrf.mxu1 }
  0xfd   : > { %v5557_v15 = vpop.f32.mrf.mxu1 }
  0xfe   : > { %4407 = vmatmul.mubr.msk.bf16.gmra.mxu0 %vm5078_vm3, %v5054_v10 }
  0xff   : > { %4410 = vmatprep.mubr.msk.bf16.mxu0 %vm5078_vm3, %v5268_v4 }
 0x101   : > { %v5562_v20 = vpop.f32.mrf.mxu0  ;;  %4359 = vmatmul.mubr.bf16.gmra.mxu1 %v5135_v56 }
 0x102   : > { %4362 = vmatprep.mubr.bf16.mxu1 %v5265_v54 }
 0x103   : > { %v5566_v58 = vpop.f32.mrf.mxu1  ;;  %v5568_v30 = vpop.f32.mrf.mxu0 }
 0x105   : > { %v5570_v44 = vpop.f32.mrf.mxu1  ;;  %v5575_v10 = vpop.f32.mrf.mxu0 }
 0x106   : > { %4411 = vmatmul.mubr.msk.bf16.gmra.mxu0 %vm5078_vm3, %v5286_v23 }
 0x107   : > { %4414 = vmatprep.mubr.msk.bf16.mxu0 %vm5078_vm3, %v4666_v3  ;;  %v5581_v4 = vpop.f32.mrf.mxu1  ;;  %v5583_v50 = vpop.f32.mrf.mxu0 }
 0x108   : > { %6104 = vst [vmem:[#allocation10_spill] sm:$0xff] %v5581_v4 }
 0x109   : > { %4363 = vmatmul.mubr.bf16.gmra.mxu1 %v5294_v17  ;;  %v5586_v27 = vpop.f32.mrf.mxu1 }
 0x10a   : > { %4366 = vmatprep.mubr.bf16.mxu1 %v5297_v60  ;;  %6105 = vst [vmem:[#allocation3_spill] sm:$0xff] %v5586_v27 }
 0x10e   : > { %v5588_v57 = vpop.f32.mrf.mxu0  ;;  %4415 = vmatmul.mubr.msk.bf16.gmra.mxu0 %vm5078_vm3, %v4666_v3 }
 0x10f   : > { %4482 = vmatprep.mubr.bf16.mxu0 %v5165_v53 }
 0x110   : > { %v5594_v23 = vpop.f32.mrf.mxu0 }
 0x111   : > { %v5596_v63 = vpop.f32.mrf.mxu1  ;;  %4367 = vmatmul.mubr.bf16.gmra.mxu1 %v5312_v36 }
 0x112   : > { %6106 = vst [vmem:[#allocation4_spill] sm:$0xff] %v5596_v63  ;;  %v5599_v11 = vpop.f32.mrf.mxu0  ;;  %4434 = vmatprep.mubr.bf16.mxu1 %v4924_v38 }
 0x113   : > { %v5602_v45 = vpop.f32.mrf.mxu1 }
 0x114   : > { %6107 = vst [vmem:[#allocation5_spill] sm:$0xff] %v5602_v45  ;;  %v5604_v7 = vpop.f32.mrf.mxu0 }
 0x115   : > { %v5606_v48 = vpop.f32.mrf.mxu1 }
 0x116   : > { %6108 = vst [vmem:[#allocation6_spill] sm:$0xff] %v5606_v48  ;;  %v4196_v51 = vpop.f32.mrf.mxu0  ;;  %4483 = vmatmul.mubr.bf16.vlgmr.msra.gmra.mxu0 %v5193_v43 }
 0x117   : > { %v5609_v3 = vpop.f32.mrf.mxu1  ;;  %4486 = vmatprep.mubr.bf16.mxu0 %v5199_v16 }
 0x118   : > { %6109 = vst [vmem:[#allocation7_spill] sm:$0xff] %v5609_v3  ;;  %v1236_v53 = vpop.f32.mrf.mxu0 }
 0x119   : > { %v4148_v12 = vpop.f32.mrf.mxu1  ;;  %4435 = vmatmul.mubr.bf16.vlgmr.msra.gmra.mxu1 %v4966_v26 }
 0x11a   : > { %v958_v46 = vadd.f32 %v4148_v12, %v5495_v2  ;;  %v4197_v38 = vpop.f32.mrf.mxu0  ;;  %4438 = vmatprep.mubr.bf16.mxu1 %v5023_v47 }
 0x11b   : > { %v949_v45 = vpop.f32.mrf.mxu1 }
 0x11c   : > { %v5615_v63 = vadd.f32 %v4196_v51, %v958_v46  ;;  %v950_v48 = vadd.f32 %v949_v45, %v5503_v33  ;;  %v1239_v27 = vpop.f32.mrf.mxu0 }
 0x11d   : > { %v4149_v43 = vpop.f32.mrf.mxu1 }
 0x11e   : > { %v5618_v4 = vadd.f32 %v1236_v53, %v950_v48  ;;  %v961_v16 = vadd.f32 %v4149_v43, %v5510_v62  ;;  %v4200_v3 = vpop.f32.mrf.mxu0  ;;  %4487 = vmatmul.mubr.bf16.gmra.mxu0 %v5221_v6 }
 0x11f   : > { %v952_v26 = vpop.f32.mrf.mxu1  ;;  %4490 = vmatprep.mubr.bf16.mxu0 %v5095_v28 }
 0x120   : > { %v5623_v2 = vadd.f32 %v4197_v38, %v961_v16  ;;  %v953_v47 = vadd.f32 %v952_v26, %v5523_v52  ;;  %v1252_v51 = vpop.f32.mrf.mxu0 }
 0x121   : > { %v4152_v12 = vpop.f32.mrf.mxu1  ;;  %4439 = vmatmul.mubr.bf16.gmra.mxu1 %v6096_v55 }
 0x122   : > { %v5627_v33 = vadd.f32 %v1239_v27, %v953_v47  ;;  %v974_v45 = vadd.f32 %v4152_v12, %v5531_v39  ;;  %v4201_v48 = vpop.f32.mrf.mxu0  ;;  %4442 = vmatprep.mubr.bf16.mxu1 %v6097_v19 }
 0x123   : > { %v965_v62 = vpop.f32.mrf.mxu1 }
 0x124   : > { %v5631_v6 = vadd.f32 %v4200_v3, %v974_v45  ;;  %v966_v28 = vadd.f32 %v965_v62, %v5534_v18  ;;  %v1255_v53 = vpop.f32.mrf.mxu0 }
 0x125   : > { %v4153_v46 = vpop.f32.mrf.mxu1 }
 0x126   : > { %v5634_v38 = vadd.f32 %v1252_v51, %v966_v28  ;;  %v977_v52 = vadd.f32 %v4153_v46, %v5546_v9  ;;  %v4204_v43 = vpop.f32.mrf.mxu0  ;;  %4491 = vmatmul.mubr.bf16.gmra.mxu0 %v5103_v14 }
 0x127   : > { %v968_v55 = vpop.f32.mrf.mxu1  ;;  %4494 = vmatprep.mubr.bf16.mxu0 %v5110_v37 }
 0x128   : > { %v5639_v39 = vadd.f32 %v4201_v48, %v977_v52  ;;  %v969_v19 = vadd.f32 %v968_v55, %v5552_v35  ;;  %v1268_v27 = vpop.f32.mrf.mxu0 }
 0x129   : > { %v4156_v3 = vpop.f32.mrf.mxu1  ;;  %4443 = vmatmul.mubr.bf16.gmra.mxu1 %v6098_v41 }
 0x12a   : > { %v5643_v18 = vadd.f32 %v1255_v53, %v969_v19  ;;  %v990_v16 = vadd.f32 %v4156_v3, %v5562_v20  ;;  %v4205_v26 = vpop.f32.mrf.mxu0  ;;  %4446 = vmatprep.mubr.bf16.mxu1 %v6099_v61 }
 0x12b   : > { %v981_v9 = vpop.f32.mrf.mxu1 }
 0x12c   : > { %v5647_v14 = vadd.f32 %v4204_v43, %v990_v16  ;;  %v982_v37 = vadd.f32 %v981_v9, %v5568_v30  ;;  %v1271_v47 = vpop.f32.mrf.mxu0 }
 0x12d   : > { %v4157_v51 = vpop.f32.mrf.mxu1 }
 0x12e   : > { %v5650_v12 = vadd.f32 %v1268_v27, %v982_v37  ;;  %v993_v35 = vadd.f32 %v4157_v51, %v5575_v10  ;;  %v4208_v45 = vpop.f32.mrf.mxu0  ;;  %4495 = vmatmul.mubr.bf16.gmra.mxu0 %v5125_v42 }
 0x12f   : > { %v984_v41 = vpop.f32.mrf.mxu1  ;;  %4498 = vmatprep.mubr.bf16.mxu0 %v5132_v32 }
 0x130   : > { %v5655_v20 = vadd.f32 %v4205_v26, %v993_v35  ;;  %v985_v61 = vadd.f32 %v984_v41, %v5583_v50  ;;  %v1284_v48 = vpop.f32.mrf.mxu0 }
 0x131   : > { %v4160_v62 = vpop.f32.mrf.mxu1  ;;  %4447 = vmatmul.mubr.bf16.gmra.mxu1 %v6100_v25 }
 0x132   : > { %v5659_v30 = vadd.f32 %v1271_v47, %v985_v61  ;;  %v1006_v28 = vadd.f32 %v4160_v62, %v5588_v57  ;;  %v4209_v53 = vpop.f32.mrf.mxu0  ;;  %4450 = vmatprep.mubr.bf16.mxu1 %v6101_v59 }
 0x133   : > { %v997_v10 = vpop.f32.mrf.mxu1 }
 0x134   : > { %v5663_v42 = vadd.f32 %v4208_v45, %v1006_v28  ;;  %v998_v32 = vadd.f32 %v997_v10, %v5594_v23  ;;  %v1287_v46 = vpop.f32.mrf.mxu0 }
 0x135   : > { %v4161_v52 = vpop.f32.mrf.mxu1 }
 0x136   : > { %v5666_v43 = vadd.f32 %v1284_v48, %v998_v32  ;;  %v1009_v50 = vadd.f32 %v4161_v52, %v5599_v11  ;;  %v4212_v55 = vpop.f32.mrf.mxu0  ;;  %4499 = vmatmul.mubr.bf16.gmra.mxu0 %v5135_v56 }
 0x137   : > { %v1000_v25 = vpop.f32.mrf.mxu1  ;;  %4502 = vmatprep.mubr.bf16.mxu0 %v5265_v54 }
 0x138   : > { %v5671_v57 = vadd.f32 %v4209_v53, %v1009_v50  ;;  %v1001_v59 = vadd.f32 %v1000_v25, %v5604_v7  ;;  %v1300_v19 = vpop.f32.mrf.mxu0 }
 0x139   : > { %v4164_v27 = vpop.f32.mrf.mxu1  ;;  %4451 = vmatmul.mubr.bf16.gmra.mxu1 %v6102_v34 }
 0x13a   : > { %v5675_v23 = vadd.f32 %v1287_v46, %v1001_v59  ;;  %v1022_v3 = vadd.f32 %v4164_v27, %v5497_v21  ;;  %v4213_v16 = vpop.f32.mrf.mxu0  ;;  %4454 = vmatprep.mubr.bf16.mxu1 %v6103_v49 }
 0x13b   : > { %v1013_v11 = vpop.f32.mrf.mxu1 }
 0x13c   : > { %v5679_v56 = vadd.f32 %v4212_v55, %v1022_v3  ;;  %v1014_v54 = vadd.f32 %v1013_v11, %v5505_v22  ;;  %v1303_v26 = vpop.f32.mrf.mxu0 }
 0x13d   : > { %v4165_v9 = vpop.f32.mrf.mxu1 }
 0x13e   : > { %v5682_v37 = vadd.f32 %v1300_v19, %v1014_v54  ;;  %v1025_v7 = vadd.f32 %v4165_v9, %v5512_v40  ;;  %v4216_v47 = vpop.f32.mrf.mxu0  ;;  %4503 = vmatmul.mubr.bf16.gmra.mxu0 %v5294_v17 }
 0x13f   : > { %v1016_v34 = vpop.f32.mrf.mxu1  ;;  %4506 = vmatprep.mubr.bf16.mxu0 %v5297_v60 }
 0x140   : > { %v5687_v21 = vadd.f32 %v4213_v16, %v1025_v7  ;;  %v1017_v49 = vadd.f32 %v1016_v34, %v5529_v5  ;;  %v1316_v51 = vpop.f32.mrf.mxu0 }
 0x141   : > { %v4168_v35 = vpop.f32.mrf.mxu1  ;;  %4455 = vmatmul.mubr.bf16.gmra.mxu1 %v5088_v0 }
 0x142   : > { %v5691_v22 = vadd.f32 %v1303_v26, %v1017_v49  ;;  %v1038_v45 = vadd.f32 %v4168_v35, %v5536_v24  ;;  %v4217_v41 = vpop.f32.mrf.mxu0  ;;  %4458 = vmatprep.mubr.bf16.mxu1 %v5419_v8  ;;  %v6114_v49 = vld [vmem:[#allocation5_spill] sm:$0xff] }
 0x143   : > { %v1029_v40 = vpop.f32.mrf.mxu1 }
 0x144   : > { %v5695_v17 = vadd.f32 %v4216_v47, %v1038_v45  ;;  %v1030_v60 = vadd.f32 %v1029_v40, %v5544_v31  ;;  %v1319_v61 = vpop.f32.mrf.mxu0 }
 0x145   : > { %v4169_v48 = vpop.f32.mrf.mxu1 }
 0x146   : > { %v5698_v62 = vadd.f32 %v1316_v51, %v1030_v60  ;;  %v1041_v5 = vadd.f32 %v4169_v48, %v5550_v29  ;;  %v4220_v28 = vpop.f32.mrf.mxu0  ;;  %4507 = vmatmul.mubr.bf16.gmra.mxu0 %v5312_v36  ;;  %v6110_v29 = vld [vmem:[#allocation2_spill] sm:$0xff] }
 0x147   : > { %v1032_v0 = vpop.f32.mrf.mxu1  ;;  %4510 = vmatprep.mubr.bf16.mxu0 %v5060_v1 }
 0x148   : > { %v5703_v24 = vadd.f32 %v4217_v41, %v1041_v5  ;;  %v1033_v8 = vadd.f32 %v1032_v0, %v5557_v15  ;;  %v1332_v53 = vpop.f32.mrf.mxu0  ;;  %v6111_v15 = vld [vmem:[#allocation10_spill] sm:$0xff]  ;;  %v6116_v5 = vld [vmem:[#allocation7_spill] sm:$0xff] }
 0x149   : > { %v4172_v10 = vpop.f32.mrf.mxu1  ;;  %4459 = vmatmul.mubr.bf16.gmra.mxu1 %v5432_v13  ;;  %v6115_v41 = vld [vmem:[#allocation6_spill] sm:$0xff] }
 0x14a   : > { %v5707_v31 = vadd.f32 %v1319_v61, %v1033_v8  ;;  %v1054_v32 = vadd.f32 %v4172_v10, %v5566_v58  ;;  %v4221_v46 = vpop.f32.mrf.mxu0  ;;  %4462 = vmatprep.mubr.bf16.mxu1 %v6110_v29  ;;  %v6112_v58 = vld [vmem:[#allocation3_spill] sm:$0xff] }
 0x14b   : > { %v1045_v52 = vpop.f32.mrf.mxu1 }
 0x14c   : > { %v5711_v36 = vadd.f32 %v4220_v28, %v1054_v32  ;;  %v1046_v50 = vadd.f32 %v1045_v52, %v5570_v44  ;;  %v1335_v55 = vpop.f32.mrf.mxu0  ;;  %v6113_v44 = vld [vmem:[#allocation4_spill] sm:$0xff] }
 0x14d   : > { %v4173_v25 = vpop.f32.mrf.mxu1 }
 0x14e   : > { %v5714_v59 = vadd.f32 %v1332_v53, %v1046_v50  ;;  %v1057_v19 = vadd.f32 %v4173_v25, %v6111_v15  ;;  %v4224_v27 = vpop.f32.mrf.mxu0  ;;  %4511 = vmatmul.mubr.bf16.gmra.mxu0 %v5060_v1 }
 0x14f   : > { %v1048_v13 = vpop.f32.mrf.mxu1 }
 0x150   : > { %v5718_v3 = vadd.f32 %v4221_v46, %v1057_v19  ;;  %v1049_v16 = vadd.f32 %v1048_v13, %v6112_v58  ;;  %v1348_v11 = vpop.f32.mrf.mxu0 }
 0x151   : > { %v4176_v54 = vpop.f32.mrf.mxu1  ;;  %4463 = vmatmul.mubr.bf16.gmra.mxu1 %v6110_v29 }
 0x152   : > { %v5722_v26 = vadd.f32 %v1335_v55, %v1049_v16  ;;  %v1070_v9 = vadd.f32 %v4176_v54, %v6113_v44  ;;  %v4225_v7 = vpop.f32.mrf.mxu0 }
 0x153   : > { %v1061_v47 = vpop.f32.mrf.mxu1 }
 0x154   : > { %v5725_v34 = vadd.f32 %v4224_v27, %v1070_v9  ;;  %v1062_v51 = vadd.f32 %v1061_v47, %v6114_v49  ;;  %v1351_v1 = vpop.f32.mrf.mxu0 }
 0x155   : > { %v4177_v35 = vpop.f32.mrf.mxu1 }
 0x156   : > { %v5728_v45 = vadd.f32 %v1348_v11, %v1062_v51  ;;  %v1073_v40 = vadd.f32 %v4177_v35, %v6115_v41  ;;  %v4292_v60 = vpop.f32.mrf.mxu0 }
 0x157   : > { %v1064_v61 = vpop.f32.mrf.mxu1 }
 0x158   : > { %v5731_v48 = vadd.f32 %v4225_v7, %v1073_v40  ;;  %v1065_v28 = vadd.f32 %v1064_v61, %v6116_v5  ;;  %v1764_v0 = vpop.f32.mrf.mxu0 }
 0x159   : > { %v4244_v8 = vpop.f32.mrf.mxu1 }
 0x15a   : > { %v5734_v53 = vadd.f32 %v1351_v1, %v1065_v28  ;;  %v1623_v10 = vadd.f32 %v4244_v8, %v5615_v63  ;;  %v4293_v32 = vpop.f32.mrf.mxu0 }
 0x15b   : > { %v1494_v46 = vpop.f32.mrf.mxu1 }
 0x15c   : > { %v5737_v29 = vadd.f32 %v4292_v60, %v1623_v10  ;;  %v1621_v52 = vadd.f32 %v1494_v46, %v5618_v4  ;;  %v1767_v50 = vpop.f32.mrf.mxu0 }
 0x15d   : > { %v4245_v55 = vpop.f32.mrf.mxu1 }
 0x15e   : > { %v5740_v25 = vadd.f32 %v1764_v0, %v1621_v52  ;;  %v1624_v15 = vadd.f32 %v4245_v55, %v5623_v2  ;;  %v4296_v19 = vpop.f32.mrf.mxu0 }
 0x15f   : > { %v1497_v27 = vpop.f32.mrf.mxu1 }
 0x160   : > { %v5743_v13 = vadd.f32 %v4293_v32, %v1624_v15  ;;  %v1622_v58 = vadd.f32 %v1497_v27, %v5627_v33  ;;  %v1780_v16 = vpop.f32.mrf.mxu0 }
 0x161   : > { %v4248_v63 = vpop.f32.mrf.mxu1 }
 0x162   : > { %v5746_v11 = vadd.f32 %v1767_v50, %v1622_v58  ;;  %v1627_v54 = vadd.f32 %v4248_v63, %v5631_v6  ;;  %v4297_v44 = vpop.f32.mrf.mxu0 }
 0x163   : > { %v1510_v4 = vpop.f32.mrf.mxu1 }
 0x164   : > { %v5749_v9 = vadd.f32 %v4296_v19, %v1627_v54  ;;  %v1625_v7 = vadd.f32 %v1510_v4, %v5634_v38  ;;  %v1783_v47 = vpop.f32.mrf.mxu0 }
 0x165   : > { %v4249_v2 = vpop.f32.mrf.mxu1 }
 0x166   : > { %v5752_v49 = vadd.f32 %v1780_v16, %v1625_v7  ;;  %v1628_v51 = vadd.f32 %v4249_v2, %v5639_v39  ;;  %v4300_v1 = vpop.f32.mrf.mxu0 }
 0x167   : > { %v1513_v33 = vpop.f32.mrf.mxu1 }
 0x168   : > { %v5755_v35 = vadd.f32 %v4297_v44, %v1628_v51  ;;  %v1626_v41 = vadd.f32 %v1513_v33, %v5643_v18  ;;  %v1796_v40 = vpop.f32.mrf.mxu0 }
 0x169   : > { %v4252_v6 = vpop.f32.mrf.mxu1 }
 0x16a   : > { %v5758_v60 = vadd.f32 %v1783_v47, %v1626_v41  ;;  %v1631_v61 = vadd.f32 %v4252_v6, %v5647_v14  ;;  %v4301_v5 = vpop.f32.mrf.mxu0 }
 0x16b   : > { %v1526_v38 = vpop.f32.mrf.mxu1 }
 0x16c   : > { %v5761_v28 = vadd.f32 %v4300_v1, %v1631_v61  ;;  %v1629_v0 = vadd.f32 %v1526_v38, %v5650_v12  ;;  %v1799_v8 = vpop.f32.mrf.mxu0 }
 0x16d   : > { %v4253_v39 = vpop.f32.mrf.mxu1 }
 0x16e   : > { %v5764_v10 = vadd.f32 %v1796_v40, %v1629_v0  ;;  %v1632_v32 = vadd.f32 %v4253_v39, %v5655_v20  ;;  %v4304_v46 = vpop.f32.mrf.mxu0 }
 0x16f   : > { %v1529_v18 = vpop.f32.mrf.mxu1 }
 0x170   : > { %v5767_v52 = vadd.f32 %v4301_v5, %v1632_v32  ;;  %v1630_v50 = vadd.f32 %v1529_v18, %v5659_v30  ;;  %v1812_v55 = vpop.f32.mrf.mxu0 }
 0x171   : > { %v4256_v14 = vpop.f32.mrf.mxu1 }
 0x172   : > { %v5770_v15 = vadd.f32 %v1799_v8, %v1630_v50  ;;  %v1635_v19 = vadd.f32 %v4256_v14, %v5663_v42  ;;  %v4305_v27 = vpop.f32.mrf.mxu0 }
 0x173   : > { %v1542_v12 = vpop.f32.mrf.mxu1 }
 0x174   : > { %v5773_v58 = vadd.f32 %v4304_v46, %v1635_v19  ;;  %v1633_v16 = vadd.f32 %v1542_v12, %v5666_v43  ;;  %v1815_v63 = vpop.f32.mrf.mxu0 }
 0x175   : > { %v4257_v20 = vpop.f32.mrf.mxu1 }
 0x176   : > { %v5776_v54 = vadd.f32 %v1812_v55, %v1633_v16  ;;  %v1636_v44 = vadd.f32 %v4257_v20, %v5671_v57  ;;  %v4308_v4 = vpop.f32.mrf.mxu0 }
 0x177   : > { %v1545_v30 = vpop.f32.mrf.mxu1 }
 0x178   : > { %v5779_v7 = vadd.f32 %v4305_v27, %v1636_v44  ;;  %v1634_v47 = vadd.f32 %v1545_v30, %v5675_v23  ;;  %v1828_v2 = vpop.f32.mrf.mxu0 }
 0x179   : > { %v4260_v42 = vpop.f32.mrf.mxu1 }
 0x17a   : > { %v5782_v51 = vadd.f32 %v1815_v63, %v1634_v47  ;;  %v1639_v1 = vadd.f32 %v4260_v42, %v5679_v56  ;;  %v4309_v33 = vpop.f32.mrf.mxu0 }
 0x17b   : > { %v1558_v43 = vpop.f32.mrf.mxu1 }
 0x17c   : > { %v5785_v41 = vadd.f32 %v4308_v4, %v1639_v1  ;;  %v1637_v40 = vadd.f32 %v1558_v43, %v5682_v37  ;;  %v1831_v6 = vpop.f32.mrf.mxu0 }
 0x17d   : > { %v4261_v57 = vpop.f32.mrf.mxu1 }
 0x17e   : > { %v5788_v61 = vadd.f32 %v1828_v2, %v1637_v40  ;;  %v1640_v5 = vadd.f32 %v4261_v57, %v5687_v21  ;;  %v4312_v38 = vpop.f32.mrf.mxu0 }
 0x17f   : > { %v1561_v23 = vpop.f32.mrf.mxu1 }
 0x180   : > { %v5791_v0 = vadd.f32 %v4309_v33, %v1640_v5  ;;  %v1638_v8 = vadd.f32 %v1561_v23, %v5691_v22  ;;  %v1844_v39 = vpop.f32.mrf.mxu0 }
 0x181   : > { %v4264_v56 = vpop.f32.mrf.mxu1 }
 0x182   : > { %v5794_v32 = vadd.f32 %v1831_v6, %v1638_v8  ;;  %v1643_v46 = vadd.f32 %v4264_v56, %v5695_v17  ;;  %v4313_v18 = vpop.f32.mrf.mxu0 }
 0x183   : > { %v1574_v37 = vpop.f32.mrf.mxu1 }
 0x184   : > { %v5797_v50 = vadd.f32 %v4312_v38, %v1643_v46  ;;  %v1641_v55 = vadd.f32 %v1574_v37, %v5698_v62  ;;  %v1847_v14 = vpop.f32.mrf.mxu0 }
 0x185   : > { %v4265_v21 = vpop.f32.mrf.mxu1 }
 0x186   : > { %v5800_v19 = vadd.f32 %v1844_v39, %v1641_v55  ;;  %v1644_v27 = vadd.f32 %v4265_v21, %v5703_v24  ;;  %v4316_v12 = vpop.f32.mrf.mxu0 }
 0x187   : > { %v1577_v22 = vpop.f32.mrf.mxu1 }
 0x188   : > { %6117 = vst [vmem:[#allocation8_spill] sm:$0xff] %v5800_v19  ;;  %v5803_v16 = vadd.f32 %v4313_v18, %v1644_v27  ;;  %v1642_v63 = vadd.f32 %v1577_v22, %v5707_v31  ;;  %v1860_v20 = vpop.f32.mrf.mxu0 }
 0x189   : > { %v4268_v17 = vpop.f32.mrf.mxu1 }
 0x18a   : > { %6118 = vst [vmem:[#allocation9_spill] sm:$0xff] %v5803_v16  ;;  %v5806_v44 = vadd.f32 %v1847_v14, %v1642_v63  ;;  %v1647_v4 = vadd.f32 %v4268_v17, %v5711_v36  ;;  %v4317_v30 = vpop.f32.mrf.mxu0 }
 0x18b   : > { %v1590_v62 = vpop.f32.mrf.mxu1 }
 0x18c   : > { %6119 = vst [vmem:[#allocation2_spill] sm:$0xff] %v5806_v44  ;;  %v5809_v47 = vadd.f32 %v4316_v12, %v1647_v4  ;;  %v1645_v2 = vadd.f32 %v1590_v62, %v5714_v59  ;;  %v1863_v42 = vpop.f32.mrf.mxu0 }
 0x18d   : > { %v4269_v24 = vpop.f32.mrf.mxu1 }
 0x18e   : > { %v5812_v1 = vadd.f32 %v1860_v20, %v1645_v2  ;;  %v1648_v33 = vadd.f32 %v4269_v24, %v5718_v3  ;;  %v4320_v43 = vpop.f32.mrf.mxu0 }
 0x18f   : > { %v1593_v31 = vpop.f32.mrf.mxu1 }
 0x190   : > { %6120 = vst [vmem:[#allocation10_spill] sm:$0xff] %v5812_v1  ;;  %v5815_v40 = vadd.f32 %v4317_v30, %v1648_v33  ;;  %v1646_v6 = vadd.f32 %v1593_v31, %v5722_v26  ;;  %v1876_v57 = vpop.f32.mrf.mxu0 }
 0x191   : > { %v4272_v36 = vpop.f32.mrf.mxu1 }
 0x192   : > { %6121 = vst [vmem:[#allocation3_spill] sm:$0xff] %v5815_v40  ;;  %v5818_v5 = vadd.f32 %v1863_v42, %v1646_v6  ;;  %v1651_v38 = vadd.f32 %v4272_v36, %v5725_v34  ;;  %v4321_v23 = vpop.f32.mrf.mxu0 }
 0x193   : > { %v1606_v59 = vpop.f32.mrf.mxu1 }
 0x194   : > { %6122 = vst [vmem:[#allocation4_spill] sm:$0xff] %v5818_v5  ;;  %v5821_v8 = vadd.f32 %v4320_v43, %v1651_v38  ;;  %v1649_v39 = vadd.f32 %v1606_v59, %v5728_v45  ;;  %v1879_v56 = vpop.f32.mrf.mxu0 }
 0x195   : > { %v4273_v3 = vpop.f32.mrf.mxu1 }
 0x196   : > { %v5824_v46 = vadd.f32 %v1876_v57, %v1649_v39  ;;  %v1652_v18 = vadd.f32 %v4273_v3, %v5731_v48  ;;  %v4388_v37 = vpop.f32.mrf.mxu0 }
 0x197   : > { %v1609_v26 = vpop.f32.mrf.mxu1 }
 0x198   : > { %6123 = vst [vmem:[#allocation5_spill] sm:$0xff] %v5824_v46  ;;  %v5827_v55 = vadd.f32 %v4321_v23, %v1652_v18  ;;  %v1650_v14 = vadd.f32 %v1609_v26, %v5734_v53  ;;  %v2288_v21 = vpop.f32.mrf.mxu0 }
 0x199   : > { %v4340_v34 = vpop.f32.mrf.mxu1 }
 0x19a   : > { %6124 = vst [vmem:[#allocation6_spill] sm:$0xff] %v5827_v55  ;;  %v5830_v27 = vadd.f32 %v1879_v56, %v1650_v14  ;;  %v2159_v12 = vadd.f32 %v4340_v34, %v5737_v29  ;;  %v5833_v22 = vpop.f32.mrf.mxu0 }
 0x19b   : > { %v2030_v45 = vpop.f32.mrf.mxu1 }
 0x19c   : > { %6125 = vst [vmem:[#allocation7_spill] sm:$0xff] %v5830_v27  ;;  %v5835_v63 = vadd.f32 %v4388_v37, %v2159_v12  ;;  %v2157_v20 = vadd.f32 %v2030_v45, %v5740_v25  ;;  %v5838_v48 = vpop.f32.mrf.mxu0 }
 0x19d   : > { %v5840_v17 = vpop.f32.mrf.mxu1 }
 0x19e   : > { %v5842_v4 = vadd.f32 %v2288_v21, %v2157_v20  ;;  %v4392_v53 = vpop.f32.mrf.mxu0 }
 0x19f   : > { %v5844_v30 = vpop.f32.mrf.mxu1 }
 0x1a0   : > { %v5846_v62 = vpop.f32.mrf.mxu0 }
 0x1a1   : > { %v4344_v2 = vpop.f32.mrf.mxu1 }
 0x1a2   : > { %v2163_v29 = vadd.f32 %v4344_v2, %v5749_v9  ;;  %v5849_v42 = vpop.f32.mrf.mxu0 }
 0x1a3   : > { %v5851_v24 = vpop.f32.mrf.mxu1 }
 0x1a4   : > { %v5853_v33 = vadd.f32 %v4392_v53, %v2163_v29  ;;  %v5855_v25 = vpop.f32.mrf.mxu0 }
 0x1a5   : > { %v5857_v43 = vpop.f32.mrf.mxu1 }
 0x1a6   : > { %v4396_v31 = vpop.f32.mrf.mxu0 }
 0x1a7   : > { %v5859_v6 = vpop.f32.mrf.mxu1 }
 0x1a8   : > { %v5861_v57 = vpop.f32.mrf.mxu0 }
 0x1a9   : > { %v4348_v36 = vpop.f32.mrf.mxu1 }
 0x1aa   : > { %v2167_v38 = vadd.f32 %v4348_v36, %v5761_v28  ;;  %v5864_v23 = vpop.f32.mrf.mxu0 }
 0x1ab   : > { %v5866_v9 = vpop.f32.mrf.mxu1 }
 0x1ac   : > { %v5868_v59 = vadd.f32 %v4396_v31, %v2167_v38  ;;  %v5870_v39 = vpop.f32.mrf.mxu0 }
 0x1ad   : > { %v5872_v56 = vpop.f32.mrf.mxu1 }
 0x1ae   : > { %v4400_v3 = vpop.f32.mrf.mxu0 }
 0x1af   : > { %v5874_v18 = vpop.f32.mrf.mxu1 }
 0x1b0   : > { %v5876_v37 = vpop.f32.mrf.mxu0 }
 0x1b1   : > { %v4352_v26 = vpop.f32.mrf.mxu1 }
 0x1b2   : > { %v2171_v14 = vadd.f32 %v4352_v26, %v5773_v58  ;;  %v5879_v21 = vpop.f32.mrf.mxu0 }
 0x1b3   : > { %v5881_v28 = vpop.f32.mrf.mxu1 }
 0x1b4   : > { %v5883_v34 = vadd.f32 %v4400_v3, %v2171_v14  ;;  %v5885_v12 = vpop.f32.mrf.mxu0 }
 0x1b5   : > { %v5887_v45 = vpop.f32.mrf.mxu1 }
 0x1b6   : > { %v4404_v20 = vpop.f32.mrf.mxu0 }
 0x1b7   : > { %v5889_v53 = vpop.f32.mrf.mxu1 }
 0x1b8   : > { %v5891_v2 = vpop.f32.mrf.mxu0 }
 0x1b9   : > { %v4356_v29 = vpop.f32.mrf.mxu1 }
 0x1ba   : > { %v2175_v31 = vadd.f32 %v4356_v29, %v5785_v41  ;;  %v5894_v36 = vpop.f32.mrf.mxu0 }
 0x1bb   : > { %v5896_v58 = vpop.f32.mrf.mxu1 }
 0x1bc   : > { %v5898_v38 = vadd.f32 %v4404_v20, %v2175_v31  ;;  %v5900_v3 = vpop.f32.mrf.mxu0 }
 0x1bd   : > { %6126 = vst [vmem:[#allocation11_spill] sm:$0xff] %v5900_v3  ;;  %v5902_v26 = vpop.f32.mrf.mxu1 }
 0x1be   : > { %v4408_v14 = vpop.f32.mrf.mxu0 }
 0x1bf   : > { %v5904_v27 = vpop.f32.mrf.mxu1 }
 0x1c0   : > { %v5906_v55 = vpop.f32.mrf.mxu0 }
 0x1c1   : > { %6127 = vst [vmem:[#allocation12_spill] sm:$0xff] %v5906_v55  ;;  %v4360_v46 = vpop.f32.mrf.mxu1 }
 0x1c2   : > { %v2179_v5 = vadd.f32 %v4360_v46, %v5797_v50  ;;  %v5909_v40 = vpop.f32.mrf.mxu0 }
 0x1c3   : > { %6128 = vst [vmem:[#allocation13_spill] sm:$0xff] %v5909_v40  ;;  %v5911_v41 = vpop.f32.mrf.mxu1 }
 0x1c4   : > { %v5913_v29 = vadd.f32 %v4408_v14, %v2179_v5  ;;  %v5915_v20 = vpop.f32.mrf.mxu0 }
 0x1c5   : > { %6130 = vst [vmem:[#allocation15_spill] sm:$0xff] %v5915_v20  ;;  %v5917_v31 = vpop.f32.mrf.mxu1 }
 0x1c6   : > { %6129 = vst [vmem:[#allocation14_spill] sm:$0xff] %v5913_v29  ;;  %6131 = vst [vmem:[#allocation16_spill] sm:$0xff] %v5917_v31  ;;  %v4412_v1 = vpop.f32.mrf.mxu0 }
 0x1c7   : > { %v5919_v44 = vpop.f32.mrf.mxu1 }
 0x1c8   : > { %6132 = vst [vmem:[#allocation17_spill] sm:$0xff] %v5919_v44  ;;  %v5921_v16 = vpop.f32.mrf.mxu0 }
 0x1c9   : > { %6133 = vst [vmem:[#allocation18_spill] sm:$0xff] %v5921_v16  ;;  %v4364_v19 = vpop.f32.mrf.mxu1 }
 0x1ca   : > { %v2183_v55 = vadd.f32 %v4364_v19, %v5809_v47  ;;  %v5924_v3 = vpop.f32.mrf.mxu0 }
 0x1cb   : > { %6134 = vst [vmem:[#allocation19_spill] sm:$0xff] %v5924_v3  ;;  %v5926_v50 = vpop.f32.mrf.mxu1  ;;  %v2160_v3 = vadd.f32 %v5840_v17, %v5743_v13  ;;  %v2161_v17 = vadd.f32 %v5851_v24, %v5752_v49 }
 0x1cc   : > { %v5928_v46 = vadd.f32 %v4412_v1, %v2183_v55  ;;  %v5930_v5 = vpop.f32.mrf.mxu0 }
 0x1cd   : > { %6136 = vst [vmem:[#allocation21_spill] sm:$0xff] %v5930_v5  ;;  %v5932_v14 = vpop.f32.mrf.mxu1 }
 0x1ce   : > { %6135 = vst [vmem:[#allocation20_spill] sm:$0xff] %v5928_v46  ;;  %6137 = vst [vmem:[#allocation22_spill] sm:$0xff] %v5932_v14  ;;  %v4416_v20 = vpop.f32.mrf.mxu0 }
 0x1cf   : > { %v5934_v29 = vpop.f32.mrf.mxu1 }
 0x1d0   : > { %6138 = vst [vmem:[#allocation23_spill] sm:$0xff] %v5934_v29  ;;  %v5936_v40 = vpop.f32.mrf.mxu0 }
 0x1d1   : > { %6139 = vst [vmem:[#allocation24_spill] sm:$0xff] %v5936_v40  ;;  %v4368_v44 = vpop.f32.mrf.mxu1 }
 0x1d2   : > { %v2187_v16 = vadd.f32 %v4368_v44, %v5821_v8  ;;  %v5939_v31 = vpop.f32.mrf.mxu0  ;;  %v2158_v44 = vadd.f32 %v5844_v30, %v5746_v11  ;;  %v2164_v11 = vadd.f32 %v5857_v43, %v5755_v35 }
 0x1d3   : > { %6140 = vst [vmem:[#allocation25_spill] sm:$0xff] %v5939_v31  ;;  %v5941_v19 = vpop.f32.mrf.mxu1 }
 0x1d4   : > { %6141 = vst [vmem:[#allocation26_spill] sm:$0xff] %v5941_v19  ;;  %v5943_v47 = vadd.f32 %v4416_v20, %v2187_v16  ;;  %v5945_v1 = vpop.f32.mrf.mxu0  ;;  %v2418_v16 = vadd.f32 %v5833_v22, %v2160_v3  ;;  %v2422_v43 = vadd.f32 %v5849_v42, %v2164_v11 }
 0x1d5   : > { %6143 = vst [vmem:[#allocation28_spill] sm:$0xff] %v5945_v1  ;;  %v5947_v55 = vpop.f32.mrf.mxu1 }
 0x1d6   : > { %6142 = vst [vmem:[#allocation27_spill] sm:$0xff] %v5943_v47  ;;  %6144 = vst [vmem:[#allocation29_spill] sm:$0xff] %v5947_v55  ;;  %v4484_v5 = vpop.f32.mrf.mxu0 }
 0x1d7   : > { %v5949_v46 = vpop.f32.mrf.mxu1 }
 0x1d8   : > { %6145 = vst [vmem:[#allocation30_spill] sm:$0xff] %v5949_v46  ;;  %v2804_v40 = vpop.f32.mrf.mxu0  ;;  %v2416_v46 = vadd.f32 %v5838_v48, %v2158_v44 }
 0x1d9   : > { %v4436_v29 = vpop.f32.mrf.mxu1 }
 0x1da   : > { %v4485_v8 = vpop.f32.mrf.mxu0  ;;  %v2675_v20 = vadd.f32 %v4436_v29, %v5835_v63 }
 0x1db   : > { %v2546_v31 = vpop.f32.mrf.mxu1 }
 0x1dc   : > { %v2673_v1 = vadd.f32 %v2546_v31, %v5842_v4  ;;  %v2807_v47 = vpop.f32.mrf.mxu0  ;;  %v2933_v14 = vadd.f32 %v4484_v5, %v2675_v20  ;;  %v2162_v4 = vadd.f32 %v5859_v6, %v5758_v60 }
 0x1dd   : > { %v4437_v55 = vpop.f32.mrf.mxu1 }
 0x1de   : > { %v2676_v19 = vadd.f32 %v4437_v55, %v2418_v16  ;;  %v4488_v13 = vpop.f32.mrf.mxu0  ;;  %v2931_v22 = vadd.f32 %v2804_v40, %v2673_v1  ;;  %v2419_v40 = vadd.f32 %v5846_v62, %v2161_v17  ;;  %v2420_v55 = vadd.f32 %v5855_v25, %v2162_v4 }
 0x1df   : > { %v2549_v30 = vpop.f32.mrf.mxu1  ;;  %v3162_v16 = vmul.f32 %v2933_v14, %v2933_v14  ;;  %v2168_v17 = vadd.f32 %v5872_v56, %v5767_v52 }
 0x1e0   : > { %v2934_v3 = vadd.f32 %v4485_v8, %v2676_v19  ;;  %v2674_v63 = vadd.f32 %v2549_v30, %v2416_v46  ;;  %v2820_v29 = vpop.f32.mrf.mxu0  ;;  %v3160_v60 = vmul.f32 %v2931_v22, %v2931_v22 }
 0x1e1   : > { %v4440_v49 = vpop.f32.mrf.mxu1 }
 0x1e2   : > { %v3764_v48 = vpack.c.bf16 %v2934_v3, %v2933_v14  ;;  %v2932_v24 = vadd.f32 %v2807_v47, %v2674_v63  ;;  %v4489_v35 = vpop.f32.mrf.mxu0  ;;  %v2679_v31 = vadd.f32 %v4440_v49, %v5853_v33  ;;  %v2165_v47 = vadd.f32 %v5866_v9, %v5764_v10 }
 0x1e3   : > { %v2562_v46 = vpop.f32.mrf.mxu1  ;;  %v3163_v11 = vmul.f32 %v2934_v3, %v2934_v3 }
 0x1e4   : > { %3851 = vst [vmem:[%s5970_s27 + $0x8] sm:$0xff] %v3764_v48   ;;  %v3759_v6 = vpack.c.bf16 %v2932_v24, %v2931_v22  ;;  %v3123_v5 = vadd.f32 %v2932_v24, %v2931_v22  ;;  %v3161_v19 = vmul.f32 %v2932_v24, %v2932_v24  ;;  %v2823_v1 = vpop.f32.mrf.mxu0  ;;  %v2677_v44 = vadd.f32 %v2562_v46, %v2419_v40 }
 0x1e5   : > { %v4441_v8 = vpop.f32.mrf.mxu1  ;;  %v2937_v30 = vadd.f32 %v4488_v13, %v2679_v31  ;;  %v2423_v48 = vadd.f32 %v5861_v57, %v2165_v47  ;;  %v2426_v31 = vadd.f32 %v5864_v23, %v2168_v17 }
 0x1e6   : > { %3760 = vst [vmem:[%s5970_s27] sm:$0xff] %v3759_v6   ;;  %v3124_v62 = vadd.f32 %v3123_v5, %v2933_v14  ;;  %v3192_v42 = vadd.f32 %v3161_v19, %v3160_v60  ;;  %v2680_v20 = vadd.f32 %v4441_v8, %v2422_v43  ;;  %v4492_v33 = vpop.f32.mrf.mxu0  ;;  %v2935_v22 = vadd.f32 %v2820_v29, %v2677_v44 }
 0x1e7   : > { %v2565_v63 = vpop.f32.mrf.mxu1  ;;  %v2166_v14 = vadd.f32 %v5874_v18, %v5770_v15  ;;  %v3166_v44 = vmul.f32 %v2937_v30, %v2937_v30 }
 0x1e8   : > { %v3193_v49 = vadd.f32 %v3192_v42, %v3162_v16  ;;  %v3125_v25 = vadd.f32 %v3124_v62, %v2934_v3  ;;  %v2938_v4 = vadd.f32 %v4489_v35, %v2680_v20  ;;  %v2678_v10 = vadd.f32 %v2565_v63, %v2420_v55  ;;  %v2836_v9 = vpop.f32.mrf.mxu0 }
 0x1e9   : > { %v4444_v24 = vpop.f32.mrf.mxu1  ;;  %v3164_v43 = vmul.f32 %v2935_v22, %v2935_v22  ;;  %v2424_v19 = vadd.f32 %v5870_v39, %v2166_v14  ;;  %v2169_v55 = vadd.f32 %v5881_v28, %v5776_v54 }
 0x1ea   : > { %v3126_v40 = vadd.f32 %v3125_v25, %v2935_v22  ;;  %v3194_v46 = vadd.f32 %v3193_v49, %v3163_v11  ;;  %v3774_v52 = vpack.c.bf16 %v2938_v4, %v2937_v30  ;;  %v4493_v56 = vpop.f32.mrf.mxu0  ;;  %v2936_v13 = vadd.f32 %v2823_v1, %v2678_v10 }
 0x1eb   : > { %v2578_v29 = vpop.f32.mrf.mxu1  ;;  %v2683_v35 = vadd.f32 %v4444_v24, %v5868_v59  ;;  %v2172_v1 = vadd.f32 %v5887_v45, %v5779_v7  ;;  %v3167_v39 = vmul.f32 %v2938_v4, %v2938_v4  ;;  %v2427_v28 = vadd.f32 %v5876_v37, %v2169_v55 }
 0x1ec   : > { %v3195_v3 = vadd.f32 %v3194_v46, %v3164_v43  ;;  %3853 = vst [vmem:[%s5970_s27 + $0x18] sm:$0xff] %v3774_v52   ;;  %v2681_v60 = vadd.f32 %v2578_v29, %v2423_v48  ;;  %v2839_v57 = vpop.f32.mrf.mxu0  ;;  %v3769_v6 = vpack.c.bf16 %v2936_v13, %v2935_v22  ;;  %v3127_v5 = vadd.f32 %v3126_v40, %v2936_v13 }
 0x1ed   : > { %v3165_v15 = vmul.f32 %v2936_v13, %v2936_v13  ;;  %v4445_v18 = vpop.f32.mrf.mxu1  ;;  %v2941_v42 = vadd.f32 %v4492_v33, %v2683_v35  ;;  %v2170_v7 = vadd.f32 %v5889_v53, %v5782_v51  ;;  %v2430_v25 = vadd.f32 %v5879_v21, %v2172_v1 }
 0x1ee   : > { %v2684_v23 = vadd.f32 %v4445_v18, %v2426_v31  ;;  %v4496_v47 = vpop.f32.mrf.mxu0  ;;  %3852 = vst [vmem:[%s5970_s27 + $0x10] sm:$0xff] %v3769_v6   ;;  %v3128_v8 = vadd.f32 %v3127_v5, %v2937_v30  ;;  %v2939_v16 = vadd.f32 %v2836_v9, %v2681_v60  ;;  %v2173_v21 = vadd.f32 %v5896_v58, %v5788_v61 }
 0x1ef   : > { %v3196_v59 = vadd.f32 %v3195_v3, %v3165_v15  ;;  %v2581_v62 = vpop.f32.mrf.mxu1  ;;  %v2428_v53 = vadd.f32 %v5885_v12, %v2170_v7  ;;  %v2176_v52 = vadd.f32 %v5902_v26, %v5791_v0  ;;  %v3170_v29 = vmul.f32 %v2941_v42, %v2941_v42 }
 0x1f0   : > { %v2942_v20 = vadd.f32 %v4493_v56, %v2684_v23  ;;  %v2682_v17 = vadd.f32 %v2581_v62, %v2424_v19  ;;  %v2852_v11 = vpop.f32.mrf.mxu0  ;;  %v3129_v63 = vadd.f32 %v3128_v8, %v2938_v4  ;;  %v3168_v33 = vmul.f32 %v2939_v16, %v2939_v16 }
 0x1f1   : > { %v3197_v22 = vadd.f32 %v3196_v59, %v3166_v44  ;;  %v4448_v54 = vpop.f32.mrf.mxu1  ;;  %v2431_v58 = vadd.f32 %v5891_v2, %v2173_v21  ;;  %v2174_v0 = vadd.f32 %v5904_v27, %v5794_v32  ;;  %v2434_v1 = vadd.f32 %v5894_v36, %v2176_v52  ;;  %v6146_v27 = vld [vmem:[#allocation11_spill] sm:$0xff] }
 0x1f2   : > { %v3784_v45 = vpack.c.bf16 %v2942_v20, %v2941_v42  ;;  %v2940_v49 = vadd.f32 %v2839_v57, %v2682_v17  ;;  %v4497_v30 = vpop.f32.mrf.mxu0  ;;  %v3130_v10 = vadd.f32 %v3129_v63, %v2939_v16  ;;  %v2687_v4 = vadd.f32 %v4448_v54, %v5883_v34  ;;  %v6149_v63 = vld [vmem:[#allocation16_spill] sm:$0xff] }
 0x1f3   : > { %v3198_v9 = vadd.f32 %v3197_v22, %v3167_v39  ;;  %v2594_v48 = vpop.f32.mrf.mxu1  ;;  %v3171_v12 = vmul.f32 %v2942_v20, %v2942_v20  ;;  %v6147_v39 = vld [vmem:[#allocation8_spill] sm:$0xff]  ;;  %v6148_v22 = vld [vmem:[#allocation9_spill] sm:$0xff] }
 0x1f4   : > { %3855 = vst [vmem:[%s5970_s27 + $0x28] sm:$0xff] %v3784_v45   ;;  %v3779_v14 = vpack.c.bf16 %v2940_v49, %v2939_v16  ;;  %v3169_v24 = vmul.f32 %v2940_v49, %v2940_v49  ;;  %v2685_v40 = vadd.f32 %v2594_v48, %v2427_v28  ;;  %v2855_v37 = vpop.f32.mrf.mxu0  ;;  %v3131_v46 = vadd.f32 %v3130_v10, %v2940_v49 }
 0x1f5   : > { %v3199_v43 = vadd.f32 %v3198_v9, %v3168_v33  ;;  %v4449_v51 = vpop.f32.mrf.mxu1  ;;  %v2945_v60 = vadd.f32 %v4496_v47, %v2687_v4  ;;  %v2177_v36 = vadd.f32 %v5911_v41, %v6147_v39  ;;  %v2180_v54 = vadd.f32 %v6149_v63, %v6148_v22  ;;  %v6160_v63 = vld [vmem:[#allocation4_spill] sm:$0xff] }
 0x1f6   : > { %3854 = vst [vmem:[%s5970_s27 + $0x20] sm:$0xff] %v3779_v14   ;;  %v2688_v56 = vadd.f32 %v4449_v51, %v2430_v25  ;;  %v4500_v13 = vpop.f32.mrf.mxu0  ;;  %v3132_v31 = vadd.f32 %v3131_v46, %v2941_v42  ;;  %v2943_v34 = vadd.f32 %v2852_v11, %v2685_v40  ;;  %v2432_v11 = vadd.f32 %v6146_v27, %v2174_v0  ;;  %v6150_v40 = vld [vmem:[#allocation12_spill] sm:$0xff]  ;;  %v6152_v46 = vld [vmem:[#allocation17_spill] sm:$0xff] }
 0x1f7   : > { %v3200_v3 = vadd.f32 %v3199_v43, %v3169_v24  ;;  %v2597_v35 = vpop.f32.mrf.mxu1  ;;  %v3174_v45 = vmul.f32 %v2945_v60, %v2945_v60  ;;  %v6151_v43 = vld [vmem:[#allocation2_spill] sm:$0xff] }
 0x1f8   : > { %v2946_v57 = vadd.f32 %v4497_v30, %v2688_v56  ;;  %v2686_v6 = vadd.f32 %v2597_v35, %v2428_v53  ;;  %v2868_v5 = vpop.f32.mrf.mxu0  ;;  %v3133_v18 = vadd.f32 %v3132_v31, %v2942_v20  ;;  %v3172_v47 = vmul.f32 %v2943_v34, %v2943_v34  ;;  %v6153_v56 = vld [vmem:[#allocation13_spill] sm:$0xff] }
 0x1f9   : > { %v3201_v15 = vadd.f32 %v3200_v3, %v3170_v29  ;;  %v4452_v61 = vpop.f32.mrf.mxu1  ;;  %v2178_v51 = vadd.f32 %v6152_v46, %v6151_v43  ;;  %v2438_v29 = vadd.f32 %v6153_v56, %v2180_v54  ;;  %v6161_v54 = vld [vmem:[#allocation23_spill] sm:$0xff] }
 0x1fa   : > { %v3794_v26 = vpack.c.bf16 %v2946_v57, %v2945_v60  ;;  %v2944_v19 = vadd.f32 %v2855_v37, %v2686_v6  ;;  %v4501_v55 = vpop.f32.mrf.mxu0  ;;  %v3134_v23 = vadd.f32 %v3133_v18, %v2943_v34  ;;  %v2691_v62 = vadd.f32 %v4452_v61, %v5898_v38 }
 0x1fb   : > { %v3202_v44 = vadd.f32 %v3201_v15, %v3171_v12  ;;  %v2610_v8 = vpop.f32.mrf.mxu1  ;;  %v3175_v14 = vmul.f32 %v2946_v57, %v2946_v57  ;;  %v2435_v37 = vadd.f32 %v6150_v40, %v2177_v36  ;;  %v6159_v36 = vld [vmem:[#allocation18_spill] sm:$0xff] }
 0x1fc   : > { %3857 = vst [vmem:[%s5970_s27 + $0x38] sm:$0xff] %v3794_v26   ;;  %v3789_v59 = vpack.c.bf16 %v2944_v19, %v2943_v34  ;;  %v3173_v16 = vmul.f32 %v2944_v19, %v2944_v19  ;;  %v2689_v42 = vadd.f32 %v2610_v8, %v2431_v58  ;;  %v2871_v2 = vpop.f32.mrf.mxu0  ;;  %v3135_v17 = vadd.f32 %v3134_v23, %v2944_v19  ;;  %v6155_v58 = vld [vmem:[#allocation15_spill] sm:$0xff]  ;;  %v6156_v26 = vld [vmem:[#allocation10_spill] sm:$0xff] }
 0x1fd   : > { %v3203_v20 = vadd.f32 %v3202_v44, %v3172_v47  ;;  %v4453_v32 = vpop.f32.mrf.mxu1  ;;  %v2949_v10 = vadd.f32 %v4500_v13, %v2691_v62  ;;  %v2436_v0 = vadd.f32 %v6155_v58, %v2178_v51  ;;  %v2181_v19 = vadd.f32 %v5926_v50, %v6156_v26  ;;  %v6164_v51 = vld [vmem:[#allocation21_spill] sm:$0xff] }
 0x1fe   : > { %3856 = vst [vmem:[%s5970_s27 + $0x30] sm:$0xff] %v3789_v59   ;;  %v2692_v28 = vadd.f32 %v4453_v32, %v2434_v1  ;;  %v4504_v7 = vpop.f32.mrf.mxu0  ;;  %v3136_v49 = vadd.f32 %v3135_v17, %v2945_v60  ;;  %v2947_v38 = vadd.f32 %v2868_v5, %v2689_v42  ;;  %v6158_v1 = vld [vmem:[#allocation22_spill] sm:$0xff] }
 0x1ff   : > { %v3204_v30 = vadd.f32 %v3203_v20, %v3173_v16  ;;  %v2613_v25 = vpop.f32.mrf.mxu1  ;;  %v3178_v8 = vmul.f32 %v2949_v10, %v2949_v10  ;;  %v2439_v22 = vadd.f32 %v6159_v36, %v2181_v19 }
 0x200   : > { %v2950_v33 = vadd.f32 %v4501_v55, %v2692_v28  ;;  %v2690_v9 = vadd.f32 %v2613_v25, %v2432_v11  ;;  %v2884_v48 = vpop.f32.mrf.mxu0  ;;  %v3137_v4 = vadd.f32 %v3136_v49, %v2946_v57  ;;  %v3176_v13 = vmul.f32 %v2947_v38, %v2947_v38  ;;  %v6154_v57 = vld [vmem:[#allocation14_spill] sm:$0xff]  ;;  %v6157_v55 = vld [vmem:[#allocation3_spill] sm:$0xff] }
 0x201   : > { %v3205_v24 = vadd.f32 %v3204_v30, %v3174_v45  ;;  %v4456_v41 = vpop.f32.mrf.mxu1  ;;  %v2184_v23 = vadd.f32 %v6158_v1, %v6157_v55  ;;  %v2182_v28 = vadd.f32 %v6161_v54, %v6160_v63  ;;  %v6169_v55 = vld [vmem:[#allocation24_spill] sm:$0xff] }
 0x202   : > { %v3804_v53 = vpack.c.bf16 %v2950_v33, %v2949_v10  ;;  %v2948_v21 = vadd.f32 %v2871_v2, %v2690_v9  ;;  %v4505_v52 = vpop.f32.mrf.mxu0  ;;  %v3138_v31 = vadd.f32 %v3137_v4, %v2947_v38  ;;  %v2695_v6 = vadd.f32 %v4456_v41, %v6154_v57 }
 0x203   : > { %v3206_v3 = vadd.f32 %v3205_v24, %v3175_v14  ;;  %v2626_v34 = vpop.f32.mrf.mxu1  ;;  %v3179_v27 = vmul.f32 %v2950_v33, %v2950_v33 }
 0x204   : > { %3859 = vst [vmem:[%s5970_s27 + $0x48] sm:$0xff] %v3804_v53   ;;  %v3799_v35 = vpack.c.bf16 %v2948_v21, %v2947_v38  ;;  %v3177_v60 = vmul.f32 %v2948_v21, %v2948_v21  ;;  %v2693_v5 = vadd.f32 %v2626_v34, %v2435_v37  ;;  %v2887_v12 = vpop.f32.mrf.mxu0  ;;  %v3139_v18 = vadd.f32 %v3138_v31, %v2948_v21  ;;  %v6162_v38 = vld [vmem:[#allocation19_spill] sm:$0xff]  ;;  %v6165_v21 = vld [vmem:[#allocation5_spill] sm:$0xff] }
 0x205   : > { %v3207_v15 = vadd.f32 %v3206_v3, %v3176_v13  ;;  %v4457_v61 = vpop.f32.mrf.mxu1  ;;  %v2953_v2 = vadd.f32 %v4504_v7, %v2695_v6  ;;  %v2442_v25 = vadd.f32 %v6162_v38, %v2184_v23  ;;  %v2440_v53 = vadd.f32 %v6164_v51, %v2182_v28  ;;  %v6168_v31 = vld [vmem:[#allocation29_spill] sm:$0xff]  ;;  %v6170_v23 = vld [vmem:[#allocation7_spill] sm:$0xff]  ;;  %v6174_v28 = vld [vmem:[#allocation28_spill] sm:$0xff] }
 0x206   : > { %3858 = vst [vmem:[%s5970_s27 + $0x40] sm:$0xff] %v3799_v35   ;;  %v2696_v47 = vadd.f32 %v4457_v61, %v2438_v29  ;;  %v4508_v44 = vpop.f32.mrf.mxu0  ;;  %v3140_v59 = vadd.f32 %v3139_v18, %v2949_v10  ;;  %v2951_v62 = vadd.f32 %v2884_v48, %v2693_v5  ;;  %v6167_v29 = vld [vmem:[#allocation6_spill] sm:$0xff] }
 0x207   : > { %v3208_v16 = vadd.f32 %v3207_v15, %v3177_v60  ;;  %v2629_v42 = vpop.f32.mrf.mxu1  ;;  %v2188_v13 = vadd.f32 %v6168_v31, %v6167_v29  ;;  %v3182_v35 = vmul.f32 %v2953_v2, %v2953_v2 }
 0x208   : > { %v2954_v20 = vadd.f32 %v4505_v52, %v2696_v47  ;;  %v2694_v17 = vadd.f32 %v2629_v42, %v2436_v0  ;;  %v2900_v32 = vpop.f32.mrf.mxu0  ;;  %v3141_v39 = vadd.f32 %v3140_v59, %v2950_v33  ;;  %v3180_v7 = vmul.f32 %v2951_v62, %v2951_v62  ;;  %v6163_v33 = vld [vmem:[#allocation20_spill] sm:$0xff]  ;;  %v6166_v52 = vld [vmem:[#allocation26_spill] sm:$0xff] }
 0x209   : > { %v3209_v11 = vadd.f32 %v3208_v16, %v3178_v8  ;;  %v4460_v50 = vpop.f32.mrf.mxu1  ;;  %v2185_v56 = vadd.f32 %v6166_v52, %v6165_v21  ;;  %v6171_v47 = vld [vmem:[#allocation30_spill] sm:$0xff] }
 0x20a   : > { %v3814_v45 = vpack.c.bf16 %v2954_v20, %v2953_v2  ;;  %v2952_v49 = vadd.f32 %v2887_v12, %v2694_v17  ;;  %v4509_v30 = vpop.f32.mrf.mxu0  ;;  %v3142_v10 = vadd.f32 %v3141_v39, %v2951_v62  ;;  %v2699_v4 = vadd.f32 %v4460_v50, %v6163_v33 }
 0x20b   : > { %v3210_v9 = vadd.f32 %v3209_v11, %v3179_v27  ;;  %v2642_v48 = vpop.f32.mrf.mxu1  ;;  %v3183_v61 = vmul.f32 %v2954_v20, %v2954_v20  ;;  %v2443_v1 = vadd.f32 %v6169_v55, %v2185_v56  ;;  %v2186_v8 = vadd.f32 %v6171_v47, %v6170_v23 }
 0x20c   : > { %3861 = vst [vmem:[%s5970_s27 + $0x58] sm:$0xff] %v3814_v45   ;;  %v3809_v14 = vpack.c.bf16 %v2952_v49, %v2951_v62  ;;  %v3181_v24 = vmul.f32 %v2952_v49, %v2952_v49  ;;  %v2697_v41 = vadd.f32 %v2642_v48, %v2439_v22  ;;  %v2903_v40 = vpop.f32.mrf.mxu0  ;;  %v3143_v43 = vadd.f32 %v3142_v10, %v2952_v49  ;;  %v6172_v62 = vld [vmem:[#allocation25_spill] sm:$0xff] }
 0x20d   : > { %v3211_v37 = vadd.f32 %v3210_v9, %v3180_v7  ;;  %v4461_v46 = vpop.f32.mrf.mxu1  ;;  %v2957_v12 = vadd.f32 %v4508_v44, %v2699_v4  ;;  %v2446_v42 = vadd.f32 %v6172_v62, %v2188_v13  ;;  %v2444_v45 = vadd.f32 %v6174_v28, %v2186_v8 }
 0x20e   : > { %3860 = vst [vmem:[%s5970_s27 + $0x50] sm:$0xff] %v3809_v14   ;;  %v2700_v3 = vadd.f32 %v4461_v46, %v2442_v25  ;;  %v4512_v34 = vpop.f32.mrf.mxu0  ;;  %v3144_v60 = vadd.f32 %v3143_v43, %v2953_v2  ;;  %v2955_v6 = vadd.f32 %v2900_v32, %v2697_v41 }
 0x20f   : > { %v3212_v57 = vadd.f32 %v3211_v37, %v3181_v24  ;;  %v2645_v5 = vpop.f32.mrf.mxu1 }
 0x210   : > { %v2958_v15 = vadd.f32 %v4509_v30, %v2700_v3  ;;  %v2698_v18 = vadd.f32 %v2645_v5, %v2440_v53  ;;  %v3145_v0 = vadd.f32 %v3144_v60, %v2954_v20  ;;  %v2916_v19 = vpop.f32.mrf.mxu0  ;;  %v3184_v44 = vmul.f32 %v2955_v6, %v2955_v6  ;;  %v6173_v20 = vld [vmem:[#allocation27_spill] sm:$0xff] }
 0x211   : > { %v3213_v58 = vadd.f32 %v3212_v57, %v3182_v35  ;;  %v4464_v26 = vpop.f32.mrf.mxu1  ;;  %v3186_v30 = vmul.f32 %v2957_v12, %v2957_v12 }
 0x212   : > { %v3824_v59 = vpack.c.bf16 %v2958_v15, %v2957_v12  ;;  %v2956_v16 = vadd.f32 %v2903_v40, %v2698_v18  ;;  %v3146_v2 = vadd.f32 %v3145_v0, %v2955_v6  ;;  %v2703_v39 = vadd.f32 %v4464_v26, %v6173_v20  ;;  %v4513_v54 = vpop.f32.mrf.mxu0 }
 0x213   : > { %v3214_v17 = vadd.f32 %v3213_v58, %v3183_v61  ;;  %v2658_v32 = vpop.f32.mrf.mxu1  ;;  %v3187_v24 = vmul.f32 %v2958_v15, %v2958_v15 }
 0x214   : > { %3863 = vst [vmem:[%s5970_s27 + $0x68] sm:$0xff] %v3824_v59   ;;  %v3819_v27 = vpack.c.bf16 %v2956_v16, %v2955_v6  ;;  %v3185_v11 = vmul.f32 %v2956_v16, %v2956_v16  ;;  %v2701_v50 = vadd.f32 %v2658_v32, %v2443_v1  ;;  %v3147_v22 = vadd.f32 %v3146_v2, %v2956_v16  ;;  %v2919_v41 = vpop.f32.mrf.mxu0 }
 0x215   : > { %v3215_v36 = vadd.f32 %v3214_v17, %v3184_v44  ;;  %v4465_v63 = vpop.f32.mrf.mxu1  ;;  %v2961_v9 = vadd.f32 %v4512_v34, %v2703_v39 }
 0x216   : > { %3862 = vst [vmem:[%s5970_s27 + $0x60] sm:$0xff] %v3819_v27   ;;  %v2704_v49 = vadd.f32 %v4465_v63, %v2446_v42  ;;  %v3148_v38 = vadd.f32 %v3147_v22, %v2957_v12  ;;  %v2959_v10 = vadd.f32 %v2916_v19, %v2701_v50 }
 0x217   : > { %v3216_v25 = vadd.f32 %v3215_v36, %v3185_v11  ;;  %v2661_v7 = vpop.f32.mrf.mxu1  ;;  %v3190_v29 = vmul.f32 %v2961_v9, %v2961_v9 }
 0x218   : > { %v2962_v48 = vadd.f32 %v4513_v54, %v2704_v49  ;;  %v2702_v14 = vadd.f32 %v2661_v7, %v2444_v45  ;;  %v3149_v4 = vadd.f32 %v3148_v38, %v2958_v15  ;;  %v3188_v46 = vmul.f32 %v2959_v10, %v2959_v10 }
 0x219   : > { %v3217_v33 = vadd.f32 %v3216_v25, %v3186_v30 }
 0x21a   : > { %v3834_v40 = vpack.c.bf16 %v2962_v48, %v2961_v9  ;;  %v2960_v37 = vadd.f32 %v2919_v41, %v2702_v14  ;;  %v3150_v43 = vadd.f32 %v3149_v4, %v2959_v10  ;;  %v3191_v3 = vmul.f32 %v2962_v48, %v2962_v48 }
 0x21b   : > { %v3218_v51 = vadd.f32 %v3217_v33, %v3187_v24 }
 0x21c   : > { %3865 = vst [vmem:[%s5970_s27 + $0x78] sm:$0xff] %v3834_v40   ;;  %v3829_v53 = vpack.c.bf16 %v2960_v37, %v2959_v10  ;;  %v3189_v21 = vmul.f32 %v2960_v37, %v2960_v37  ;;  %v3151_v56 = vadd.f32 %v3150_v43, %v2960_v37 }
 0x21d   : > { %v3219_v52 = vadd.f32 %v3218_v51, %v3188_v46 }
 0x21e   : > { %3864 = vst [vmem:[%s5970_s27 + $0x70] sm:$0xff] %v3829_v53   ;;  %v3152_v31 = vadd.f32 %v3151_v56, %v2961_v9 }
 0x21f   : > { %v3220_v13 = vadd.f32 %v3219_v52, %v3189_v21 }
 0x220   : > { %v3153_v34 = vadd.f32 %v3152_v31, %v2962_v48 }
 0x221   : > { %v3221_v35 = vadd.f32 %v3220_v13, %v3190_v29 }
 0x222   : > { %v3154_v60 = vrot.slane %v3153_v34, 4 }
 0x223   : > { %v3222_v57 = vadd.f32 %v3221_v35, %v3191_v3 }
 0x224   : > { %v3155_v6 = vadd.f32 %v3154_v60, %v3153_v34 }
 0x225   : > { %v3223_v5 = vrot.slane %v3222_v57, 4 }
 0x226   : > { %v3156_v12 = vrot.slane %v3155_v6, 2 }
 0x227   : > { %v3224_v15 = vadd.f32 %v3223_v5, %v3222_v57 }
 0x228   : > { %v3157_v18 = vadd.f32 %v3156_v12, %v3155_v6 }
 0x229   : > { %v3225_v61 = vrot.slane %v3224_v15, 2 }
 0x22a   : > { %v3158_v58 = vrot.slane %v3157_v18, 1 }
 0x22b   : > { %v3226_v0 = vadd.f32 %v3225_v61, %v3224_v15 }
 0x22c   : > { %v3159_v19 = vadd.f32 %v3158_v58, %v3157_v18 }
 0x22d   : > { %v3227_v26 = vrot.slane %v3226_v0, 1 }
 0x22f   : > { %v3228_v55 = vadd.f32 %v3227_v26, %v3226_v0 }
 0x231   : > { %v3229_v1 = vsel %vm464_vm0, %v3159_v19, %v3228_v55 }
 0x232   : > { %3230 = vst [vmem:[%s238_s30] sm:$0x3] %v3229_v1 }
 0x233 PF: > { %s16_s18 = sadd.s32 1, %s4617_s18  }
 0x234   : > { %p13_p5 = scmp.ge.s32.totalorder %s16_s18, 7  }
 0x236   :  { %15 = sbr.rel (!%p13_p5) target bundleno = 1 (0x1), region = 86 }

</bundles_post_ra>
